<compile_context>
chip_gen: v7x
topology: tpu7x:2x2x1
jax: 0.10.0
libtpu: 0.0.40
codegen_flags: <defaults>
</compile_context>

<pallas_src>
import functools

import jax
import jax.numpy as jnp
from jax import lax
from jax.experimental import pallas as pl
from jax.experimental.pallas import tpu as pltpu

EPS = 1e-5  # nn.BatchNorm2d default


# ----------------------------------------------------------------------------
# Per-model constant repacking (pure jnp -> jittable / stays on device)
# ----------------------------------------------------------------------------
def _make_conv_matrix(w_oihw, *, N, W):
    """Build the (K*L, L) lane-mixing matrix for the MXU conv, L = N*W*C.

    Lane layout: lane l = n*W*C + w*C + c.  Block iy (rows [iy*L, (iy+1)*L)) pairs with
    the input slab vertically shifted by dy = iy - K//2.  Entry [iy*L + l_in, l_out] is
    w[c_out, c_in, iy, (w_in - w_out) + K//2], zeroed whenever l_in/l_out belong to
    different images or |w_in - w_out| > K//2 (this folds the conv's zero padding along
    W and the image separation into the weights; padding along H is handled by masking
    the shifted slabs in-kernel).
    """
    w = jnp.asarray(w_oihw, jnp.float32)              # (Cout, Cin, K, K)
    C, K = w.shape[0], w.shape[-1]
    half = K // 2
    L = N * W * C
    lanes = jnp.arange(L)
    n_idx = lanes // (W * C)
    w_idx = (lanes // C) % W
    c_idx = lanes % C
    dx = w_idx[:, None] - w_idx[None, :]              # w_in - w_out      (L_in, L_out)
    valid = (n_idx[:, None] == n_idx[None, :]) & (jnp.abs(dx) <= half)
    kx = jnp.clip(dx, -half, half) + half             # kernel column index
    cout = c_idx[None, :]                             # (1, L)
    cin = c_idx[:, None]                              # (L, 1)
    blocks = []
    for iy in range(K):
        vals = w[cout, cin, iy, kx]                   # (L, L)
        blocks.append(jnp.where(valid, vals, 0.0))
    return jnp.concatenate(blocks, axis=0)            # (K*L, L)


def _make_channel_agg(N, W, C):
    """(L, L) 0/1 matrix: Agg[i, j] = 1 iff lanes i and j hold the same channel."""
    c = jnp.arange(N * W * C) % C
    return (c[:, None] == c[None, :]).astype(jnp.float32)


def prepare_rescnn_params(w1_oihw, w2_oihw, g1, b1, g2, b2, g3, b3, *, N, W):
    """Repack per-model constants ONCE (pure jnp; safe inside jit / grad)."""
    C = w1_oihw.shape[0]
    w_big1 = _make_conv_matrix(w1_oihw, N=N, W=W)     # (K*L, L)
    w_big2 = _make_conv_matrix(w2_oihw, N=N, W=W)
    bn_pack = jnp.stack(
        [jnp.tile(jnp.asarray(p, jnp.float32).reshape(-1), N * W)
         for p in (g1, b1, g2, b2, g3, b3)])          # (6, L)
    agg = _make_channel_agg(N, W, C)                  # (L, L)
    return w_big1, w_big2, bn_pack, agg


# ----------------------------------------------------------------------------
# Kernel
# ----------------------------------------------------------------------------
def rescnn_kernel(x_ref, w1_ref, w2_ref, bnp_ref, agg_ref, o_ref, *, C, K):
    H, L = x_ref.shape
    half = K // 2
    inv = 1.0 / float((L // C) * H)                   # 1 / (N*H*W)

    row_ids = lax.broadcasted_iota(jnp.int32, (H, L), 0)
    # Validity masks for each vertical shift dy != 0 (zero padding along H).
    hmask = {dy: (row_ids + dy >= 0) & (row_ids + dy < H)
             for dy in range(-half, half + 1) if dy != 0}

    def conv(slab, w_ref):
        # X_big = [x[h-half] | ... | x[h] | ... | x[h+half]]  -> (H, K*L)
        parts = []
        for iy in range(K):
            dy = iy - half
            if dy == 0:
                parts.append(slab)
            else:
                shifted = pltpu.roll(slab, shift=(-dy) % H, axis=0)
                parts.append(jnp.where(hmask[dy], shifted, 0.0))
        xbig = jnp.concatenate(parts, axis=1)
        # One MXU matmul covers all K*K*C taps; fp32 contract precision keeps the
        # result bit-comparable to the HIGHEST-precision XLA reference.
        return jnp.dot(xbig, w_ref[...],
                       preferred_element_type=jnp.float32,
                       precision=lax.Precision.HIGHEST)

    def bn_act(slab, g_row, b_row, relu):
        # One-pass batch stats: the two sublane reductions are independent, and the
        # per-channel lane reduction is a tiny 0/1-aggregation matmul (MXU).
        s1 = jnp.sum(slab, axis=0, keepdims=True)                 # (1, L)
        s2 = jnp.sum(slab * slab, axis=0, keepdims=True)          # (1, L)
        mean = jnp.dot(s1, agg_ref[...], preferred_element_type=jnp.float32,
                       precision=lax.Precision.HIGHEST) * inv
        ex2 = jnp.dot(s2, agg_ref[...], preferred_element_type=jnp.float32,
                      precision=lax.Precision.HIGHEST) * inv
        var = ex2 - mean * mean
        scale = g_row * lax.rsqrt(var + EPS)                      # (1, L)
        bias = b_row - mean * scale                               # (1, L)
        out = slab * scale + bias
        return jnp.maximum(out, 0.0) if relu else out

    x = x_ref[...]
    g1 = bnp_ref[0:1, :]; b1 = bnp_ref[1:2, :]
    g2 = bnp_ref[2:3, :]; b2 = bnp_ref[3:4, :]
    g3 = bnp_ref[4:5, :]; b3 = bnp_ref[5:6, :]

    out = bn_act(conv(x, w1_ref), g1, b1, relu=True)     # relu(bn1(conv1(x)))
    out = bn_act(conv(out, w2_ref), g2, b2, relu=True)   # relu(bn2(conv2(out)))
    out = bn_act(conv(out, w1_ref), g3, b3, relu=False)  # bn3(conv1(out)) -- conv1 reused
    o_ref[...] = jnp.maximum(out + x, 0.0)               # residual add + ReLU (unmasked 128-lane store)


# ----------------------------------------------------------------------------
# Wrapper (PyTorch layouts: x NCHW, conv weights OIHW)
# ----------------------------------------------------------------------------
@jax.jit
def rescnn_apply(x_nchw, w_big1, w_big2, bn_pack, agg):
    N, C, H, W = x_nchw.shape
    L = N * W * C
    K = w_big1.shape[0] // L
    # TODO(synk): for large N*H*W add a grid over H-tiles (K-1 halo) marked "parallel"
    # (so v7x's second TensorCore is used), a cross-tile BN-stats reduction, and an
    # explicit vmem_limit_bytes sized for v7x's 64 MiB VMEM; at this toy size (<0.5 MiB
    # of VMEM) a single gridless invocation is simplest and fastest.

    # lane-dense activation slab: slab[h, n*W*C + w*C + c] = x[n, c, h, w]
    x_slab = jnp.transpose(x_nchw, (2, 0, 3, 1)).reshape(H, L).astype(jnp.float32)

    vmem = pl.BlockSpec(memory_space=pltpu.MemorySpace.VMEM)
    out_slab = pl.pallas_call(
        functools.partial(rescnn_kernel, C=C, K=K),
        out_shape=jax.ShapeDtypeStruct((H, L), jnp.float32),
        in_specs=[vmem] * 5,
        out_specs=vmem,
    )(x_slab, w_big1, w_big2, bn_pack, agg)
    # back to NCHW
    return jnp.transpose(out_slab.reshape(H, N, W, C), (1, 3, 0, 2))


def rescnn_forward(x_nchw, w1_oihw, w2_oihw, g1, b1, g2, b2, g3, b3):
    """Convenience one-shot entry point (prefer prepare once + rescnn_apply per call)."""
    N, C, H, W = x_nchw.shape
    params = prepare_rescnn_params(w1_oihw, w2_oihw, g1, b1, g2, b2, g3, b3, N=N, W=W)
    return rescnn_apply(x_nchw, *params)


# ----------------------------------------------------------------------------
# Pure-JAX reference (identical semantics) for the correctness check
# ----------------------------------------------------------------------------
def rescnn_reference(x, w1, w2, g1, b1, g2, b2, g3, b3):
    pad = (w1.shape[-1] - 1) // 2

    def conv(inp, w):
        return lax.conv_general_dilated(
            inp, w, window_strides=(1, 1),
            padding=[(pad, pad), (pad, pad)],
            dimension_numbers=("NCHW", "OIHW", "NCHW"),
            precision=lax.Precision.HIGHEST)

    def bn(inp, g, b):
        m = jnp.mean(inp, axis=(0, 2, 3), keepdims=True)
        v = jnp.mean((inp - m) ** 2, axis=(0, 2, 3), keepdims=True)
        return (inp - m) * (g.reshape(1, -1, 1, 1) * lax.rsqrt(v + EPS)) + b.reshape(1, -1, 1, 1)

    out = jax.nn.relu(bn(conv(x, w1), g1, b1))
    out = jax.nn.relu(bn(conv(out, w2), g2, b2))
    out = bn(conv(out, w1), g3, b3)
    return jax.nn.relu(out + x)


if __name__ == "__main__":
    # ResCNN(in_planes=4, planes=4, window=1): planes must equal in_planes for the
    # residual add and the conv1 reuse in forward() to typecheck.
    N, C, H, W = 2, 4, 16, 16
    K = 3  # kernel_size = 2 * window + 1, window = 1

    key = jax.random.PRNGKey(0)
    kx, k1, k2, k3, kg, kb = jax.random.split(key, 6)

    x = jax.random.normal(kx, (N, C, H, W), jnp.float32)                     # NCHW
    bound = 1.0 / (C * K * K) ** 0.5                                         # kaiming-uniform-like bound
    w1 = jax.random.uniform(k1, (C, C, K, K), jnp.float32, -bound, bound)    # OIHW
    w2 = jax.random.uniform(k2, (C, C, K, K), jnp.float32, -bound, bound)
    w3 = jax.random.uniform(k3, (C, C, K, K), jnp.float32, -bound, bound)    # defined in __init__, unused by forward

    # BatchNorm affine params (PyTorch init is gamma=1/beta=0; randomized slightly here
    # to exercise the full affine path -- the reference applies the same math).
    gammas = 1.0 + 0.1 * jax.random.normal(kg, (3, C), jnp.float32)
    betas = 0.1 * jax.random.normal(kb, (3, C), jnp.float32)
    g1, g2, g3 = gammas
    b1, b2, b3 = betas

    # Per-model repack done ONCE (pure jnp, device-resident); per-call work is just the
    # jitted rescnn_apply.
    params = prepare_rescnn_params(w1, w2, g1, b1, g2, b2, g3, b3, N=N, W=W)
    out = jax.block_until_ready(rescnn_apply(x, *params))

    ref = rescnn_reference(x, w1, w2, g1, b1, g2, b2, g3, b3)
    # Tight check: both the in-kernel MXU matmuls (fp32 contract precision) and the XLA
    # reference conv (HIGHEST) compute effectively-f32 sums; remaining difference is
    # summation-order noise plus the one-pass vs two-pass variance formulation.
    if not jnp.allclose(out, ref, rtol=1e-4, atol=1e-4):
        err = float(jnp.max(jnp.abs(out - ref)))
        raise AssertionError(f"Pallas ResCNN mismatch vs JAX reference (max abs err {err:.3e})")

    print("KERNEL_OK")
</pallas_src>

<mosaic_0001>
module attributes {stable_mosaic.version = 11 : i64} {
  func.func @rescnn_kernel(%arg0: memref<16x128xf32, #tpu.memory_space<vmem>>, %arg1: memref<384x128xf32, #tpu.memory_space<vmem>>, %arg2: memref<384x128xf32, #tpu.memory_space<vmem>>, %arg3: memref<6x128xf32, #tpu.memory_space<vmem>>, %arg4: memref<128x128xf32, #tpu.memory_space<vmem>>, %arg5: memref<16x128xf32, #tpu.memory_space<vmem>>) attributes {dimension_semantics = [], scalar_prefetch = 0 : i64, scratch_operands = 0 : i64, tpu.core_type = #tpu.core_type<tc>} {
    %0 = tpu.iota {dimensions = array<i32: 0>} : vector<16x128xi32>
    %c-1_i32 = arith.constant -1 : i32
    %1 = vector.broadcast %c-1_i32 : i32 to vector<16x128xi32>
    %2 = arith.addi %0, %1 : vector<16x128xi32>
    %c0_i32 = arith.constant 0 : i32
    %3 = vector.broadcast %c0_i32 : i32 to vector<16x128xi32>
    %4 = arith.cmpi sge, %2, %3 : vector<16x128xi32>
    %c-1_i32_0 = arith.constant -1 : i32
    %5 = vector.broadcast %c-1_i32_0 : i32 to vector<16x128xi32>
    %6 = arith.addi %0, %5 : vector<16x128xi32>
    %c16_i32 = arith.constant 16 : i32
    %7 = vector.broadcast %c16_i32 : i32 to vector<16x128xi32>
    %8 = arith.cmpi slt, %6, %7 : vector<16x128xi32>
    %9 = arith.andi %4, %8 : vector<16x128xi1>
    %c1_i32 = arith.constant 1 : i32
    %10 = vector.broadcast %c1_i32 : i32 to vector<16x128xi32>
    %11 = arith.addi %0, %10 : vector<16x128xi32>
    %c0_i32_1 = arith.constant 0 : i32
    %12 = vector.broadcast %c0_i32_1 : i32 to vector<16x128xi32>
    %13 = arith.cmpi sge, %11, %12 : vector<16x128xi32>
    %c1_i32_2 = arith.constant 1 : i32
    %14 = vector.broadcast %c1_i32_2 : i32 to vector<16x128xi32>
    %15 = arith.addi %0, %14 : vector<16x128xi32>
    %c16_i32_3 = arith.constant 16 : i32
    %16 = vector.broadcast %c16_i32_3 : i32 to vector<16x128xi32>
    %17 = arith.cmpi slt, %15, %16 : vector<16x128xi32>
    %18 = arith.andi %13, %17 : vector<16x128xi1>
    %c0 = arith.constant 0 : index
    %c0_4 = arith.constant 0 : index
    %19 = vector.load %arg0[%c0, %c0_4] : memref<16x128xf32, #tpu.memory_space<vmem>>, vector<16x128xf32>
    %c0_5 = arith.constant 0 : index
    %c0_6 = arith.constant 0 : index
    %20 = vector.load %arg3[%c0_5, %c0_6] : memref<6x128xf32, #tpu.memory_space<vmem>>, vector<1x128xf32>
    %c1 = arith.constant 1 : index
    %c0_7 = arith.constant 0 : index
    %21 = vector.load %arg3[%c1, %c0_7] : memref<6x128xf32, #tpu.memory_space<vmem>>, vector<1x128xf32>
    %c2 = arith.constant 2 : index
    %c0_8 = arith.constant 0 : index
    %22 = vector.load %arg3[%c2, %c0_8] : memref<6x128xf32, #tpu.memory_space<vmem>>, vector<1x128xf32>
    %c3 = arith.constant 3 : index
    %c0_9 = arith.constant 0 : index
    %23 = vector.load %arg3[%c3, %c0_9] : memref<6x128xf32, #tpu.memory_space<vmem>>, vector<1x128xf32>
    %c4 = arith.constant 4 : index
    %c0_10 = arith.constant 0 : index
    %24 = vector.load %arg3[%c4, %c0_10] : memref<6x128xf32, #tpu.memory_space<vmem>>, vector<1x128xf32>
    %c5 = arith.constant 5 : index
    %c0_11 = arith.constant 0 : index
    %25 = vector.load %arg3[%c5, %c0_11] : memref<6x128xf32, #tpu.memory_space<vmem>>, vector<1x128xf32>
    %c1_i32_12 = arith.constant 1 : i32
    %26 = tpu.dynamic_rotate %19 by %c1_i32_12 dim 0 : vector<16x128xf32>, i32 -> vector<16x128xf32>
    %cst = arith.constant 0.000000e+00 : f32
    %27 = vector.broadcast %cst : f32 to vector<16x128xf32>
    %28 = arith.select %9, %26, %27 : vector<16x128xi1>, vector<16x128xf32>
    %c15_i32 = arith.constant 15 : i32
    %29 = tpu.dynamic_rotate %19 by %c15_i32 dim 0 : vector<16x128xf32>, i32 -> vector<16x128xf32>
    %cst_13 = arith.constant 0.000000e+00 : f32
    %30 = vector.broadcast %cst_13 : f32 to vector<16x128xf32>
    %31 = arith.select %18, %29, %30 : vector<16x128xi1>, vector<16x128xf32>
    %32 = tpu.concatenate %28, %19, %31 in 1 : vector<16x128xf32>, vector<16x128xf32>, vector<16x128xf32> -> vector<16x384xf32>
    %c0_14 = arith.constant 0 : index
    %c0_15 = arith.constant 0 : index
    %33 = vector.load %arg1[%c0_14, %c0_15] : memref<384x128xf32, #tpu.memory_space<vmem>>, vector<384x128xf32>
    %cst_16 = arith.constant dense<0.000000e+00> : vector<16x128xf32>
    %34 = tpu.matmul %32, %33, %cst_16 {dimension_numbers = #tpu.dot_dimension_numbers<[1], [0], [0], [1], [0, 0, 1, 1], [], []>, precision = #tpu.contract_precision<fp32>} : vector<16x384xf32>, vector<384x128xf32>, vector<16x128xf32> -> vector<16x128xf32>
    %cst_17 = arith.constant dense<0.000000e+00> : vector<128xf32>
    %35 = vector.multi_reduction <add>, %34, %cst_17 [0] : vector<16x128xf32> to vector<128xf32>
    %36 = vector.shape_cast %35 : vector<128xf32> to vector<1x128xf32>
    %37 = arith.mulf %34, %34 : vector<16x128xf32>
    %cst_18 = arith.constant dense<0.000000e+00> : vector<128xf32>
    %38 = vector.multi_reduction <add>, %37, %cst_18 [0] : vector<16x128xf32> to vector<128xf32>
    %39 = vector.shape_cast %38 : vector<128xf32> to vector<1x128xf32>
    %c0_19 = arith.constant 0 : index
    %c0_20 = arith.constant 0 : index
    %40 = vector.load %arg4[%c0_19, %c0_20] : memref<128x128xf32, #tpu.memory_space<vmem>>, vector<128x128xf32>
    %cst_21 = arith.constant dense<0.000000e+00> : vector<1x128xf32>
    %41 = tpu.matmul %36, %40, %cst_21 {dimension_numbers = #tpu.dot_dimension_numbers<[1], [0], [0], [1], [0, 0, 1, 1], [], []>, precision = #tpu.contract_precision<fp32>} : vector<1x128xf32>, vector<128x128xf32>, vector<1x128xf32> -> vector<1x128xf32>
    %cst_22 = arith.constant 0.001953125 : f32
    %42 = vector.broadcast %cst_22 : f32 to vector<1x128xf32>
    %43 = arith.mulf %41, %42 : vector<1x128xf32>
    %c0_23 = arith.constant 0 : index
    %c0_24 = arith.constant 0 : index
    %44 = vector.load %arg4[%c0_23, %c0_24] : memref<128x128xf32, #tpu.memory_space<vmem>>, vector<128x128xf32>
    %cst_25 = arith.constant dense<0.000000e+00> : vector<1x128xf32>
    %45 = tpu.matmul %39, %44, %cst_25 {dimension_numbers = #tpu.dot_dimension_numbers<[1], [0], [0], [1], [0, 0, 1, 1], [], []>, precision = #tpu.contract_precision<fp32>} : vector<1x128xf32>, vector<128x128xf32>, vector<1x128xf32> -> vector<1x128xf32>
    %cst_26 = arith.constant 0.001953125 : f32
    %46 = vector.broadcast %cst_26 : f32 to vector<1x128xf32>
    %47 = arith.mulf %45, %46 : vector<1x128xf32>
    %48 = arith.mulf %43, %43 : vector<1x128xf32>
    %49 = arith.subf %47, %48 : vector<1x128xf32>
    %cst_27 = arith.constant 9.99999974E-6 : f32
    %50 = vector.broadcast %cst_27 : f32 to vector<1x128xf32>
    %51 = arith.addf %49, %50 : vector<1x128xf32>
    %52 = math.rsqrt %51 : vector<1x128xf32>
    %53 = arith.mulf %20, %52 : vector<1x128xf32>
    %54 = arith.mulf %43, %53 : vector<1x128xf32>
    %55 = arith.subf %21, %54 : vector<1x128xf32>
    %56 = vector.broadcast %53 : vector<1x128xf32> to vector<16x128xf32>
    %57 = arith.mulf %34, %56 : vector<16x128xf32>
    %58 = vector.broadcast %55 : vector<1x128xf32> to vector<16x128xf32>
    %59 = arith.addf %57, %58 : vector<16x128xf32>
    %cst_28 = arith.constant 0.000000e+00 : f32
    %60 = vector.broadcast %cst_28 : f32 to vector<16x128xf32>
    %61 = arith.maximumf %59, %60 : vector<16x128xf32>
    %c1_i32_29 = arith.constant 1 : i32
    %62 = tpu.dynamic_rotate %61 by %c1_i32_29 dim 0 : vector<16x128xf32>, i32 -> vector<16x128xf32>
    %cst_30 = arith.constant 0.000000e+00 : f32
    %63 = vector.broadcast %cst_30 : f32 to vector<16x128xf32>
    %64 = arith.select %9, %62, %63 : vector<16x128xi1>, vector<16x128xf32>
    %c15_i32_31 = arith.constant 15 : i32
    %65 = tpu.dynamic_rotate %61 by %c15_i32_31 dim 0 : vector<16x128xf32>, i32 -> vector<16x128xf32>
    %cst_32 = arith.constant 0.000000e+00 : f32
    %66 = vector.broadcast %cst_32 : f32 to vector<16x128xf32>
    %67 = arith.select %18, %65, %66 : vector<16x128xi1>, vector<16x128xf32>
    %68 = tpu.concatenate %64, %61, %67 in 1 : vector<16x128xf32>, vector<16x128xf32>, vector<16x128xf32> -> vector<16x384xf32>
    %c0_33 = arith.constant 0 : index
    %c0_34 = arith.constant 0 : index
    %69 = vector.load %arg2[%c0_33, %c0_34] : memref<384x128xf32, #tpu.memory_space<vmem>>, vector<384x128xf32>
    %cst_35 = arith.constant dense<0.000000e+00> : vector<16x128xf32>
    %70 = tpu.matmul %68, %69, %cst_35 {dimension_numbers = #tpu.dot_dimension_numbers<[1], [0], [0], [1], [0, 0, 1, 1], [], []>, precision = #tpu.contract_precision<fp32>} : vector<16x384xf32>, vector<384x128xf32>, vector<16x128xf32> -> vector<16x128xf32>
    %cst_36 = arith.constant dense<0.000000e+00> : vector<128xf32>
    %71 = vector.multi_reduction <add>, %70, %cst_36 [0] : vector<16x128xf32> to vector<128xf32>
    %72 = vector.shape_cast %71 : vector<128xf32> to vector<1x128xf32>
    %73 = arith.mulf %70, %70 : vector<16x128xf32>
    %cst_37 = arith.constant dense<0.000000e+00> : vector<128xf32>
    %74 = vector.multi_reduction <add>, %73, %cst_37 [0] : vector<16x128xf32> to vector<128xf32>
    %75 = vector.shape_cast %74 : vector<128xf32> to vector<1x128xf32>
    %c0_38 = arith.constant 0 : index
    %c0_39 = arith.constant 0 : index
    %76 = vector.load %arg4[%c0_38, %c0_39] : memref<128x128xf32, #tpu.memory_space<vmem>>, vector<128x128xf32>
    %cst_40 = arith.constant dense<0.000000e+00> : vector<1x128xf32>
    %77 = tpu.matmul %72, %76, %cst_40 {dimension_numbers = #tpu.dot_dimension_numbers<[1], [0], [0], [1], [0, 0, 1, 1], [], []>, precision = #tpu.contract_precision<fp32>} : vector<1x128xf32>, vector<128x128xf32>, vector<1x128xf32> -> vector<1x128xf32>
    %cst_41 = arith.constant 0.001953125 : f32
    %78 = vector.broadcast %cst_41 : f32 to vector<1x128xf32>
    %79 = arith.mulf %77, %78 : vector<1x128xf32>
    %c0_42 = arith.constant 0 : index
    %c0_43 = arith.constant 0 : index
    %80 = vector.load %arg4[%c0_42, %c0_43] : memref<128x128xf32, #tpu.memory_space<vmem>>, vector<128x128xf32>
    %cst_44 = arith.constant dense<0.000000e+00> : vector<1x128xf32>
    %81 = tpu.matmul %75, %80, %cst_44 {dimension_numbers = #tpu.dot_dimension_numbers<[1], [0], [0], [1], [0, 0, 1, 1], [], []>, precision = #tpu.contract_precision<fp32>} : vector<1x128xf32>, vector<128x128xf32>, vector<1x128xf32> -> vector<1x128xf32>
    %cst_45 = arith.constant 0.001953125 : f32
    %82 = vector.broadcast %cst_45 : f32 to vector<1x128xf32>
    %83 = arith.mulf %81, %82 : vector<1x128xf32>
    %84 = arith.mulf %79, %79 : vector<1x128xf32>
    %85 = arith.subf %83, %84 : vector<1x128xf32>
    %cst_46 = arith.constant 9.99999974E-6 : f32
    %86 = vector.broadcast %cst_46 : f32 to vector<1x128xf32>
    %87 = arith.addf %85, %86 : vector<1x128xf32>
    %88 = math.rsqrt %87 : vector<1x128xf32>
    %89 = arith.mulf %22, %88 : vector<1x128xf32>
    %90 = arith.mulf %79, %89 : vector<1x128xf32>
    %91 = arith.subf %23, %90 : vector<1x128xf32>
    %92 = vector.broadcast %89 : vector<1x128xf32> to vector<16x128xf32>
    %93 = arith.mulf %70, %92 : vector<16x128xf32>
    %94 = vector.broadcast %91 : vector<1x128xf32> to vector<16x128xf32>
    %95 = arith.addf %93, %94 : vector<16x128xf32>
    %cst_47 = arith.constant 0.000000e+00 : f32
    %96 = vector.broadcast %cst_47 : f32 to vector<16x128xf32>
    %97 = arith.maximumf %95, %96 : vector<16x128xf32>
    %c1_i32_48 = arith.constant 1 : i32
    %98 = tpu.dynamic_rotate %97 by %c1_i32_48 dim 0 : vector<16x128xf32>, i32 -> vector<16x128xf32>
    %cst_49 = arith.constant 0.000000e+00 : f32
    %99 = vector.broadcast %cst_49 : f32 to vector<16x128xf32>
    %100 = arith.select %9, %98, %99 : vector<16x128xi1>, vector<16x128xf32>
    %c15_i32_50 = arith.constant 15 : i32
    %101 = tpu.dynamic_rotate %97 by %c15_i32_50 dim 0 : vector<16x128xf32>, i32 -> vector<16x128xf32>
    %cst_51 = arith.constant 0.000000e+00 : f32
    %102 = vector.broadcast %cst_51 : f32 to vector<16x128xf32>
    %103 = arith.select %18, %101, %102 : vector<16x128xi1>, vector<16x128xf32>
    %104 = tpu.concatenate %100, %97, %103 in 1 : vector<16x128xf32>, vector<16x128xf32>, vector<16x128xf32> -> vector<16x384xf32>
    %c0_52 = arith.constant 0 : index
    %c0_53 = arith.constant 0 : index
    %105 = vector.load %arg1[%c0_52, %c0_53] : memref<384x128xf32, #tpu.memory_space<vmem>>, vector<384x128xf32>
    %cst_54 = arith.constant dense<0.000000e+00> : vector<16x128xf32>
    %106 = tpu.matmul %104, %105, %cst_54 {dimension_numbers = #tpu.dot_dimension_numbers<[1], [0], [0], [1], [0, 0, 1, 1], [], []>, precision = #tpu.contract_precision<fp32>} : vector<16x384xf32>, vector<384x128xf32>, vector<16x128xf32> -> vector<16x128xf32>
    %cst_55 = arith.constant dense<0.000000e+00> : vector<128xf32>
    %107 = vector.multi_reduction <add>, %106, %cst_55 [0] : vector<16x128xf32> to vector<128xf32>
    %108 = vector.shape_cast %107 : vector<128xf32> to vector<1x128xf32>
    %109 = arith.mulf %106, %106 : vector<16x128xf32>
    %cst_56 = arith.constant dense<0.000000e+00> : vector<128xf32>
    %110 = vector.multi_reduction <add>, %109, %cst_56 [0] : vector<16x128xf32> to vector<128xf32>
    %111 = vector.shape_cast %110 : vector<128xf32> to vector<1x128xf32>
    %c0_57 = arith.constant 0 : index
    %c0_58 = arith.constant 0 : index
    %112 = vector.load %arg4[%c0_57, %c0_58] : memref<128x128xf32, #tpu.memory_space<vmem>>, vector<128x128xf32>
    %cst_59 = arith.constant dense<0.000000e+00> : vector<1x128xf32>
    %113 = tpu.matmul %108, %112, %cst_59 {dimension_numbers = #tpu.dot_dimension_numbers<[1], [0], [0], [1], [0, 0, 1, 1], [], []>, precision = #tpu.contract_precision<fp32>} : vector<1x128xf32>, vector<128x128xf32>, vector<1x128xf32> -> vector<1x128xf32>
    %cst_60 = arith.constant 0.001953125 : f32
    %114 = vector.broadcast %cst_60 : f32 to vector<1x128xf32>
    %115 = arith.mulf %113, %114 : vector<1x128xf32>
    %c0_61 = arith.constant 0 : index
    %c0_62 = arith.constant 0 : index
    %116 = vector.load %arg4[%c0_61, %c0_62] : memref<128x128xf32, #tpu.memory_space<vmem>>, vector<128x128xf32>
    %cst_63 = arith.constant dense<0.000000e+00> : vector<1x128xf32>
    %117 = tpu.matmul %111, %116, %cst_63 {dimension_numbers = #tpu.dot_dimension_numbers<[1], [0], [0], [1], [0, 0, 1, 1], [], []>, precision = #tpu.contract_precision<fp32>} : vector<1x128xf32>, vector<128x128xf32>, vector<1x128xf32> -> vector<1x128xf32>
    %cst_64 = arith.constant 0.001953125 : f32
    %118 = vector.broadcast %cst_64 : f32 to vector<1x128xf32>
    %119 = arith.mulf %117, %118 : vector<1x128xf32>
    %120 = arith.mulf %115, %115 : vector<1x128xf32>
    %121 = arith.subf %119, %120 : vector<1x128xf32>
    %cst_65 = arith.constant 9.99999974E-6 : f32
    %122 = vector.broadcast %cst_65 : f32 to vector<1x128xf32>
    %123 = arith.addf %121, %122 : vector<1x128xf32>
    %124 = math.rsqrt %123 : vector<1x128xf32>
    %125 = arith.mulf %24, %124 : vector<1x128xf32>
    %126 = arith.mulf %115, %125 : vector<1x128xf32>
    %127 = arith.subf %25, %126 : vector<1x128xf32>
    %128 = vector.broadcast %125 : vector<1x128xf32> to vector<16x128xf32>
    %129 = arith.mulf %106, %128 : vector<16x128xf32>
    %130 = vector.broadcast %127 : vector<1x128xf32> to vector<16x128xf32>
    %131 = arith.addf %129, %130 : vector<16x128xf32>
    %132 = arith.addf %131, %19 : vector<16x128xf32>
    %cst_66 = arith.constant 0.000000e+00 : f32
    %133 = vector.broadcast %cst_66 : f32 to vector<16x128xf32>
    %134 = arith.maximumf %132, %133 : vector<16x128xf32>
    %c0_67 = arith.constant 0 : index
    %c0_68 = arith.constant 0 : index
    %135 = vector.load %arg5[%c0_67, %c0_68] : memref<16x128xf32, #tpu.memory_space<vmem>>, vector<16x128xf32>
    tpu.vector_store %arg5[%c0_67, %c0_68], %134 {strides = array<i32>} : memref<16x128xf32, #tpu.memory_space<vmem>>, vector<16x128xf32>,
    return
  }
}

</mosaic_0001>

<bundles_post_ra>
// kernel: rescnn_apply.1
= control target key start
LH: loop header
LB: loop body
LE: loop exit
PB: predicated region body
PF: predicated region fallthrough
CT: control target
= control target key end

     0   :  { %10 = vsyncpa [#allocation3], 0  ;;  %s18669_s0 = inlined_call_operand.vmem [shape: f32[16,128], index: 0, kind: input, shape index: {}]   ;;  %s18670_s1 = inlined_call_operand.vmem [shape: f32[384,128], index: 1, kind: input, shape index: {}]   ;;  %s18671_s2 = inlined_call_operand.hbm [shape: f32[384,128], index: 2, kind: input, shape index: {}]   ;;  %s18672_s3 = inlined_call_operand.vmem [shape: f32[6,128], index: 3, kind: input, shape index: {}]   ;;  %s18673_s4 = inlined_call_operand.hbm [shape: f32[128,128], index: 4, kind: input, shape index: {}]   ;;  %s18674_s5 = inlined_call_operand.vmem [shape: f32[16,128], index: 5, kind: output, shape index: {}]  }
   0x1   :  { %11 = vsyncpa [#allocation5], 0  ;;  %s14689_s18 = smov [#allocation2]   ;;  %s14641_s22 = scalar_lea.hbm %s18671_s2, 6144 }
   0x2   :  { %s21_s19 = sshll.u32 %s14689_s18, 4  ;;  %p14642_p0 = scmp.ne.s32.totalorder %s18671_s2, %s14641_s22  ;;  %s22_s19 = int_to_ptr.vmem [resolvable:$true] %s21_s19 }
   0x3   :  { %p14645_p1 = scmp.lt.u32.totalorder %s14641_s22, %s18671_s2 }
   0x5   :  { %p14647_p2 = pnand %p14645_p1, %p14642_p0 }
   0x7   :  { %14650 = shalt.err (!%p14647_p2)
}
   0x8   :  { %s14651_s27 = scalar_lea.vmem %s22_s19, 6144  ;;  %p14656_p4 = scmp.lt.s32.totalorder %s22_s19, %s22_s19 }
   0x9   :  { %p14652_p3 = scmp.ne.s32.totalorder %s22_s19, %s14651_s27  ;;  %p14657_p5 = scmp.lt.s32.totalorder %s14651_s27, %s14651_s27 }
   0xb   :  { %p14658_p6 = por %p14657_p5, %p14656_p4 }
   0xd   :  { %p14659_p7 = pnand %p14658_p6, %p14652_p3 }
   0xf   :  { %14662 = shalt.err (!%p14659_p7)
}
  0x10   :  { %s14690_s28 = smov 128   ;;  %s14691_s29 = smov 8  }
  0x11   :  { %27 = dma.hbm_to_vmem [thread:$0]  %s18671_s2, 6144, %s22_s19, [#allocation3], %s14690_s28, %s14690_s28, %s14691_s29  }
  0x12   :  { %s14692_s7 = smov [#allocation4]   ;;  %s14663_s11 = scalar_lea.hbm %s18673_s4, 2048 }
  0x13   :  { %s35_s8 = sshll.u32 %s14692_s7, 4  ;;  %p14664_p8 = scmp.ne.s32.totalorder %s18673_s4, %s14663_s11  ;;  %s36_s8 = int_to_ptr.vmem [resolvable:$true] %s35_s8 }
  0x14   :  { %p14667_p9 = scmp.lt.u32.totalorder %s14663_s11, %s18673_s4 }
  0x16   :  { %p14669_p10 = pnand %p14667_p9, %p14664_p8 }
  0x18   :  { %14672 = shalt.err (!%p14669_p10)
}
  0x19   :  { %s14673_s16 = scalar_lea.vmem %s36_s8, 2048  ;;  %p14678_p12 = scmp.lt.s32.totalorder %s36_s8, %s36_s8 }
  0x1a   :  { %p14674_p11 = scmp.ne.s32.totalorder %s36_s8, %s14673_s16  ;;  %p14679_p13 = scmp.lt.s32.totalorder %s14673_s16, %s14673_s16 }
  0x1c   :  { %p14680_p0 = por %p14679_p13, %p14678_p12 }
  0x1e   :  { %p14681_p1 = pnand %p14680_p0, %p14674_p11 }
  0x20   :  { %14684 = shalt.err (!%p14681_p1)
}
  0x21   :  { %41 = dma.hbm_to_vmem [thread:$0]  %s18673_s4, 2048, %s36_s8, [#allocation5], %s14690_s28, %s14690_s28, %s14691_s29  }
  0x22   :  { %14685 = dma.done.wait [#allocation3], 6144  }
  0x23   :  { %14686 = vsyncadd [#allocation3], 4294961152 }
  0x24   :  { %14687 = dma.done.wait [#allocation5], 2048  }
  0x25   :  { %14688 = vsyncadd [#allocation5], 4294965248  ;;  %v48_v0 = vlaneseq  ;;  %v14756_v3 = vld [vmem:[%s18670_s1 + $0x80] sm:$0xff]  ;;  %v14761_v4 = vld [vmem:[%s18670_s1 + $0x88] sm:$0xff]  ;;  %vm14694_vm4 = vmmov 0  }
  0x26   :  { %v14766_v5 = vld [vmem:[%s18670_s1 + $0x100] sm:$0xff]  ;;  %v18700_v8 = vand.u32 4294901760, %v14756_v3  ;;  %v18697_v9 = vand.u32 4294901760, %v14761_v4  ;;  %v14778_v10 = vld [vmem:[%s18670_s1 + $0x108] sm:$0xff]  ;;  %v14797_v17 = vld [vmem:[%s18670_s1 + $0x90] sm:$0xff] }
  0x27   :  { %v14750_v1 = vshrl.u32 %v48_v0, 7  ;;  %v18696_v11 = vand.u32 4294901760, %v14766_v5  ;;  %v14784_v12 = vld [vmem:[%s18670_s1] sm:$0xff]  ;;  %v14789_v13 = vld [vmem:[%s18670_s1 + $0x8] sm:$0xff]  ;;  %v18695_v14 = vand.u32 4294901760, %v14778_v10  ;;  %v14802_v18 = vld [vmem:[%s18670_s1 + $0x98] sm:$0xff] }
  0x28   :  { %v18694_v15 = vand.u32 4294901760, %v14784_v12  ;;  %v18693_v16 = vand.u32 4294901760, %v14789_v13  ;;  %v14807_v19 = vld [vmem:[%s18670_s1 + $0x110] sm:$0xff]  ;;  %v14813_v20 = vpack.c.bf16 %v18697_v9, %v18700_v8  ;;  %v18690_v21 = vand.u32 4294901760, %v14797_v17  ;;  %v14820_v23 = vld [vmem:[%s18670_s1 + $0x118] sm:$0xff]  ;;  %v14850_v31 = vld [vmem:[%s18670_s1 + $0xa0] sm:$0xff] }
  0x29   :  { %19269 = vst [vmem:[#allocation8_spill] sm:$0xff] %v14750_v1  ;;  %v50_v2 = vadd.s32 8, %v14750_v1  ;;  %v14769_v6 = vadd.s32 4294967295, %v14750_v1  ;;  %v18689_v22 = vand.u32 4294901760, %v14802_v18  ;;  %v18688_v24 = vand.u32 4294901760, %v14807_v19  ;;  %v14826_v25 = vld [vmem:[%s18670_s1 + $0x10] sm:$0xff] }
  0x2a   :  { %19272 = vst [vmem:[#allocation11_spill] sm:$0xff] %v14813_v20  ;;  %v14831_v26 = vld [vmem:[%s18670_s1 + $0x18] sm:$0xff]  ;;  %v14837_v27 = vpack.c.bf16 %v18695_v14, %v18696_v11  ;;  %v14843_v28 = vpack.c.bf16 %v18693_v16, %v18694_v15  ;;  %v18687_v29 = vand.u32 4294901760, %v14820_v23  ;;  %v18682_v30 = vand.u32 4294901760, %v14826_v25  ;;  %v14855_v32 = vld [vmem:[%s18670_s1 + $0xa8] sm:$0xff]  ;;  %v14860_v33 = vld [vmem:[%s18670_s1 + $0x120] sm:$0xff]  ;;  %12515 = vmatprep.subr.bf16.mxu1 %v14813_v20 }
  0x2b   :  { %19270 = vst [vmem:[#allocation9_spill] sm:$0xff] %v14769_v6  ;;  %v14771_v7 = vadd.s32 1, %v50_v2  ;;  %v14867_v34 = vpack.c.bf16 %v18689_v22, %v18690_v21  ;;  %v18681_v35 = vand.u32 4294901760, %v14831_v26  ;;  %v18680_v36 = vand.u32 4294901760, %v14850_v31  ;;  %v14875_v38 = vld [vmem:[%s18670_s1 + $0x128] sm:$0xff]  ;;  %v14880_v39 = vld [vmem:[%s18670_s1 + $0x20] sm:$0xff] }
  0x2c   :  { %19273 = vst [vmem:[#allocation12_spill] sm:$0xff] %v14837_v27  ;;  %19274 = vst [vmem:[#allocation13_spill] sm:$0xff] %v14843_v28  ;;  %v18679_v37 = vand.u32 4294901760, %v14855_v32  ;;  %v14885_v40 = vld [vmem:[%s18670_s1 + $0x28] sm:$0xff]  ;;  %12707 = vmatprep.subr.bf16.mxu0 %v14837_v27  ;;  %12517 = vmatpush3.bf16.msra.mxu1 %v14843_v28  ;;  %v14893_v41 = vpack.c.bf16 %v18687_v29, %v18688_v24  ;;  %v18676_v42 = vand.u32 4294901760, %v14860_v33  ;;  %v18675_v43 = vand.u32 4294901760, %v14875_v38 }
  0x2d   :  { %19271 = vst [vmem:[#allocation10_spill] sm:$0xff] %v14771_v7  ;;  %19275 = vst [vmem:[#allocation14_spill] sm:$0xff] %v14867_v34  ;;  %v18678_v44 = vand.u32 4294901760, %v14880_v39  ;;  %v14901_v45 = vld [vmem:[%s18670_s1 + $0xb0] sm:$0xff]  ;;  %v14906_v46 = vld [vmem:[%s18670_s1 + $0xb8] sm:$0xff]  ;;  %12709 = vmatpush3.bf16.msra.mxu0 %v14837_v27  ;;  %12519 = vmatprep.subr.bf16.mxu1 %v14867_v34  ;;  %v14919_v48 = vpack.c.bf16 %v18681_v35, %v18682_v30  ;;  %v18677_v50 = vand.u32 4294901760, %v14885_v40 }
  0x2e   :  { %19276 = vst [vmem:[#allocation15_spill] sm:$0xff] %v14893_v41  ;;  %v14911_v47 = vld [vmem:[%s18670_s1 + $0x130] sm:$0xff]  ;;  %v14925_v49 = vpack.c.bf16 %v18679_v37, %v18680_v36  ;;  %v18684_v51 = vand.u32 4294901760, %v14901_v45  ;;  %v14932_v52 = vld [vmem:[%s18670_s1 + $0x138] sm:$0xff]  ;;  %12711 = vmatprep.subr.bf16.mxu0 %v14893_v41  ;;  %v14949_v55 = vpack.c.bf16 %v18675_v43, %v18676_v42  ;;  %v18683_v56 = vand.u32 4294901760, %v14906_v46  ;;  %v14957_v59 = vld [vmem:[%s18670_s1 + $0xc0] sm:$0xff] }
  0x2f   :  { %19277 = vst [vmem:[#allocation16_spill] sm:$0xff] %v14919_v48  ;;  %v14937_v53 = vld [vmem:[%s18670_s1 + $0x30] sm:$0xff]  ;;  %v14942_v54 = vld [vmem:[%s18670_s1 + $0x38] sm:$0xff]  ;;  %v18686_v57 = vand.u32 4294901760, %v14911_v47  ;;  %v18685_v58 = vand.u32 4294901760, %v14932_v52  ;;  %v14962_v60 = vld [vmem:[%s18670_s1 + $0xc8] sm:$0xff]  ;;  %v14973_v62 = vpack.c.bf16 %v18677_v50, %v18678_v44 }
  0x30   :  { %19278 = vst [vmem:[#allocation17_spill] sm:$0xff] %v14925_v49  ;;  %19279 = vst [vmem:[#allocation18_spill] sm:$0xff] %v14949_v55  ;;  %v14967_v61 = vld [vmem:[%s18670_s1 + $0x140] sm:$0xff]  ;;  %v18692_v63 = vand.u32 4294901760, %v14937_v53  ;;  %v18691_v0 = vand.u32 4294901760, %v14942_v54  ;;  %v18699_v2 = vand.u32 4294901760, %v14957_v59  ;;  %12521 = vmatpush3.bf16.msra.mxu1 %v14919_v48  ;;  %v14998_v44 = vpack.c.bf16 %v18683_v56, %v18684_v51 }
  0x31   :  { %19280 = vst [vmem:[#allocation19_spill] sm:$0xff] %v14973_v62  ;;  %v14981_v43 = vld [vmem:[%s18670_s1 + $0x148] sm:$0xff]  ;;  %v14986_v42 = vld [vmem:[%s18670_s1 + $0x40] sm:$0xff]  ;;  %v15004_v37 = vpack.c.bf16 %v18685_v58, %v18686_v57  ;;  %v18698_v36 = vand.u32 4294901760, %v14962_v60  ;;  %v18702_v35 = vand.u32 4294901760, %v14967_v61  ;;  %v15011_v30 = vld [vmem:[%s18670_s1 + $0xd0] sm:$0xff]  ;;  %12713 = vmatpush3.bf16.msra.mxu0 %v14893_v41  ;;  %12523 = vmatprep.subr.bf16.mxu1 %v14925_v49 }
  0x32   :  { %v14991_v50 = vld [vmem:[%s18670_s1 + $0x48] sm:$0xff]  ;;  %19281 = vst [vmem:[#allocation20_spill] sm:$0xff] %v14998_v44  ;;  %v15016_v56 = vld [vmem:[%s18670_s1 + $0xd8] sm:$0xff]  ;;  %v15021_v51 = vld [vmem:[%s18670_s1 + $0x150] sm:$0xff]  ;;  %vm77_vm0 = vcmp.lt.s32.totalorder %v14750_v1, 1  ;;  %v15030_v58 = vpack.c.bf16 %v18691_v0, %v18692_v63  ;;  %v18701_v57 = vand.u32 4294901760, %v14981_v43  ;;  %12715 = vmatprep.subr.bf16.mxu0 %v14949_v55 }
  0x33   :  { %19282 = vst [vmem:[#allocation21_spill] sm:$0xff] %v15004_v37  ;;  %19283 = vst [vmem:[#allocation22_spill] sm:$0xff] %v15016_v56  ;;  %v18704_v29 = vand.u32 4294901760, %v14986_v42  ;;  %v18703_v24 = vand.u32 4294901760, %v14991_v50  ;;  %v15038_v22 = vld [vmem:[%s18670_s1 + $0x158] sm:$0xff]  ;;  %v15043_v21 = vld [vmem:[%s18670_s1 + $0x50] sm:$0xff]  ;;  %v15056_v63 = vpack.c.bf16 %v18698_v36, %v18699_v2 }
  0x34   :  { %19284 = vst [vmem:[#allocation23_spill] sm:$0xff] %v15021_v51  ;;  %19285 = vst [vmem:[#allocation24_spill] sm:$0xff] %v15030_v58  ;;  %v15048_v0 = vld [vmem:[%s18670_s1 + $0x58] sm:$0xff]  ;;  %vm53_vm1 = vcmp.ge.s32.totalorder %v14769_v6, 0  ;;  %v15064_v11 = vld [vmem:[%s18670_s1 + $0xe0] sm:$0xff]  ;;  %vm84_vm2 = vcmp.lt.s32.totalorder %v14750_v1, 7  ;;  %v15081_v2 = vpack.c.bf16 %v18701_v57, %v18702_v35  ;;  %12525 = vmatpush3.bf16.msra.mxu1 %v14973_v62 }
  0x35   :  { %19286 = vst [vmem:[#allocation25_spill] sm:$0xff] %v15038_v22  ;;  %19287 = vst [vmem:[#allocation26_spill] sm:$0xff] %v15043_v21  ;;  %v15069_v9 = vld [vmem:[%s18670_s1 + $0xe8] sm:$0xff]  ;;  %v15074_v36 = vld [vmem:[%s18670_s1 + $0x160] sm:$0xff]  ;;  %v15087_v8 = vpack.c.bf16 %v18703_v24, %v18704_v29  ;;  %v19296_v24 = vand.u32 4294901760, %v15011_v30  ;;  %v19297_v29 = vand.u32 4294901760, %v15016_v56  ;;  %12717 = vmatpush3.bf16.msra.mxu0 %v14949_v55  ;;  %12527 = vmatprep.subr.bf16.mxu1 %v14998_v44 }
  0x36   :  { %19288 = vst [vmem:[#allocation27_spill] sm:$0xff] %v15048_v0  ;;  %19289 = vst [vmem:[#allocation28_spill] sm:$0xff] %v15056_v63  ;;  %v15094_v16 = vld [vmem:[%s18670_s1 + $0x168] sm:$0xff]  ;;  %v15099_v57 = vld [vmem:[%s18670_s1 + $0x60] sm:$0xff]  ;;  %v19301_v48 = vand.u32 4294901760, %v15038_v22  ;;  %12719 = vmatprep.subr.bf16.mxu0 %v15004_v37  ;;  %v19307_v28 = vand.u32 4294901760, %v15048_v0 }
  0x37   :  { %19290 = vst [vmem:[#allocation29_spill] sm:$0xff] %v15064_v11  ;;  %19291 = vst [vmem:[#allocation30_spill] sm:$0xff] %v15069_v9  ;;  %v15104_v35 = vld [vmem:[%s18670_s1 + $0x68] sm:$0xff]  ;;  %v15111_v15 = vpack.c.bf16 %v19297_v29, %v19296_v24  ;;  %v15119_v41 = vld [vmem:[%s18670_s1 + $0xf0] sm:$0xff]  ;;  %v19300_v29 = vand.u32 4294901760, %v15021_v51  ;;  %v19309_v14 = vand.u32 4294901760, %v15064_v11 }
  0x38   :  { %19292 = vst [vmem:[#allocation31_spill] sm:$0xff] %v15074_v36  ;;  %19293 = vst [vmem:[#allocation32_spill] sm:$0xff] %v15081_v2  ;;  %v15124_v62 = vld [vmem:[%s18670_s1 + $0xf8] sm:$0xff]  ;;  %v15129_v24 = vld [vmem:[%s18670_s1 + $0x170] sm:$0xff]  ;;  %v19310_v55 = vand.u32 4294901760, %v15069_v9  ;;  %v19313_v9 = vand.u32 4294901760, %v15094_v16  ;;  %12529 = vmatpush3.bf16.msra.mxu1 %v15030_v58 }
  0x39   :  { %19294 = vst [vmem:[#allocation33_spill] sm:$0xff] %v15087_v8  ;;  %19295 = vst [vmem:[#allocation34_spill] sm:$0xff] %v15094_v16  ;;  %v15137_v49 = vpack.c.bf16 %v19301_v48, %v19300_v29  ;;  %v15145_v20 = vld [vmem:[%s18670_s1 + $0x178] sm:$0xff]  ;;  %v15150_v44 = vld [vmem:[%s18670_s1 + $0x70] sm:$0xff]  ;;  %v19306_v29 = vand.u32 4294901760, %v15043_v21  ;;  %v18750_v51 = vand.u32 4294901760, %v15129_v24  ;;  %12721 = vmatpush3.bf16.msra.mxu0 %v15004_v37  ;;  %12531 = vmatprep.subr.bf16.mxu1 %v15056_v63 }
  0x3a   :  { %19298 = vst [vmem:[#allocation35_spill] sm:$0xff] %v15111_v15  ;;  %19299 = vst [vmem:[#allocation36_spill] sm:$0xff] %v15129_v24  ;;  %v15155_v48 = vld [vmem:[%s18670_s1 + $0x78] sm:$0xff]  ;;  %v15168_v27 = vpack.c.bf16 %v19310_v55, %v19309_v14  ;;  %v15175_v56 = vld [vmem:[%s18669_s0] sm:$0xff]  ;;  %v18749_v55 = vand.u32 4294901760, %v15124_v62  ;;  %v19315_v11 = vand.u32 4294901760, %v15099_v57  ;;  %12723 = vmatprep.subr.bf16.mxu0 %v15081_v2 }
  0x3b   :  { %19302 = vst [vmem:[#allocation37_spill] sm:$0xff] %v15137_v49  ;;  %19303 = vst [vmem:[#allocation38_spill] sm:$0xff] %v15145_v20  ;;  %v15162_v34 = vpack.c.bf16 %v19307_v28, %v19306_v29  ;;  %v15180_v28 = vld [vmem:[%s18669_s0 + $0x8] sm:$0xff]  ;;  %v19312_v29 = vand.u32 4294901760, %v15074_v36  ;;  %v19316_v0 = vand.u32 4294901760, %v15104_v35  ;;  %v18757_v16 = vrot.slane %v15175_v56, 7 }
  0x3c   :  { %19304 = vst [vmem:[#allocation39_spill] sm:$0xff] %v15150_v44  ;;  %19305 = vst [vmem:[#allocation40_spill] sm:$0xff] %v15155_v48  ;;  %v19323_v63 = vand.u32 4294901760, %v15150_v44  ;;  %v19324_v58 = vand.u32 4294901760, %v15155_v48  ;;  %v19331_v48 = vrot.slane %v15180_v28, 7  ;;  %v19332_v44 = vand.u32 4294901760, %v14766_v5  ;;  %12533 = vmatpush3.bf16.msra.mxu1 %v15087_v8 }
  0x3d   :  { %19308 = vst [vmem:[#allocation41_spill] sm:$0xff] %v15162_v34  ;;  %19311 = vst [vmem:[#allocation42_spill] sm:$0xff] %v15168_v27  ;;  %v15186_v14 = vpack.c.bf16 %v19313_v9, %v19312_v29  ;;  %v15196_v21 = vpack.c.bf16 %v19316_v0, %v19315_v11  ;;  %v15201_v9 = vand.u32 4294901760, %v15175_v56  ;;  %v19319_v29 = vand.u32 4294901760, %v15119_v41  ;;  %12725 = vmatpush3.bf16.msra.mxu0 %v15081_v2 }
  0x3e   :  { %v19321_v11 = vand.u32 4294901760, %v15145_v20  ;;  %v15224_v37 = vpack.c.bf16 %v19324_v58, %v19323_v63  ;;  %v79_v58 = vsel %vm77_vm0, %v19331_v48, %v18757_v16  ;;  %v82_v63 = vrot.slane %v15175_v56, 1  ;;  %12535 = vmatprep.subr.bf16.mxu1 %v15111_v15  ;;  %12727 = vmatprep.subr.bf16.mxu0 %v15137_v49 }
  0x3f   :  { %19314 = vst [vmem:[#allocation43_spill] sm:$0xff] %v15186_v14  ;;  %19317 = vst [vmem:[#allocation44_spill] sm:$0xff] %v15196_v21  ;;  %v15209_v22 = vpack.c.bf16 %v18749_v55, %v19319_v29  ;;  %v15228_v29 = vsub.f32 %v15175_v56, %v15201_v9  ;;  %v19327_v55 = vand.u32 4294901760, %v14756_v3  ;;  %vm64_vm3 = vcmp.lt.s32.totalorder %v14771_v7, 16 }
  0x40   :  { %19318 = vst [vmem:[#allocation45_spill] sm:$0xff] %v15201_v9  ;;  %v15215_v0 = vpack.c.bf16 %v19321_v11, %v18750_v51  ;;  %19325 = vst [vmem:[#allocation48_spill] sm:$0xff] %v15224_v37  ;;  %v19329_v51 = vand.u32 4294901760, %v14761_v4  ;;  %v83_v9 = vrot.slane %v15180_v28, 1  ;;  %12537 = vmatpush3.bf16.msra.mxu1 %v15162_v34 }
  0x41   :  { %19320 = vst [vmem:[#allocation46_spill] sm:$0xff] %v15209_v22  ;;  %19326 = vst [vmem:[#allocation49_spill] sm:$0xff] %v15228_v29  ;;  %v15233_v11 = vsub.f32 %v14756_v3, %v19327_v55  ;;  %v15251_v3 = vsub.f32 %v14766_v5, %v19332_v44  ;;  %12729 = vmatpush3.bf16.msra.mxu0 %v15137_v49  ;;  %12539 = vmatprep.subr.bf16.mxu1 %v15168_v27 }
  0x42   :  { %19322 = vst [vmem:[#allocation47_spill] sm:$0xff] %v15215_v0  ;;  %v15238_v36 = vsub.f32 %v14761_v4, %v19329_v51  ;;  %v80_v51 = vsel %vm53_vm1, %v79_v58, 0.0  ;;  %v85_v5 = vsel %vm84_vm2, %v82_v63, %v83_v9  ;;  %v19334_v4 = vand.u32 4294901760, %v14778_v10  ;;  %12731 = vmatprep.subr.bf16.mxu0 %v15186_v14 }
  0x43   :  { %19328 = vst [vmem:[#allocation50_spill] sm:$0xff] %v15233_v11  ;;  %v18772_v55 = vand.u32 4294901760, %v15233_v11  ;;  %v15261_v16 = vand.u32 4294901760, %v80_v51  ;;  %v19335_v58 = vand.u32 4294901760, %v15228_v29  ;;  %v15281_v44 = vand.u32 4294901760, %v85_v5 }
  0x44   :  { %19330 = vst [vmem:[#allocation51_spill] sm:$0xff] %v15238_v36  ;;  %v15269_v6 = vsub.f32 %v14778_v10, %v19334_v4  ;;  %v19336_v8 = vand.u32 4294901760, %v15238_v36  ;;  %v19339_v10 = vand.u32 4294901760, %v15251_v3  ;;  %12541 = vmatpush3.bf16.msra.mxu1 %v15196_v21 }
  0x45   :  { %19333 = vst [vmem:[#allocation52_spill] sm:$0xff] %v15261_v16  ;;  %v236_v48 = vsub.f32 %v15228_v29, %v19335_v58  ;;  %v380_v15 = vsub.f32 %v15233_v11, %v18772_v55  ;;  %19337 = vst [vmem:[#allocation53_spill] sm:$0xff] %v15281_v44  ;;  %v15284_v20 = vsub.f32 %v80_v51, %v15261_v16  ;;  %v19340_v58 = vand.u32 4294901760, %v14784_v12 }
  0x46   :  { %v387_v2 = vsub.f32 %v15238_v36, %v19336_v8  ;;  %v1160_v4 = vsub.f32 %v15251_v3, %v19339_v10  ;;  %v18777_v24 = vand.u32 4294901760, %v15269_v6  ;;  %v15297_v11 = vsub.f32 %v85_v5, %v15281_v44  ;;  %12733 = vmatpush3.bf16.msra.mxu0 %v15186_v14  ;;  %12543 = vmatprep.subr.bf16.mxu1 %v15209_v22 }
  0x47   :  { %19338 = vst [vmem:[#allocation54_spill] sm:$0xff] %v15284_v20  ;;  %v15293_v29 = vsub.f32 %v14784_v12, %v19340_v58  ;;  %v237_v55 = vand.u32 4294901760, %v236_v48  ;;  %v381_v8 = vand.u32 4294901760, %v380_v15  ;;  %v18778_v51 = vand.u32 4294901760, %v15284_v20  ;;  %12735 = vmatprep.subr.bf16.mxu0 %v15215_v0 }
  0x48   :  { %v388_v36 = vand.u32 4294901760, %v387_v2  ;;  %v1161_v10 = vand.u32 4294901760, %v1160_v4  ;;  %v1167_v12 = vsub.f32 %v15269_v6, %v18777_v24  ;;  %v18782_v2 = vand.u32 4294901760, %v15297_v11  ;;  %12545 = vmatpush3.bf16.msra.mxu1 %v15224_v37 }
  0x49   :  { %v18779_v58 = vand.u32 4294901760, %v15293_v29  ;;  %238 = vmatprep.mubr.f32.mxu1 %v237_v55  ;;  %v19342_v48 = vand.u32 4294901760, %v14789_v13  ;;  %v242_v4 = vsub.f32 %v15284_v20, %v18778_v51 }
  0x4a   :  { %v15307_v15 = vpack.c.bf16 %v388_v36, %v381_v8  ;;  %v1168_v24 = vand.u32 4294901760, %v1167_v12  ;;  %v86_v36 = vsel %vm84_vm2, %v83_v9, %v82_v63  ;;  %v19343_v12 = vand.u32 4294901760, %v14797_v17  ;;  %12737 = vmatpush3.bf16.msra.mxu0 %v15215_v0 }
  0x4b   :  { %v15313_v5 = vsub.f32 %v14789_v13, %v19342_v48  ;;  %v268_v55 = vsub.f32 %v15293_v29, %v18779_v58  ;;  %v1139_v13 = vsub.f32 %v15297_v11, %v18782_v2  ;;  %v88_v48 = vsel %vm64_vm3, %v86_v36, 0.0 }
  0x4c   :  { %19341 = vst [vmem:[#allocation55_spill] sm:$0xff] %v15307_v15  ;;  %v15334_v51 = vsub.f32 %v14797_v17, %v19343_v12  ;;  %v243_v9 = vand.u32 4294901760, %v242_v4  ;;  %v15338_v63 = vpack.c.bf16 %v1168_v24, %v1161_v10  ;;  %v15340_v21 = vand.u32 4294901760, %v88_v48  ;;  %12547 = vmatprep.subr.bf16.mxu1 %v15307_v15 }
  0x4d   :  { %v18785_v8 = vand.u32 4294901760, %v15313_v5  ;;  %v269_v58 = vand.u32 4294901760, %v268_v55  ;;  %v1140_v2 = vand.u32 4294901760, %v1139_v13  ;;  %v19346_v12 = vand.u32 4294901760, %v14802_v18 }
  0x4e   :  { %19344 = vst [vmem:[#allocation56_spill] sm:$0xff] %v15338_v63  ;;  %19345 = vst [vmem:[#allocation57_spill] sm:$0xff] %v15340_v21  ;;  %v15353_v24 = vsub.f32 %v88_v48, %v15340_v21  ;;  %v19348_v10 = vand.u32 4294901760, %v14807_v19  ;;  %v19349_v55 = vand.u32 4294901760, %v14820_v23  ;;  %v19351_v48 = vand.u32 4294901760, %v15334_v51  ;;  %12739 = vmatprep.subr.bf16.mxu0 %v15338_v63  ;;  %244 = vmatmul.mubr.f32.vlgmr.msra.gmra.mrb[0].mxu1 %v243_v9 }
  0x4f   :  { %v275_v36 = vsub.f32 %v15313_v5, %v18785_v8  ;;  %v15350_v7 = vsub.f32 %v14802_v18, %v19346_v12  ;;  %v19350_v8 = vand.u32 4294901760, %v14826_v25  ;;  %10656 = vmatprep.mubr.f32.mxu0 %v1140_v2 }
  0x50   :  { %19347 = vst [vmem:[#allocation58_spill] sm:$0xff] %v15353_v24  ;;  %v15358_v4 = vsub.f32 %v14807_v19, %v19348_v10  ;;  %v15363_v13 = vsub.f32 %v14820_v23, %v19349_v55  ;;  %v394_v12 = vsub.f32 %v15334_v51, %v19351_v48  ;;  %v19352_v10 = vand.u32 4294901760, %v14831_v26 }
  0x51   :  { %v15368_v17 = vsub.f32 %v14826_v25, %v19350_v8  ;;  %v276_v18 = vand.u32 4294901760, %v275_v36  ;;  %v18787_v19 = vand.u32 4294901760, %v15350_v7  ;;  %v18788_v25 = vand.u32 4294901760, %v15353_v24 }
  0x52   :  { %v15378_v23 = vsub.f32 %v14831_v26, %v19352_v10  ;;  %v395_v48 = vand.u32 4294901760, %v394_v12  ;;  %v19354_v8 = vand.u32 4294901760, %v15358_v4  ;;  %v19355_v15 = vand.u32 4294901760, %v15363_v13 }
  0x53   :  { %v15387_v55 = vpack.c.bf16 %v276_v18, %v269_v58  ;;  %v401_v26 = vsub.f32 %v15350_v7, %v18787_v19  ;;  %v1149_v2 = vsub.f32 %v15353_v24, %v18788_v25  ;;  %v19356_v18 = vand.u32 4294901760, %v15368_v17  ;;  %v19411_v24 = vld [vmem:[#allocation34_spill] sm:$0xff] }
  0x54   :  { %v18800_v10 = vand.u32 4294901760, %v15378_v23  ;;  %v1174_v36 = vsub.f32 %v15358_v4, %v19354_v8  ;;  %v1181_v58 = vsub.f32 %v15363_v13, %v19355_v15  ;;  %v19357_v25 = vand.u32 4294901760, %v14850_v31 }
  0x55   :  { %19353 = vst [vmem:[#allocation59_spill] sm:$0xff] %v15387_v55  ;;  %v282_v12 = vsub.f32 %v15368_v17, %v19356_v18  ;;  %12549 = vmatpush3.bf16.msra.mxu1 %v15387_v55  ;;  %v402_v19 = vand.u32 4294901760, %v401_v26  ;;  %v19358_v8 = vand.u32 4294901760, %v14855_v32  ;;  %v1150_v22 = vand.u32 4294901760, %v1149_v2 }
  0x56   :  { %v289_v9 = vsub.f32 %v15378_v23, %v18800_v10  ;;  %v15412_v37 = vsub.f32 %v14850_v31, %v19357_v25  ;;  %v1175_v0 = vand.u32 4294901760, %v1174_v36  ;;  %v1182_v18 = vand.u32 4294901760, %v1181_v58 }
  0x57   :  { %v15417_v15 = vsub.f32 %v14855_v32, %v19358_v8  ;;  %v283_v27 = vand.u32 4294901760, %v282_v12  ;;  %v15419_v55 = vpack.c.bf16 %v402_v19, %v395_v48  ;;  %10657 = vmatmul.mubr.f32.vlgmr.msra.gmra.mrb[0].mxu0 %v1150_v22  ;;  %v19361_v31 = vand.u32 4294901760, %v14860_v33 }
  0x58   :  { %v290_v26 = vand.u32 4294901760, %v289_v9  ;;  %v18808_v14 = vand.u32 4294901760, %v15412_v37  ;;  %v15423_v34 = vpack.c.bf16 %v1182_v18, %v1175_v0  ;;  %v19362_v32 = vand.u32 4294901760, %v14875_v38  ;;  %12741 = vmatpush3.bf16.msra.mxu0 %v15338_v63  ;;  %10691 = vmatprep.mubr.f32.mxu0 %v15281_v44 }
  0x59   :  { %19359 = vst [vmem:[#allocation60_spill] sm:$0xff] %v15419_v55  ;;  %v18805_v10 = vand.u32 4294901760, %v15417_v15  ;;  %v15428_v25 = vsub.f32 %v14860_v33, %v19361_v31  ;;  %v19363_v19 = vand.u32 4294901760, %v14880_v39  ;;  %12551 = vmatprep.subr.bf16.mxu1 %v15419_v55  ;;  %v15451_v0 = vand.u32 4294901760, %v15180_v28 }
  0x5a   :  { %19360 = vst [vmem:[#allocation61_spill] sm:$0xff] %v15423_v34  ;;  %v15433_v2 = vsub.f32 %v14875_v38, %v19362_v32  ;;  %v15442_v22 = vpack.c.bf16 %v290_v26, %v283_v27  ;;  %v408_v33 = vsub.f32 %v15412_v37, %v18808_v14  ;;  %12743 = vmatprep.subr.bf16.mxu0 %v15423_v34  ;;  %v19366_v58 = vand.u32 4294901760, %v14885_v40 }
  0x5b   :  { %v15438_v36 = vsub.f32 %v14880_v39, %v19363_v19  ;;  %v415_v38 = vsub.f32 %v15417_v15, %v18805_v10  ;;  %19365 = vst [vmem:[#allocation63_spill] sm:$0xff] %v15451_v0  ;;  %v18804_v39 = vand.u32 4294901760, %v15428_v25  ;;  %v19367_v18 = vand.u32 4294901760, %v14901_v45 }
  0x5c   :  { %19364 = vst [vmem:[#allocation62_spill] sm:$0xff] %v15442_v22  ;;  %v18803_v48 = vand.u32 4294901760, %v15433_v2  ;;  %v15460_v12 = vsub.f32 %v14885_v40, %v19366_v58  ;;  %12553 = vmatpush3.bf16.msra.mxu1 %v15442_v22  ;;  %v409_v9 = vand.u32 4294901760, %v408_v33  ;;  %v19368_v31 = vand.u32 4294901760, %v14906_v46  ;;  %12745 = vmatpush3.bf16.msra.mxu0 %v15423_v34 }
  0x5d   :  { %v18806_v27 = vand.u32 4294901760, %v15438_v36  ;;  %v416_v8 = vand.u32 4294901760, %v415_v38  ;;  %v15467_v26 = vsub.f32 %v14901_v45, %v19367_v18  ;;  %v1188_v40 = vsub.f32 %v15428_v25, %v18804_v39 }
  0x5e   :  { %v15472_v32 = vsub.f32 %v14906_v46, %v19368_v31  ;;  %v1195_v19 = vsub.f32 %v15433_v2, %v18803_v48  ;;  %v18807_v45 = vand.u32 4294901760, %v15460_v12  ;;  %v19370_v18 = vand.u32 4294901760, %v14911_v47 }
  0x5f   :  { %v296_v33 = vsub.f32 %v15438_v36, %v18806_v27  ;;  %v15485_v38 = vpack.c.bf16 %v416_v8, %v409_v9  ;;  %v18809_v46 = vand.u32 4294901760, %v15467_v26  ;;  %v1189_v48 = vand.u32 4294901760, %v1188_v40 }
  0x60   :  { %v18811_v58 = vand.u32 4294901760, %v15472_v32  ;;  %v15492_v31 = vsub.f32 %v14911_v47, %v19370_v18  ;;  %v1196_v39 = vand.u32 4294901760, %v1195_v19  ;;  %v303_v27 = vsub.f32 %v15460_v12, %v18807_v45 }
  0x61   :  { %19369 = vst [vmem:[#allocation64_spill] sm:$0xff] %v15485_v38  ;;  %v297_v10 = vand.u32 4294901760, %v296_v33  ;;  %12555 = vmatprep.subr.bf16.mxu1 %v15485_v38  ;;  %v422_v9 = vsub.f32 %v15467_v26, %v18809_v46  ;;  %v19371_v40 = vand.u32 4294901760, %v14932_v52  ;;  %v19373_v45 = vand.u32 4294901760, %v14937_v53 }
  0x62   :  { %v429_v8 = vsub.f32 %v15472_v32, %v18811_v58  ;;  %v15510_v33 = vpack.c.bf16 %v1196_v39, %v1189_v48  ;;  %v304_v18 = vand.u32 4294901760, %v303_v27  ;;  %v19374_v46 = vand.u32 4294901760, %v14942_v54 }
  0x63   :  { %v15508_v19 = vsub.f32 %v14932_v52, %v19371_v40  ;;  %v15515_v14 = vsub.f32 %v14937_v53, %v19373_v45  ;;  %v423_v58 = vand.u32 4294901760, %v422_v9  ;;  %v19375_v22 = vand.u32 4294901760, %v15492_v31 }
  0x64   :  { %19372 = vst [vmem:[#allocation65_spill] sm:$0xff] %v15510_v33  ;;  %v15520_v38 = vsub.f32 %v14942_v54, %v19374_v46  ;;  %v430_v47 = vand.u32 4294901760, %v429_v8  ;;  %12747 = vmatprep.subr.bf16.mxu0 %v15510_v33  ;;  %v15527_v48 = vpack.c.bf16 %v304_v18, %v297_v10  ;;  %v19377_v45 = vand.u32 4294901760, %v14957_v59 }
  0x65   :  { %v1202_v52 = vsub.f32 %v15492_v31, %v19375_v22  ;;  %v18815_v39 = vand.u32 4294901760, %v15508_v19  ;;  %v18813_v53 = vand.u32 4294901760, %v15515_v14  ;;  %12749 = vmatpush3.bf16.msra.mxu0 %v15510_v33  ;;  %v19379_v10 = vand.u32 4294901760, %v14962_v60 }
  0x66   :  { %19376 = vst [vmem:[#allocation66_spill] sm:$0xff] %v15527_v48  ;;  %v18814_v27 = vand.u32 4294901760, %v15520_v38  ;;  %v15534_v54 = vsub.f32 %v14957_v59, %v19377_v45  ;;  %v15537_v46 = vpack.c.bf16 %v430_v47, %v423_v58  ;;  %12557 = vmatpush3.bf16.msra.mxu1 %v15527_v48  ;;  %v19380_v40 = vand.u32 4294901760, %v14967_v61 }
  0x67   :  { %v1203_v22 = vand.u32 4294901760, %v1202_v52  ;;  %v1209_v9 = vsub.f32 %v15508_v19, %v18815_v39  ;;  %v15545_v8 = vsub.f32 %v14962_v60, %v19379_v10  ;;  %v310_v59 = vsub.f32 %v15515_v14, %v18813_v53 }
  0x68   :  { %19378 = vst [vmem:[#allocation67_spill] sm:$0xff] %v15537_v46  ;;  %v317_v58 = vsub.f32 %v15520_v38, %v18814_v27  ;;  %v15558_v18 = vsub.f32 %v14967_v61, %v19380_v40  ;;  %12559 = vmatprep.subr.bf16.mxu1 %v15537_v46  ;;  %v19381_v45 = vand.u32 4294901760, %v14981_v43  ;;  %v19382_v53 = vand.u32 4294901760, %v14986_v42 }
  0x69   :  { %v1210_v60 = vand.u32 4294901760, %v1209_v9  ;;  %v18820_v52 = vand.u32 4294901760, %v15545_v8  ;;  %v311_v39 = vand.u32 4294901760, %v310_v59  ;;  %v19383_v61 = vand.u32 4294901760, %v15534_v54 }
  0x6a   :  { %v15565_v10 = vsub.f32 %v14981_v43, %v19381_v45  ;;  %v15570_v27 = vsub.f32 %v14986_v42, %v19382_v53  ;;  %v318_v47 = vand.u32 4294901760, %v317_v58  ;;  %v18818_v9 = vand.u32 4294901760, %v15558_v18 }
  0x6b   :  { %v436_v40 = vsub.f32 %v15534_v54, %v19383_v61  ;;  %v15576_v46 = vpack.c.bf16 %v1210_v60, %v1203_v22  ;;  %v443_v43 = vsub.f32 %v15545_v8, %v18820_v52  ;;  %v19386_v58 = vand.u32 4294901760, %v14991_v50  ;;  %v19390_v52 = vld [vmem:[#allocation23_spill] sm:$0xff] }
  0x6c   :  { %v18819_v45 = vand.u32 4294901760, %v15565_v10  ;;  %v18823_v48 = vand.u32 4294901760, %v15570_v27  ;;  %v15583_v42 = vpack.c.bf16 %v318_v47, %v311_v39  ;;  %v1216_v59 = vsub.f32 %v15558_v18, %v18818_v9 }
  0x6d   :  { %19384 = vst [vmem:[#allocation68_spill] sm:$0xff] %v15576_v46  ;;  %v437_v53 = vand.u32 4294901760, %v436_v40  ;;  %v15591_v22 = vsub.f32 %v14991_v50, %v19386_v58  ;;  %12751 = vmatprep.subr.bf16.mxu0 %v15576_v46  ;;  %v444_v60 = vand.u32 4294901760, %v443_v43  ;;  %v19387_v47 = vand.u32 4294901760, %v15011_v30  ;;  %v19388_v58 = vld [vmem:[#allocation22_spill] sm:$0xff] }
  0x6e   :  { %19385 = vst [vmem:[#allocation69_spill] sm:$0xff] %v15583_v42  ;;  %v1223_v61 = vsub.f32 %v15565_v10, %v18819_v45  ;;  %v324_v39 = vsub.f32 %v15570_v27, %v18823_v48  ;;  %12561 = vmatpush3.bf16.msra.mxu1 %v15583_v42  ;;  %12753 = vmatpush3.bf16.msra.mxu0 %v15576_v46  ;;  %v1217_v50 = vand.u32 4294901760, %v1216_v59  ;;  %v19389_v9 = vand.u32 4294901760, %v19388_v58 }
  0x6f   :  { %v15603_v40 = vsub.f32 %v15011_v30, %v19387_v47  ;;  %v18832_v43 = vand.u32 4294901760, %v15591_v22  ;;  %v19391_v33 = vand.u32 4294901760, %v19390_v52  ;;  %v15618_v34 = vpack.c.bf16 %v444_v60, %v437_v53  ;;  %v19396_v53 = vld [vmem:[#allocation26_spill] sm:$0xff] }
  0x70   :  { %v15611_v45 = vsub.f32 %v19388_v58, %v19389_v9  ;;  %v1224_v30 = vand.u32 4294901760, %v1223_v61  ;;  %v325_v47 = vand.u32 4294901760, %v324_v39  ;;  %v19393_v58 = vld [vmem:[#allocation25_spill] sm:$0xff]  ;;  %v19397_v60 = vand.u32 4294901760, %v19396_v53  ;;  %v19399_v39 = vld [vmem:[#allocation27_spill] sm:$0xff] }
  0x71   :  { %v15616_v48 = vsub.f32 %v19390_v52, %v19391_v33  ;;  %19392 = vst [vmem:[#allocation22_spill] sm:$0xff] %v15618_v34  ;;  %v18833_v42 = vand.u32 4294901760, %v15603_v40  ;;  %v331_v59 = vsub.f32 %v15591_v22, %v18832_v43  ;;  %v19394_v55 = vand.u32 4294901760, %v19393_v58  ;;  %12563 = vmatprep.subr.bf16.mxu1 %v15618_v34 }
  0x72   :  { %v18837_v46 = vand.u32 4294901760, %v15611_v45  ;;  %v15632_v33 = vpack.c.bf16 %v1224_v30, %v1217_v50  ;;  %v15640_v61 = vsub.f32 %v19396_v53, %v19397_v60  ;;  %v19400_v43 = vand.u32 4294901760, %v19399_v39 }
  0x73   :  { %v15629_v63 = vsub.f32 %v19393_v58, %v19394_v55  ;;  %v450_v52 = vsub.f32 %v15603_v40, %v18833_v42  ;;  %v332_v55 = vand.u32 4294901760, %v331_v59  ;;  %v19402_v30 = vand.u32 4294901760, %v15616_v48 }
  0x74   :  { %19395 = vst [vmem:[#allocation23_spill] sm:$0xff] %v15632_v33  ;;  %19398 = vst [vmem:[#allocation25_spill] sm:$0xff] %v15640_v61  ;;  %v15645_v9 = vsub.f32 %v19399_v39, %v19400_v43  ;;  %v457_v50 = vsub.f32 %v15611_v45, %v18837_v46  ;;  %12755 = vmatprep.subr.bf16.mxu0 %v15632_v33  ;;  %v18845_v60 = vand.u32 4294901760, %v15640_v61  ;;  %v19403_v43 = vld [vmem:[#allocation29_spill] sm:$0xff] }
  0x75   :  { %v1230_v58 = vsub.f32 %v15616_v48, %v19402_v30  ;;  %v18842_v42 = vand.u32 4294901760, %v15629_v63  ;;  %v451_v53 = vand.u32 4294901760, %v450_v52  ;;  %v19404_v39 = vand.u32 4294901760, %v19403_v43  ;;  %12757 = vmatpush3.bf16.msra.mxu0 %v15632_v33 }
  0x76   :  { %19401 = vst [vmem:[#allocation26_spill] sm:$0xff] %v15645_v9  ;;  %v18850_v34 = vand.u32 4294901760, %v15645_v9  ;;  %v15662_v44 = vpack.c.bf16 %v332_v55, %v325_v47  ;;  %v458_v46 = vand.u32 4294901760, %v457_v50  ;;  %v338_v52 = vsub.f32 %v15640_v61, %v18845_v60  ;;  %v19406_v47 = vld [vmem:[#allocation30_spill] sm:$0xff] }
  0x77   :  { %v15660_v59 = vsub.f32 %v19403_v43, %v19404_v39  ;;  %v1231_v30 = vand.u32 4294901760, %v1230_v58  ;;  %v1237_v49 = vsub.f32 %v15629_v63, %v18842_v42  ;;  %v19407_v55 = vand.u32 4294901760, %v19406_v47  ;;  %v19409_v42 = vld [vmem:[#allocation31_spill] sm:$0xff] }
  0x78   :  { %19405 = vst [vmem:[#allocation27_spill] sm:$0xff] %v15662_v44  ;;  %v345_v20 = vsub.f32 %v15645_v9, %v18850_v34  ;;  %12565 = vmatpush3.bf16.msra.mxu1 %v15662_v44  ;;  %v15681_v50 = vpack.c.bf16 %v458_v46, %v451_v53  ;;  %v19410_v33 = vand.u32 4294901760, %v19409_v42  ;;  %v19412_v61 = vand.u32 4294901760, %v19411_v24 }
  0x79   :  { %v15678_v39 = vsub.f32 %v19406_v47, %v19407_v55  ;;  %v1238_v58 = vand.u32 4294901760, %v1237_v49  ;;  %v339_v43 = vand.u32 4294901760, %v338_v52  ;;  %v19413_v47 = vand.u32 4294901760, %v15660_v59 }
  0x7a   :  { %19408 = vst [vmem:[#allocation29_spill] sm:$0xff] %v15681_v50  ;;  %v15686_v60 = vsub.f32 %v19409_v42, %v19410_v33  ;;  %v15691_v34 = vsub.f32 %v19411_v24, %v19412_v61  ;;  %v346_v9 = vand.u32 4294901760, %v345_v20  ;;  %12567 = vmatprep.subr.bf16.mxu1 %v15681_v50  ;;  %v19415_v53 = vand.u32 4294901760, %v15099_v57 }
  0x7b   :  { %v464_v55 = vsub.f32 %v15660_v59, %v19413_v47  ;;  %v18855_v46 = vand.u32 4294901760, %v15678_v39  ;;  %v15698_v49 = vpack.c.bf16 %v1238_v58, %v1231_v30  ;;  %v19417_v47 = vand.u32 4294901760, %v15104_v35 }
  0x7c   :  { %v18854_v42 = vand.u32 4294901760, %v15686_v60  ;;  %v18853_v33 = vand.u32 4294901760, %v15691_v34  ;;  %v15705_v24 = vsub.f32 %v15099_v57, %v19415_v53  ;;  %v15707_v20 = vpack.c.bf16 %v346_v9, %v339_v43 }
  0x7d   :  { %19414 = vst [vmem:[#allocation30_spill] sm:$0xff] %v15698_v49  ;;  %v465_v61 = vand.u32 4294901760, %v464_v55  ;;  %v471_v52 = vsub.f32 %v15678_v39, %v18855_v46  ;;  %v15715_v30 = vsub.f32 %v15104_v35, %v19417_v47  ;;  %12759 = vmatprep.subr.bf16.mxu0 %v15698_v49  ;;  %v15727_v43 = vsub.f32 %v15180_v28, %v15451_v0 }
  0x7e   :  { %19416 = vst [vmem:[#allocation31_spill] sm:$0xff] %v15707_v20  ;;  %v1244_v58 = vsub.f32 %v15686_v60, %v18854_v42  ;;  %v1251_v57 = vsub.f32 %v15691_v34, %v18853_v33  ;;  %12569 = vmatpush3.bf16.msra.mxu1 %v15707_v20  ;;  %12761 = vmatpush3.bf16.msra.mxu0 %v15698_v49  ;;  %v19419_v53 = vrot.slane %v15180_v28, 7  ;;  %v19420_v47 = vrot.slane %v15175_v56, 7 }
  0x7f   :  { %19418 = vst [vmem:[#allocation34_spill] sm:$0xff] %v15727_v43  ;;  %v472_v35 = vand.u32 4294901760, %v471_v52  ;;  %v19421_v42 = vand.u32 4294901760, %v15119_v41  ;;  %v19423_v20 = vand.u32 4294901760, %v15705_v24  ;;  %v18860_v55 = vand.u32 4294901760, %v15727_v43 }
  0x80   :  { %v78_v33 = vsel %vm77_vm0, %v19420_v47, %v19419_v53  ;;  %v1245_v9 = vand.u32 4294901760, %v1244_v58  ;;  %v1252_v50 = vand.u32 4294901760, %v1251_v57  ;;  %v19425_v56 = vand.u32 4294901760, %v15715_v30 }
  0x81   :  { %v15741_v46 = vsub.f32 %v15119_v41, %v19421_v42  ;;  %v352_v52 = vsub.f32 %v15705_v24, %v19423_v20  ;;  %v15747_v49 = vpack.c.bf16 %v472_v35, %v465_v61  ;;  %v15752_v53 = vand.u32 4294901760, %v78_v33 }
  0x82   :  { %v359_v28 = vsub.f32 %v15715_v30, %v19425_v56  ;;  %v15755_v41 = vpack.c.bf16 %v1252_v50, %v1245_v9  ;;  %v251_v58 = vsub.f32 %v15727_v43, %v18860_v55  ;;  %v19427_v20 = vand.u32 4294901760, %v15124_v62  ;;  %v19430_v9 = vld [vmem:[#allocation36_spill] sm:$0xff] }
  0x83   :  { %19422 = vst [vmem:[#allocation70_spill] sm:$0xff] %v15741_v46  ;;  %19424 = vst [vmem:[#allocation71_spill] sm:$0xff] %v15747_v49  ;;  %v18865_v47 = vand.u32 4294901760, %v15741_v46  ;;  %v353_v42 = vand.u32 4294901760, %v352_v52  ;;  %12571 = vmatprep.subr.bf16.mxu1 %v15747_v49  ;;  %v15767_v35 = vsub.f32 %v78_v33, %v15752_v53  ;;  %v19431_v52 = vand.u32 4294901760, %v19430_v9  ;;  %v19434_v33 = vld [vmem:[#allocation39_spill] sm:$0xff] }
  0x84   :  { %19426 = vst [vmem:[#allocation72_spill] sm:$0xff] %v15755_v41  ;;  %v15763_v61 = vsub.f32 %v15124_v62, %v19427_v20  ;;  %v360_v57 = vand.u32 4294901760, %v359_v28  ;;  %12763 = vmatprep.subr.bf16.mxu0 %v15755_v41  ;;  %v252_v55 = vand.u32 4294901760, %v251_v58  ;;  %v19432_v20 = vld [vmem:[#allocation38_spill] sm:$0xff]  ;;  %v19435_v44 = vand.u32 4294901760, %v19434_v33 }
  0x85   :  { %19429 = vst [vmem:[#allocation74_spill] sm:$0xff] %v15767_v35  ;;  %v478_v50 = vsub.f32 %v15741_v46, %v18865_v47  ;;  %v15775_v56 = vsub.f32 %v19430_v9, %v19431_v52  ;;  %v19433_v49 = vand.u32 4294901760, %v19432_v20  ;;  %12765 = vmatpush3.bf16.msra.mxu0 %v15755_v41  ;;  %v18874_v9 = vand.u32 4294901760, %v15767_v35 }
  0x86   :  { %19428 = vst [vmem:[#allocation73_spill] sm:$0xff] %v15763_v61  ;;  %v18868_v62 = vand.u32 4294901760, %v15763_v61  ;;  %v15787_v1 = vsub.f32 %v19434_v33, %v19435_v44  ;;  %v15789_v47 = vpack.c.bf16 %v360_v57, %v353_v42  ;;  %253 = vmatprep.mubr.f32.mxu1 %v252_v55  ;;  %v19437_v44 = vld [vmem:[#allocation40_spill] sm:$0xff] }
  0x87   :  { %v15782_v28 = vsub.f32 %v19432_v20, %v19433_v49  ;;  %v479_v52 = vand.u32 4294901760, %v478_v50  ;;  %v18880_v58 = vand.u32 4294901760, %v15775_v56  ;;  %v19438_v33 = vand.u32 4294901760, %v19437_v44 }
  0x88   :  { %19436 = vst [vmem:[#allocation36_spill] sm:$0xff] %v15789_v47  ;;  %v485_v49 = vsub.f32 %v15763_v61, %v18868_v62  ;;  %v18881_v43 = vand.u32 4294901760, %v15787_v1  ;;  %12573 = vmatpush3.bf16.msra.mxu1 %v15789_v47  ;;  %v257_v57 = vsub.f32 %v15767_v35, %v18874_v9 }
  0x89   :  { %v18879_v20 = vand.u32 4294901760, %v15782_v28  ;;  %v15802_v42 = vsub.f32 %v19437_v44, %v19438_v33  ;;  %v1258_v55 = vsub.f32 %v15775_v56, %v18880_v58  ;;  %v19441_v58 = vld [vmem:[#allocation45_spill] sm:$0xff] }
  0x8a   :  { %v486_v50 = vand.u32 4294901760, %v485_v49  ;;  %v366_v44 = vsub.f32 %v15787_v1, %v18881_v43  ;;  %v258_v47 = vand.u32 4294901760, %v257_v57  ;;  %v15827_v43 = vpack.c.bf16 %v15269_v6, %v15251_v3  ;;  %v19443_v57 = vld [vmem:[#allocation50_spill] sm:$0xff] }
  0x8b   :  { %v1265_v62 = vsub.f32 %v15782_v28, %v18879_v20  ;;  %v372_v33 = vand.u32 4294901760, %v15802_v42  ;;  %v1259_v41 = vand.u32 4294901760, %v1258_v55  ;;  %v19444_v55 = vld [vmem:[#allocation51_spill] sm:$0xff] }
  0x8c   :  { %v15818_v61 = vpack.c.bf16 %v486_v50, %v479_v52  ;;  %v367_v35 = vand.u32 4294901760, %v366_v44  ;;  %259 = vmatmul.mubr.f32.gmra.mrb[2].mxu1 %v258_v47  ;;  %19442 = vst [vmem:[#allocation40_spill] sm:$0xff] %v15827_v43  ;;  %v15831_v52 = vpack.c.bf16 %v19444_v55, %v19443_v57  ;;  %v15839_v47 = vpack.c.bf16 %v15313_v5, %v15293_v29 }
  0x8d   :  { %v1266_v9 = vand.u32 4294901760, %v1265_v62  ;;  %v373_v46 = vsub.f32 %v15802_v42, %v372_v33  ;;  %489 = vmatprep.mubr.f32.mxu1 %v19441_v58  ;;  %v19453_v50 = vand.u32 4294901760, %v15293_v29  ;;  %v19454_v44 = vand.u32 4294901760, %v15313_v5 }
  0x8e   :  { %19439 = vst [vmem:[#allocation38_spill] sm:$0xff] %v15818_v61  ;;  %12575 = vmatprep.subr.bf16.mxu1 %v15818_v61  ;;  %19445 = vst [vmem:[#allocation75_spill] sm:$0xff] %v15831_v52  ;;  %v19456_v61 = vand.u32 4294901760, %v15334_v51  ;;  %v19460_v55 = vand.u32 4294901760, %v15363_v13  ;;  %v19462_v29 = vand.u32 4294901760, %v15368_v17  ;;  %v19463_v5 = vand.u32 4294901760, %v15378_v23 }
  0x8f   :  { %v15822_v49 = vpack.c.bf16 %v1266_v9, %v1259_v41  ;;  %v374_v20 = vand.u32 4294901760, %v373_v46  ;;  %19447 = vst [vmem:[#allocation77_spill] sm:$0xff] %v15839_v47  ;;  %v15845_v46 = vpack.c.bf16 %v15350_v7, %v15334_v51  ;;  %v15849_v41 = vpack.c.bf16 %v15363_v13, %v15358_v4 }
  0x90   :  { %v15858_v9 = vpack.c.bf16 %v15417_v15, %v15412_v37  ;;  %v19465_v51 = vand.u32 4294901760, %v15412_v37  ;;  %v19472_v13 = vand.u32 4294901760, %v15460_v12  ;;  %v19474_v37 = vand.u32 4294901760, %v15467_v26 }
  0x91   :  { %19440 = vst [vmem:[#allocation39_spill] sm:$0xff] %v15822_v49  ;;  %12767 = vmatprep.subr.bf16.mxu0 %v15822_v49  ;;  %v15834_v62 = vpack.c.bf16 %v374_v20, %v367_v35  ;;  %19448 = vst [vmem:[#allocation78_spill] sm:$0xff] %v15845_v46  ;;  %v15853_v35 = vpack.c.bf16 %v15378_v23, %v15368_v17  ;;  %v15862_v20 = vpack.c.bf16 %v15433_v2, %v15428_v25 }
  0x92   :  { %12769 = vmatpush3.bf16.msra.mxu0 %v15822_v49  ;;  %19449 = vst [vmem:[#allocation79_spill] sm:$0xff] %v15849_v41  ;;  %19451 = vst [vmem:[#allocation81_spill] sm:$0xff] %v15858_v9  ;;  %v19457_v49 = vand.u32 4294901760, %v15350_v7  ;;  %v19466_v7 = vand.u32 4294901760, %v15417_v15  ;;  %v19471_v17 = vand.u32 4294901760, %v15438_v36  ;;  %v19475_v15 = vand.u32 4294901760, %v15472_v32 }
  0x93   :  { %19446 = vst [vmem:[#allocation76_spill] sm:$0xff] %v15834_v62  ;;  %12577 = vmatpush3.bf16.msra.mxu1 %v15834_v62  ;;  %12771 = vmatprep.subr.bf16.mxu0 %v15827_v43  ;;  %19450 = vst [vmem:[#allocation80_spill] sm:$0xff] %v15853_v35  ;;  %v15868_v62 = vpack.c.bf16 %v19454_v44, %v19453_v50  ;;  %v15887_v50 = vpack.c.bf16 %v19463_v5, %v19462_v29  ;;  %v19480_v29 = vand.u32 4294901760, %v15515_v14 }
  0x94   :  { %12579 = vmatprep.subr.bf16.mxu1 %v15831_v52  ;;  %19452 = vst [vmem:[#allocation82_spill] sm:$0xff] %v15862_v20  ;;  %v15874_v58 = vpack.c.bf16 %v19457_v49, %v19456_v61  ;;  %v19459_v52 = vand.u32 4294901760, %v15358_v4  ;;  %v15893_v61 = vpack.c.bf16 %v19466_v7, %v19465_v51  ;;  %v19468_v49 = vand.u32 4294901760, %v15428_v25 }
  0x95   :  { %19455 = vst [vmem:[#allocation83_spill] sm:$0xff] %v15868_v62  ;;  %10692 = vmatmul.mubr.f32.vlgmr.msra.gmra.mrb[0].mxu0 %v15340_v21  ;;  %19464 = vst [vmem:[#allocation86_spill] sm:$0xff] %v15887_v50  ;;  %v19469_v4 = vand.u32 4294901760, %v15433_v2  ;;  %v15907_v23 = vpack.c.bf16 %v19472_v13, %v19471_v17  ;;  %v19477_v25 = vand.u32 4294901760, %v15492_v31  ;;  %v19478_v2 = vand.u32 4294901760, %v15508_v19 }
  0x96   :  { %19458 = vst [vmem:[#allocation84_spill] sm:$0xff] %v15874_v58  ;;  %v15881_v57 = vpack.c.bf16 %v19460_v55, %v19459_v52  ;;  %19467 = vst [vmem:[#allocation87_spill] sm:$0xff] %v15893_v61  ;;  %491 = vmatmul.mubr.f32.vlgmr.msra.gmra.mrb[4].mxu1 %v15261_v16  ;;  %12773 = vmatpush3.bf16.msra.mxu0 %v15827_v43  ;;  %v15913_v55 = vpack.c.bf16 %v19475_v15, %v19474_v37  ;;  %v19481_v5 = vand.u32 4294901760, %v15520_v38  ;;  %v19500_v43 = vld [vmem:[#allocation26_spill] sm:$0xff] }
  0x97   :  { %v15899_v44 = vpack.c.bf16 %v19469_v4, %v19468_v49  ;;  %19473 = vst [vmem:[#allocation89_spill] sm:$0xff] %v15907_v23  ;;  %v15919_v52 = vpack.c.bf16 %v19478_v2, %v19477_v25  ;;  %12581 = vmatpush3.bf16.msra.mxu1 %v15839_v47  ;;  %496 = vmatprep.mubr.f32.mxu1 %v15451_v0  ;;  %v19483_v7 = vand.u32 4294901760, %v15534_v54  ;;  %v19484_v49 = vand.u32 4294901760, %v15545_v8 }
  0x98   :  { %19461 = vst [vmem:[#allocation85_spill] sm:$0xff] %v15881_v57  ;;  %19476 = vst [vmem:[#allocation90_spill] sm:$0xff] %v15913_v55  ;;  %v15927_v51 = vpack.c.bf16 %v19481_v5, %v19480_v29  ;;  %v19486_v17 = vand.u32 4294901760, %v15558_v18  ;;  %v19487_v13 = vand.u32 4294901760, %v15565_v10  ;;  %12583 = vmatprep.subr.bf16.mxu1 %v15845_v46  ;;  %12775 = vmatprep.subr.bf16.mxu0 %v15849_v41  ;;  %v19489_v15 = vand.u32 4294901760, %v15570_v27  ;;  %v19498_v46 = vld [vmem:[#allocation25_spill] sm:$0xff] }
  0x99   :  { %19470 = vst [vmem:[#allocation88_spill] sm:$0xff] %v15899_v44  ;;  %19479 = vst [vmem:[#allocation91_spill] sm:$0xff] %v15919_v52  ;;  %v15933_v4 = vpack.c.bf16 %v19484_v49, %v19483_v7  ;;  %v19490_v25 = vand.u32 4294901760, %v15591_v22  ;;  %v19492_v29 = vand.u32 4294901760, %v15603_v40  ;;  %v19493_v5 = vand.u32 4294901760, %v15611_v45  ;;  %10726 = vmatprep.mubr.f32.mxu0 %v15297_v11 }
  0x9a   :  { %19482 = vst [vmem:[#allocation92_spill] sm:$0xff] %v15927_v51  ;;  %v15939_v37 = vpack.c.bf16 %v19487_v13, %v19486_v17  ;;  %v19495_v49 = vand.u32 4294901760, %v15616_v48  ;;  %v19496_v17 = vand.u32 4294901760, %v15629_v63  ;;  %v19499_v47 = vand.u32 4294901760, %v19498_v46  ;;  %498 = vmatmul.mubr.f32.gmra.mrb[6].mxu1 %v15752_v53  ;;  %12777 = vmatpush3.bf16.msra.mxu0 %v15849_v41 }
  0x9b   :  { %19485 = vst [vmem:[#allocation93_spill] sm:$0xff] %v15933_v4  ;;  %v15947_v2 = vpack.c.bf16 %v19490_v25, %v19489_v15  ;;  %v15953_v7 = vpack.c.bf16 %v19493_v5, %v19492_v29  ;;  %v19501_v0 = vand.u32 4294901760, %v19500_v43  ;;  %v19503_v25 = vand.u32 4294901760, %v15660_v59  ;;  %12585 = vmatpush3.bf16.msra.mxu1 %v15853_v35  ;;  %12779 = vmatprep.subr.bf16.mxu0 %v15862_v20 }
  0x9c   :  { %19488 = vst [vmem:[#allocation94_spill] sm:$0xff] %v15939_v37  ;;  %v15959_v13 = vpack.c.bf16 %v19496_v17, %v19495_v49  ;;  %v19504_v16 = vand.u32 4294901760, %v15678_v39  ;;  %v19506_v5 = vand.u32 4294901760, %v15686_v60  ;;  %v19507_v21 = vand.u32 4294901760, %v15691_v34  ;;  %12587 = vmatprep.subr.bf16.mxu1 %v15858_v9 }
  0x9d   :  { %19491 = vst [vmem:[#allocation95_spill] sm:$0xff] %v15947_v2  ;;  %19494 = vst [vmem:[#allocation96_spill] sm:$0xff] %v15953_v7  ;;  %v15966_v15 = vpack.c.bf16 %v19501_v0, %v19499_v47  ;;  %v19509_v17 = vand.u32 4294901760, %v15705_v24  ;;  %v19510_v7 = vand.u32 4294901760, %v15715_v30  ;;  %v19512_v0 = vld [vmem:[#allocation70_spill] sm:$0xff] }
  0x9e   :  { %19497 = vst [vmem:[#allocation97_spill] sm:$0xff] %v15959_v13  ;;  %v15972_v29 = vpack.c.bf16 %v19504_v16, %v19503_v25  ;;  %v15978_v49 = vpack.c.bf16 %v19507_v21, %v19506_v5  ;;  %v19513_v47 = vand.u32 4294901760, %v19512_v0  ;;  %v19514_v16 = vld [vmem:[#allocation73_spill] sm:$0xff]  ;;  %v19518_v21 = vand.u32 4294901760, %v15782_v28  ;;  %12781 = vmatpush3.bf16.msra.mxu0 %v15862_v20 }
  0x9f   :  { %19502 = vst [vmem:[#allocation25_spill] sm:$0xff] %v15966_v15  ;;  %v15984_v13 = vpack.c.bf16 %v19510_v7, %v19509_v17  ;;  %v19515_v25 = vand.u32 4294901760, %v19514_v16  ;;  %v19517_v15 = vand.u32 4294901760, %v15775_v56  ;;  %v16008_v17 = vpack.c.bf16 %v15460_v12, %v15438_v36 }
  0xa0   :  { %19505 = vst [vmem:[#allocation26_spill] sm:$0xff] %v15972_v29  ;;  %19508 = vst [vmem:[#allocation98_spill] sm:$0xff] %v15978_v49  ;;  %v19520_v49 = vand.u32 4294901760, %v15787_v1  ;;  %v16025_v36 = vpack.c.bf16 %v15520_v38, %v15515_v14  ;;  %v16029_v12 = vpack.c.bf16 %v15565_v10, %v15558_v18  ;;  %v16041_v14 = vpack.c.bf16 %v15591_v22, %v15570_v27  ;;  %v19540_v18 = vld [vmem:[#allocation11_spill] sm:$0xff]  ;;  %v19541_v10 = vld [vmem:[#allocation58_spill] sm:$0xff] }
  0xa1   :  { %19511 = vst [vmem:[#allocation99_spill] sm:$0xff] %v15984_v13  ;;  %v15992_v29 = vpack.c.bf16 %v19515_v25, %v19513_v47  ;;  %v15998_v5 = vpack.c.bf16 %v19518_v21, %v19517_v15  ;;  %19522 = vst [vmem:[#allocation101_spill] sm:$0xff] %v16008_v17  ;;  %v16012_v47 = vpack.c.bf16 %v15508_v19, %v15492_v31  ;;  %12589 = vmatpush3.bf16.msra.mxu1 %v16008_v17  ;;  %v19543_v22 = vld [vmem:[#allocation13_spill] sm:$0xff]  ;;  %v19561_v21 = vld [vmem:[#allocation35_spill] sm:$0xff] }
  0xa2   :  { %v16002_v7 = vpack.c.bf16 %v372_v33, %v19520_v49  ;;  %v16017_v15 = vpack.c.bf16 %v15472_v32, %v15467_v26  ;;  %v19525_v33 = vld [vmem:[#allocation49_spill] sm:$0xff]  ;;  %19527 = vst [vmem:[#allocation104_spill] sm:$0xff] %v16029_v12  ;;  %v16034_v26 = vpack.c.bf16 %v15545_v8, %v15534_v54  ;;  %19529 = vst [vmem:[#allocation106_spill] sm:$0xff] %v16041_v14  ;;  %v19539_v8 = vld [vmem:[#allocation12_spill] sm:$0xff] }
  0xa3   :  { %19516 = vst [vmem:[#allocation70_spill] sm:$0xff] %v15992_v29  ;;  %19519 = vst [vmem:[#allocation73_spill] sm:$0xff] %v15998_v5  ;;  %633 = vmatprep.mubr.f32.mxu1 %v19525_v33  ;;  %12783 = vmatprep.subr.bf16.mxu0 %v16012_v47  ;;  %v16045_v32 = vpack.c.bf16 %v15629_v63, %v15616_v48  ;;  %v16050_v38 = vpack.c.bf16 %v15611_v45, %v15603_v40  ;;  %v19542_v45 = vld [vmem:[#allocation54_spill] sm:$0xff]  ;;  %v19557_v49 = vld [vmem:[#allocation32_spill] sm:$0xff] }
  0xa4   :  { %19521 = vst [vmem:[#allocation100_spill] sm:$0xff] %v16002_v7  ;;  %19523 = vst [vmem:[#allocation102_spill] sm:$0xff] %v16012_v47  ;;  %12591 = vmatprep.subr.bf16.mxu1 %v16017_v15  ;;  %12785 = vmatpush3.bf16.msra.mxu0 %v16012_v47  ;;  %v16057_v31 = vpack.c.bf16 %v19500_v43, %v19498_v46  ;;  %v16061_v63 = vpack.c.bf16 %v15691_v34, %v15686_v60  ;;  %v19545_v40 = vld [vmem:[#allocation14_spill] sm:$0xff]  ;;  %v19546_v60 = vld [vmem:[#allocation15_spill] sm:$0xff] }
  0xa5   :  { %19524 = vst [vmem:[#allocation103_spill] sm:$0xff] %v16017_v15  ;;  %19526 = vst [vmem:[#allocation49_spill] sm:$0xff] %v16025_v36  ;;  %12593 = vmatpush3.bf16.msra.mxu1 %v16025_v36  ;;  %12787 = vmatprep.subr.bf16.mxu0 %v16029_v12  ;;  %v16066_v19 = vpack.c.bf16 %v15678_v39, %v15660_v59  ;;  %v16073_v48 = vpack.c.bf16 %v15715_v30, %v15705_v24  ;;  %v19547_v59 = vand.u32 4294901760, %v15297_v11  ;;  %v19548_v39 = vld [vmem:[#allocation74_spill] sm:$0xff]  ;;  %v19549_v24 = vld [vmem:[#allocation16_spill] sm:$0xff] }
  0xa6   :  { %19528 = vst [vmem:[#allocation105_spill] sm:$0xff] %v16034_v26  ;;  %19530 = vst [vmem:[#allocation107_spill] sm:$0xff] %v16045_v32  ;;  %12595 = vmatprep.subr.bf16.mxu1 %v16034_v26  ;;  %v16077_v34 = vpack.c.bf16 %v15782_v28, %v15775_v56  ;;  %v16082_v27 = vpack.c.bf16 %v19514_v16, %v19512_v0  ;;  %v16089_v54 = vpack.c.bf16 %v15802_v42, %v15787_v1  ;;  %v19544_v1 = vld [vmem:[#allocation34_spill] sm:$0xff]  ;;  %v19551_v43 = vld [vmem:[#allocation17_spill] sm:$0xff] }
  0xa7   :  { %19531 = vst [vmem:[#allocation108_spill] sm:$0xff] %v16050_v38  ;;  %19532 = vst [vmem:[#allocation109_spill] sm:$0xff] %v16057_v31  ;;  %v19550_v30 = vld [vmem:[#allocation18_spill] sm:$0xff]  ;;  %v19552_v56 = vand.u32 4294901760, %v19525_v33  ;;  %v19553_v28 = vld [vmem:[#allocation19_spill] sm:$0xff] }
  0xa8   :  { %12789 = vmatpush3.bf16.msra.mxu0 %v16029_v12  ;;  %19533 = vst [vmem:[#allocation110_spill] sm:$0xff] %v16061_v63  ;;  %19534 = vst [vmem:[#allocation111_spill] sm:$0xff] %v16066_v19  ;;  %v19554_v42 = vld [vmem:[#allocation21_spill] sm:$0xff]  ;;  %v19555_v11 = vld [vmem:[#allocation20_spill] sm:$0xff] }
  0xa9   :  { %12597 = vmatpush3.bf16.msra.mxu1 %v16041_v14  ;;  %12791 = vmatprep.subr.bf16.mxu0 %v16045_v32  ;;  %19535 = vst [vmem:[#allocation112_spill] sm:$0xff] %v16073_v48  ;;  %19536 = vst [vmem:[#allocation113_spill] sm:$0xff] %v16077_v34  ;;  %v19556_v46 = vld [vmem:[#allocation24_spill] sm:$0xff]  ;;  %v19559_v16 = vld [vmem:[#allocation33_spill] sm:$0xff] }
  0xaa   :  { %12599 = vmatprep.subr.bf16.mxu1 %v16050_v38  ;;  %19537 = vst [vmem:[#allocation114_spill] sm:$0xff] %v16082_v27  ;;  %19538 = vst [vmem:[#allocation115_spill] sm:$0xff] %v16089_v54  ;;  %v19558_v0 = vld [vmem:[#allocation28_spill] sm:$0xff]  ;;  %v19560_v25 = vld [vmem:[#allocation37_spill] sm:$0xff] }
  0xab   :  { %v19562_v33 = vld [vmem:[#allocation41_spill] sm:$0xff]  ;;  %v19576_v12 = vld [vmem:[#allocation48_spill] sm:$0xff] }
  0xac   :  { %12793 = vmatpush3.bf16.msra.mxu0 %v16045_v32  ;;  %v19573_v32 = vld [vmem:[#allocation51_spill] sm:$0xff] }
  0xad   :  { %12601 = vmatpush3.bf16.msra.mxu1 %v16057_v31  ;;  %12795 = vmatprep.subr.bf16.mxu0 %v16061_v63  ;;  %v19571_v31 = vld [vmem:[#allocation50_spill] sm:$0xff]  ;;  %v19574_v14 = vand.u32 4294901760, %v19573_v32  ;;  %v19580_v32 = vld [vmem:[#allocation53_spill] sm:$0xff] }
  0xae   :  { %12603 = vmatprep.subr.bf16.mxu1 %v16066_v19  ;;  %v19572_v38 = vand.u32 4294901760, %v19571_v31  ;;  %v19582_v31 = vld [vmem:[#allocation45_spill] sm:$0xff] }
  0xb0   :  { %12797 = vmatpush3.bf16.msra.mxu0 %v16061_v63  ;;  %v19570_v63 = vld [vmem:[#allocation46_spill] sm:$0xff]  ;;  %v16142_v26 = vpack.c.bf16 %v19574_v14, %v19572_v38  ;;  %v19579_v14 = vand.u32 4294901760, %v19544_v1  ;;  %v19581_v38 = vand.u32 4294901760, %v19548_v39 }
  0xb1   :  { %12605 = vmatpush3.bf16.msra.mxu1 %v16073_v48  ;;  %12799 = vmatprep.subr.bf16.mxu0 %v16077_v34  ;;  %v19568_v48 = vand.u32 4294901760, %v15269_v6  ;;  %v19577_v6 = vand.u32 4294901760, %v19541_v10 }
  0xb2   :  { %12607 = vmatprep.subr.bf16.mxu1 %v16082_v27  ;;  %v19566_v27 = vld [vmem:[#allocation47_spill] sm:$0xff]  ;;  %19575 = vst [vmem:[#allocation54_spill] sm:$0xff] %v16142_v26 }
  0xb4   :  { %12801 = vmatpush3.bf16.msra.mxu0 %v16077_v34  ;;  %v19567_v34 = vand.u32 4294901760, %v15251_v3  ;;  %v19578_v3 = vand.u32 4294901760, %v19542_v45 }
  0xb5   :  { %12609 = vmatpush3.bf16.msra.mxu1 %v16089_v54  ;;  %12803 = vmatprep.subr.bf16.mxu0 %v19539_v8  ;;  %v19565_v54 = vld [vmem:[#allocation44_spill] sm:$0xff] }
  0xb6   :  { %12611 = vmatprep.subr.bf16.mxu1 %v19540_v18  ;;  %v16135_v19 = vpack.c.bf16 %v19568_v48, %v19567_v34  ;;  %v19583_v48 = vld [vmem:[#allocation97_spill] sm:$0xff]  ;;  %v19584_v34 = vld [vmem:[#allocation96_spill] sm:$0xff] }
  0xb7   :  { %10727 = vmatmul.mubr.f32.vlgmr.msra.gmra.mrb[0].mxu0 %v19541_v10  ;;  %v19585_v10 = vld [vmem:[#allocation25_spill] sm:$0xff] }
  0xb8   :  { %636 = vmatmul.mubr.f32.vlgmr.msra.gmra.mrb[8].mxu1 %v19542_v45  ;;  %12805 = vmatpush3.bf16.msra.mxu0 %v19539_v8  ;;  %19569 = vst [vmem:[#allocation58_spill] sm:$0xff] %v16135_v19  ;;  %v19586_v45 = vld [vmem:[#allocation98_spill] sm:$0xff] }
  0xb9   :  { %12613 = vmatpush3.bf16.msra.mxu1 %v19543_v22  ;;  %642 = vmatprep.mubr.f32.mxu1 %v19544_v1  ;;  %v19587_v1 = vld [vmem:[#allocation26_spill] sm:$0xff] }
  0xba   :  { %12615 = vmatprep.subr.bf16.mxu1 %v19545_v40  ;;  %12807 = vmatprep.subr.bf16.mxu0 %v19546_v60 }
  0xbb   :  { %10761 = vmatprep.mubr.f32.mxu0 %v19547_v59  ;;  %v19563_v59 = vld [vmem:[#allocation43_spill] sm:$0xff] }
  0xbc   :  { %645 = vmatmul.mubr.f32.gmra.mrb[10].mxu1 %v19548_v39  ;;  %12809 = vmatpush3.bf16.msra.mxu0 %v19546_v60  ;;  %v19588_v39 = vld [vmem:[#allocation57_spill] sm:$0xff] }
  0xbd   :  { %12617 = vmatpush3.bf16.msra.mxu1 %v19549_v24  ;;  %12811 = vmatprep.subr.bf16.mxu0 %v19550_v30 }
  0xbe   :  { %12619 = vmatprep.subr.bf16.mxu1 %v19551_v43  ;;  %749 = vmatprep.mubr.f32.mxu1 %v19552_v56  ;;  %v19564_v56 = vld [vmem:[#allocation42_spill] sm:$0xff] }
  0xc0   :  { %12813 = vmatpush3.bf16.msra.mxu0 %v19550_v30 }
  0xc1   :  { %12621 = vmatpush3.bf16.msra.mxu1 %v19553_v28  ;;  %12815 = vmatprep.subr.bf16.mxu0 %v19554_v42 }
  0xc2   :  { %12623 = vmatprep.subr.bf16.mxu1 %v19555_v11 }
  0xc4   :  { %12817 = vmatpush3.bf16.msra.mxu0 %v19554_v42 }
  0xc5   :  { %12625 = vmatpush3.bf16.msra.mxu1 %v19556_v46  ;;  %12819 = vmatprep.subr.bf16.mxu0 %v19557_v49 }
  0xc6   :  { %12627 = vmatprep.subr.bf16.mxu1 %v19558_v0 }
  0xc8   :  { %12821 = vmatpush3.bf16.msra.mxu0 %v19557_v49 }
  0xc9   :  { %12629 = vmatpush3.bf16.msra.mxu1 %v19559_v16  ;;  %12823 = vmatprep.subr.bf16.mxu0 %v19560_v25 }
  0xca   :  { %12631 = vmatprep.subr.bf16.mxu1 %v19561_v21 }
  0xcc   :  { %12825 = vmatpush3.bf16.msra.mxu0 %v19560_v25 }
  0xcd   :  { %12633 = vmatpush3.bf16.msra.mxu1 %v19562_v33  ;;  %12827 = vmatprep.subr.bf16.mxu0 %v19563_v59 }
  0xce   :  { %12635 = vmatprep.subr.bf16.mxu1 %v19564_v56 }
  0xd0   :  { %12829 = vmatpush3.bf16.msra.mxu0 %v19563_v59 }
  0xd1   :  { %12637 = vmatpush3.bf16.msra.mxu1 %v19565_v54  ;;  %12831 = vmatprep.subr.bf16.mxu0 %v19566_v27 }
  0xd2   :  { %12639 = vmatprep.subr.bf16.mxu1 %v19570_v63 }
  0xd4   :  { %12833 = vmatpush3.bf16.msra.mxu0 %v19566_v27 }
  0xd5   :  { %12641 = vmatpush3.bf16.msra.mxu1 %v19576_v12  ;;  %12835 = vmatprep.subr.bf16.mxu0 %v16135_v19 }
  0xd6   :  { %12643 = vmatprep.subr.bf16.mxu1 %v16142_v26 }
  0xd7   :  { %10762 = vmatmul.mubr.f32.vlgmr.msra.gmra.mrb[0].mxu0 %v19577_v6  ;;  %v19589_v6 = vld [vmem:[#allocation52_spill] sm:$0xff] }
  0xd8   :  { %753 = vmatmul.mubr.f32.vlgmr.msra.gmra.mrb[12].mxu1 %v19578_v3  ;;  %12837 = vmatpush3.bf16.msra.mxu0 %v16135_v19  ;;  %v19590_v3 = vld [vmem:[#allocation63_spill] sm:$0xff] }
  0xd9   :  { %12645 = vmatpush3.bf16.msra.mxu1 %v15868_v62  ;;  %760 = vmatprep.mubr.f32.mxu1 %v19579_v14 }
  0xda   :  { %12647 = vmatprep.subr.bf16.mxu1 %v15874_v58  ;;  %12839 = vmatprep.subr.bf16.mxu0 %v15881_v57 }
  0xdb   :  { %10796 = vmatprep.mubr.f32.mxu0 %v19580_v32 }
  0xdc   :  { %764 = vmatmul.mubr.f32.gmra.mrb[14].mxu1 %v19581_v38  ;;  %12841 = vmatpush3.bf16.msra.mxu0 %v15881_v57  ;;  %v16346_v57 = vld [vmem:[#allocation4 + $0x78] sm:$0xff] }
  0xdd   :  { %12649 = vmatpush3.bf16.msra.mxu1 %v15887_v50  ;;  %12843 = vmatprep.subr.bf16.mxu0 %v15899_v44  ;;  %v18967_v19 = vand.u32 4294901760, %v16346_v57 }
  0xde   :  { %12651 = vmatprep.subr.bf16.mxu1 %v15893_v61  ;;  %930 = vmatprep.mubr.f32.mxu1 %v19582_v31 }
  0xe0   :  { %12845 = vmatpush3.bf16.msra.mxu0 %v15899_v44  ;;  %v16330_v44 = vld [vmem:[#allocation4 + $0x68] sm:$0xff] }
  0xe1   :  { %12653 = vmatpush3.bf16.msra.mxu1 %v15907_v23  ;;  %12847 = vmatprep.subr.bf16.mxu0 %v15919_v52  ;;  %v18959_v50 = vand.u32 4294901760, %v16330_v44 }
  0xe2   :  { %12655 = vmatprep.subr.bf16.mxu1 %v15913_v55  ;;  %v16314_v55 = vld [vmem:[#allocation4 + $0x58] sm:$0xff] }
  0xe3   :  { %v18948_v23 = vand.u32 4294901760, %v16314_v55 }
  0xe4   :  { %12849 = vmatpush3.bf16.msra.mxu0 %v15919_v52 }
  0xe5   :  { %12657 = vmatpush3.bf16.msra.mxu1 %v15927_v51  ;;  %12851 = vmatprep.subr.bf16.mxu0 %v15939_v37 }
  0xe6   :  { %12659 = vmatprep.subr.bf16.mxu1 %v15933_v4  ;;  %v16298_v4 = vld [vmem:[#allocation4 + $0x48] sm:$0xff] }
  0xe7   :  { %v18942_v51 = vand.u32 4294901760, %v16298_v4 }
  0xe8   :  { %12853 = vmatpush3.bf16.msra.mxu0 %v15939_v37 }
  0xe9   :  { %12661 = vmatpush3.bf16.msra.mxu1 %v15947_v2  ;;  %12855 = vmatprep.subr.bf16.mxu0 %v19583_v48 }
  0xea   :  { %12663 = vmatprep.subr.bf16.mxu1 %v19584_v34  ;;  %v16264_v34 = vld [vmem:[#allocation4 + $0x28] sm:$0xff] }
  0xec   :  { %12857 = vmatpush3.bf16.msra.mxu0 %v19583_v48 }
  0xed   :  { %12665 = vmatpush3.bf16.msra.mxu1 %v19585_v10  ;;  %12859 = vmatprep.subr.bf16.mxu0 %v19586_v45 }
  0xee   :  { %12667 = vmatprep.subr.bf16.mxu1 %v19587_v1 }
  0xf0   :  { %12861 = vmatpush3.bf16.msra.mxu0 %v19586_v45 }
  0xf1   :  { %12669 = vmatpush3.bf16.msra.mxu1 %v15984_v13  ;;  %12863 = vmatprep.subr.bf16.mxu0 %v15998_v5  ;;  %v16232_v13 = vld [vmem:[#allocation4 + $0x8] sm:$0xff] }
  0xf2   :  { %12671 = vmatprep.subr.bf16.mxu1 %v15992_v29 }
  0xf4   :  { %12865 = vmatpush3.bf16.msra.mxu0 %v15998_v5  ;;  %v16230_v5 = vld [vmem:[#allocation4] sm:$0xff] }
  0xf5   :  { %12673 = vmatpush3.bf16.msra.mxu1 %v16002_v7  ;;  %12867 = vmatprep.subr.bf16.mxu0 %v19539_v8  ;;  %v18925_v45 = vand.u32 4294901760, %v16230_v5  ;;  %v19598_v58 = vand.u32 4294901760, %v16230_v5 }
  0xf6   :  { %12675 = vmatprep.subr.bf16.mxu1 %v19540_v18  ;;  %v3109_v18 = vld [vmem:[#allocation2 + $0xa8] sm:$0xff] }
  0xf7   :  { %10797 = vmatmul.mubr.f32.vlgmr.msra.gmra.mrb[0].mxu0 %v19588_v39  ;;  %v16351_v62 = vsub.f32 %v16230_v5, %v19598_v58  ;;  %v19600_v5 = vmov 0.0|0.0  }
  0xf8   :  { %932 = vmatmul.mubr.f32.vlgmr.msra.gmra.mrb[16].mxu1 %v19589_v6  ;;  %12869 = vmatpush3.bf16.msra.mxu0 %v19539_v8 }
  0xf9   :  { %12677 = vmatpush3.bf16.msra.mxu1 %v19543_v22  ;;  %937 = vmatprep.mubr.f32.mxu1 %v19590_v3  ;;  %v18970_v58 = vand.u32 4294901760, %v16351_v62 }
  0xfa   :  { %12679 = vmatprep.subr.bf16.mxu1 %v19545_v40  ;;  %12871 = vmatprep.subr.bf16.mxu0 %v19546_v60 }
  0xfb   :  { %10831 = vmatprep.mubr.f32.mxu0 %v19580_v32 }
  0xfc   :  { %939 = vmatmul.mubr.f32.gmra.mrb[18].mxu1 %v15752_v53  ;;  %12873 = vmatpush3.bf16.msra.mxu0 %v19546_v60 }
  0xfd   :  { %12681 = vmatpush3.bf16.msra.mxu1 %v19549_v24  ;;  %12875 = vmatprep.subr.bf16.mxu0 %v19550_v30 }
  0xfe   :  { %12683 = vmatprep.subr.bf16.mxu1 %v19551_v43  ;;  %1041 = vmatprep.mubr.f32.mxu1 %v19582_v31 }
 0x100   :  { %12877 = vmatpush3.bf16.msra.mxu0 %v19550_v30 }
 0x101   :  { %12685 = vmatpush3.bf16.msra.mxu1 %v19553_v28  ;;  %12879 = vmatprep.subr.bf16.mxu0 %v19554_v42 }
 0x102   :  { %12687 = vmatprep.subr.bf16.mxu1 %v19555_v11 }
 0x104   :  { %12881 = vmatpush3.bf16.msra.mxu0 %v19554_v42 }
 0x105   :  { %12689 = vmatpush3.bf16.msra.mxu1 %v19556_v46  ;;  %12883 = vmatprep.subr.bf16.mxu0 %v19557_v49 }
 0x106   :  { %12691 = vmatprep.subr.bf16.mxu1 %v19558_v0 }
 0x108   :  { %12885 = vmatpush3.bf16.msra.mxu0 %v19557_v49 }
 0x109   :  { %12693 = vmatpush3.bf16.msra.mxu1 %v19559_v16  ;;  %12887 = vmatprep.subr.bf16.mxu0 %v19560_v25 }
 0x10a   :  { %12695 = vmatprep.subr.bf16.mxu1 %v19561_v21 }
 0x10c   :  { %12889 = vmatpush3.bf16.msra.mxu0 %v19560_v25 }
 0x10d   :  { %12697 = vmatpush3.bf16.msra.mxu1 %v19562_v33  ;;  %12891 = vmatprep.subr.bf16.mxu0 %v19563_v59 }
 0x10e   :  { %12699 = vmatprep.subr.bf16.mxu1 %v19564_v56 }
 0x110   :  { %12893 = vmatpush3.bf16.msra.mxu0 %v19563_v59 }
 0x111   :  { %12701 = vmatpush3.bf16.msra.mxu1 %v19565_v54  ;;  %12895 = vmatprep.subr.bf16.mxu0 %v19566_v27 }
 0x112   :  { %12703 = vmatprep.subr.bf16.mxu1 %v19570_v63 }
 0x114   :  { %12897 = vmatpush3.bf16.msra.mxu0 %v19566_v27 }
 0x115   :  { %12705 = vmatpush3.bf16.msra.mxu1 %v19576_v12 }
 0x117   :  { %10832 = vmatmul.mubr.f32.vlgmr.msra.gmra.mrb[0].mxu0 %v19588_v39  ;;  %v18924_v39 = vand.u32 4294901760, %v16232_v13 }
 0x118   :  { %1043 = vmatmul.mubr.f32.vlgmr.msra.gmra.mrb[20].mxu1 %v19589_v6 }
 0x119   :  { %1048 = vmatprep.mubr.f32.mxu1 %v19590_v3  ;;  %v18957_v3 = vmov 0.0|0.0  }
 0x11a   :  { %12898 = vmatprep.subr.bf16.mxu1 %v18957_v3  ;;  %13042 = vmatprep.subr.bf16.mxu0 %v18957_v3 }
 0x11c   :  { %1050 = vmatmul.mubr.f32.gmra.mrb[22].mxu1 %v15752_v53  ;;  %v16240_v53 = vpack.c.bf16 %v18924_v39, %v18925_v45 }
 0x11e   :  { %19591 = vst [vmem:[#allocation34_spill] sm:$0xff] %v16240_v53  ;;  %12900 = vmatpush3.bf16.msra.mxu1 %v16240_v53  ;;  %13044 = vmatpush3.bf16.msra.mxu0 %v16240_v53 }
 0x11f   :  { %12901 = vmatprep.subr.bf16.mxu1 %v18957_v3  ;;  %13045 = vmatprep.subr.bf16.mxu0 %v18957_v3 }
 0x121   :  { %v9036_v14 = vpop.f32.mrb[0].mxu1 }
 0x122   :  { %v9037_v32 = vpop.f32.mrb[1].mxu1 }
 0x123   :  { %v9038_v38 = vadd.f32 %v9037_v32, %v9036_v14  ;;  %v16246_v14 = vld [vmem:[#allocation4 + $0x18] sm:$0xff] }
 0x15f   :  { %v9039_v31 = vpop.f32.mrb[2].mxu1 }
 0x160   :  { %v9040_v7 = vpop.f32.mrb[3].mxu1 }
 0x161   :  { %v9041_v29 = vadd.f32 %v9040_v7, %v9039_v31  ;;  %v16244_v7 = vld [vmem:[#allocation4 + $0x10] sm:$0xff] }
 0x162   :  { %v19602_v15 = vand.u32 4294901760, %v16244_v7 }
 0x164   :  { %v16385_v47 = vsub.f32 %v16244_v7, %v19602_v15 }
 0x166   :  { %v18979_v15 = vand.u32 4294901760, %v16385_v47 }
 0x169   :  { %v9074_v1 = vpop.f32.mrb[4].mxu1 }
 0x16a   :  { %v9075_v6 = vpop.f32.mrb[5].mxu1 }
 0x16b   :  { %v9076_v10 = vadd.f32 %v9075_v6, %v9074_v1  ;;  %v18929_v1 = vand.u32 4294901760, %v16244_v7  ;;  %v18928_v6 = vand.u32 4294901760, %v16246_v14 }
 0x16d   :  { %v16248_v32 = vadd.f32 %v9076_v10, %v9038_v38  ;;  %v9077_v31 = vpop.f32.mrb[6].mxu1  ;;  %v16260_v10 = vpack.c.bf16 %v18928_v6, %v18929_v1  ;;  %v16262_v38 = vld [vmem:[#allocation4 + $0x20] sm:$0xff] }
 0x16e   :  { %v9078_v39 = vpop.f32.mrb[7].mxu1  ;;  %v18931_v2 = vand.u32 4294901760, %v16262_v38 }
 0x16f   :  { %v9079_v45 = vadd.f32 %v9078_v39, %v9077_v31  ;;  %19592 = vst [vmem:[#allocation74_spill] sm:$0xff] %v16260_v10  ;;  %12903 = vmatpush3.bf16.msra.mxu1 %v16260_v10  ;;  %13047 = vmatpush3.bf16.msra.mxu0 %v16260_v10  ;;  %v18930_v39 = vand.u32 4294901760, %v16264_v34 }
 0x170   :  { %12904 = vmatprep.subr.bf16.mxu1 %v18957_v3  ;;  %13048 = vmatprep.subr.bf16.mxu0 %v18957_v3 }
 0x171   :  { %v16266_v48 = vadd.f32 %v9079_v45, %v9041_v29  ;;  %v16278_v31 = vpack.c.bf16 %v18930_v39, %v18931_v2  ;;  %v16280_v29 = vld [vmem:[#allocation4 + $0x30] sm:$0xff]  ;;  %v16282_v45 = vld [vmem:[#allocation4 + $0x38] sm:$0xff]  ;;  %v16296_v2 = vld [vmem:[#allocation4 + $0x40] sm:$0xff] }
 0x172   :  { %v18937_v6 = vand.u32 4294901760, %v16280_v29  ;;  %v18936_v1 = vand.u32 4294901760, %v16282_v45  ;;  %v18943_v37 = vand.u32 4294901760, %v16296_v2 }
 0x173   :  { %19593 = vst [vmem:[#allocation50_spill] sm:$0xff] %v16278_v31  ;;  %12906 = vmatpush3.bf16.msra.mxu1 %v16278_v31  ;;  %13050 = vmatpush3.bf16.msra.mxu0 %v16278_v31 }
 0x174   :  { %12907 = vmatprep.subr.bf16.mxu1 %v18957_v3  ;;  %13051 = vmatprep.subr.bf16.mxu0 %v18957_v3  ;;  %v16294_v39 = vpack.c.bf16 %v18936_v1, %v18937_v6  ;;  %v16310_v1 = vpack.c.bf16 %v18942_v51, %v18943_v37  ;;  %v16312_v6 = vld [vmem:[#allocation4 + $0x50] sm:$0xff]  ;;  %v16328_v37 = vld [vmem:[#allocation4 + $0x60] sm:$0xff] }
 0x175   :  { %v18949_v52 = vand.u32 4294901760, %v16312_v6  ;;  %v18960_v61 = vand.u32 4294901760, %v16328_v37 }
 0x176   :  { %19594 = vst [vmem:[#allocation51_spill] sm:$0xff] %v16294_v39  ;;  %19595 = vst [vmem:[#allocation53_spill] sm:$0xff] %v16310_v1 }
 0x177   :  { %12909 = vmatpush3.bf16.msra.mxu1 %v16294_v39  ;;  %13053 = vmatpush3.bf16.msra.mxu0 %v16294_v39  ;;  %v16326_v51 = vpack.c.bf16 %v18948_v23, %v18949_v52  ;;  %v16342_v23 = vpack.c.bf16 %v18959_v50, %v18960_v61  ;;  %v16344_v52 = vld [vmem:[#allocation4 + $0x70] sm:$0xff]  ;;  %v19599_v50 = vand.u32 4294901760, %v16232_v13 }
 0x178   :  { %12910 = vmatprep.subr.bf16.mxu1 %v18957_v3  ;;  %13054 = vmatprep.subr.bf16.mxu0 %v18957_v3  ;;  %v18968_v26 = vand.u32 4294901760, %v16344_v52 }
 0x179   :  { %19596 = vst [vmem:[#allocation45_spill] sm:$0xff] %v16326_v51  ;;  %19597 = vst [vmem:[#allocation57_spill] sm:$0xff] %v16342_v23  ;;  %v16360_v61 = vsub.f32 %v16232_v13, %v19599_v50  ;;  %v1866_v13 = vsub.f32 %v16351_v62, %v18970_v58 }
 0x17a   :  { %v16372_v36 = vpack.c.bf16 %v18967_v19, %v18968_v26  ;;  %v19603_v19 = vand.u32 4294901760, %v16246_v14 }
 0x17b   :  { %12912 = vmatpush3.bf16.msra.mxu1 %v16310_v1  ;;  %13056 = vmatpush3.bf16.msra.mxu0 %v16310_v1  ;;  %v18973_v50 = vand.u32 4294901760, %v16360_v61  ;;  %v1867_v58 = vand.u32 4294901760, %v1866_v13  ;;  %v19605_v13 = vand.u32 4294901760, %v16262_v38 }
 0x17c   :  { %12913 = vmatprep.subr.bf16.mxu1 %v18957_v3  ;;  %13057 = vmatprep.subr.bf16.mxu0 %v18957_v3  ;;  %19601 = vst [vmem:[#allocation52_spill] sm:$0xff] %v16372_v36  ;;  %v16390_v26 = vsub.f32 %v16246_v14, %v19603_v19  ;;  %v1880_v19 = vsub.f32 %v16385_v47, %v18979_v15 }
 0x17e   :  { %v18981_v7 = vand.u32 4294901760, %v16390_v26  ;;  %v16539_v21 = vpack.c.bf16 %v16390_v26, %v16385_v47 }
 0x17f   :  { %12915 = vmatpush3.bf16.msra.mxu1 %v16326_v51  ;;  %13059 = vmatpush3.bf16.msra.mxu0 %v16326_v51 }
 0x180   :  { %12916 = vmatprep.subr.bf16.mxu1 %v18957_v3  ;;  %13060 = vmatprep.subr.bf16.mxu0 %v18957_v3  ;;  %v18962_v3 = vmov 0.0   ;;  %v1887_v14 = vsub.f32 %v16390_v26, %v18981_v7  ;;  %19625 = vst [vmem:[#allocation124_spill] sm:$0xff] %v16539_v21 }
 0x181   :  { %10866 = vmatprep.mubr.msk.f32.mxu1 %vm14694_vm4, %v18962_v3  ;;  %11076 = vmatprep.mubr.msk.f32.mxu0 %vm14694_vm4, %v18962_v3  ;;  %v1873_v3 = vsub.f32 %v16360_v61, %v18973_v50 }
 0x182   :  { %v1888_v15 = vand.u32 4294901760, %v1887_v14 }
 0x183   :  { %12918 = vmatpush3.bf16.msra.mxu1 %v16342_v23  ;;  %13062 = vmatpush3.bf16.msra.mxu0 %v16342_v23  ;;  %v1874_v50 = vand.u32 4294901760, %v1873_v3  ;;  %v16409_v3 = vsub.f32 %v16262_v38, %v19605_v13 }
 0x184   :  { %12919 = vmatprep.subr.bf16.mxu1 %v19600_v5  ;;  %13063 = vmatprep.subr.bf16.mxu0 %v19600_v5 }
 0x185   :  { %v16398_v35 = vpack.c.bf16 %v1874_v50, %v1867_v58  ;;  %v1881_v50 = vand.u32 4294901760, %v1880_v19  ;;  %v18986_v27 = vand.u32 4294901760, %v16409_v3 }
 0x187   :  { %12921 = vmatpush3.bf16.msra.mxu1 %v16372_v36  ;;  %13065 = vmatpush3.bf16.msra.mxu0 %v16372_v36  ;;  %19604 = vst [vmem:[#allocation63_spill] sm:$0xff] %v16398_v35  ;;  %v16421_v54 = vpack.c.bf16 %v1888_v15, %v1881_v50  ;;  %v19611_v50 = vand.u32 4294901760, %v16298_v4 }
 0x188   :  { %12922 = vmatprep.subr.bf16.mxu1 %v19600_v5  ;;  %13066 = vmatprep.subr.bf16.mxu0 %v19600_v5 }
 0x189   :  { %19607 = vst [vmem:[#allocation116_spill] sm:$0xff] %v16421_v54 }
 0x18b   :  { %v9112_v17 = vpop.f32.mrb[8].mxu1 }
 0x18c   :  { %v9113_v20 = vpop.f32.mrb[9].mxu1 }
 0x18d   :  { %v9114_v9 = vadd.f32 %v9113_v20, %v9112_v17  ;;  %v19606_v20 = vand.u32 4294901760, %v16264_v34 }
 0x18f   :  { %v16412_v41 = vadd.f32 %v9114_v9, %v16248_v32  ;;  %v9115_v12 = vpop.f32.mrb[10].mxu1  ;;  %v16417_v17 = vsub.f32 %v16264_v34, %v19606_v20  ;;  %v1894_v9 = vsub.f32 %v16409_v3, %v18986_v27  ;;  %v19608_v32 = vand.u32 4294901760, %v16280_v29 }
 0x190   :  { %v9116_v58 = vpop.f32.mrb[11].mxu1  ;;  %v19609_v34 = vand.u32 4294901760, %v16282_v45 }
 0x191   :  { %v9117_v7 = vadd.f32 %v9116_v58, %v9115_v12  ;;  %v18985_v63 = vand.u32 4294901760, %v16417_v17  ;;  %v16429_v38 = vsub.f32 %v16280_v29, %v19608_v32  ;;  %v1895_v14 = vand.u32 4294901760, %v1894_v9 }
 0x192   :  { %v16434_v19 = vsub.f32 %v16282_v45, %v19609_v34  ;;  %v16456_v9 = vsub.f32 %v16298_v4, %v19611_v50  ;;  %v19614_v4 = vand.u32 4294901760, %v16312_v6 }
 0x193   :  { %v647_v12 = vadd.f32 %v9117_v7, %v16266_v48  ;;  %v1901_v15 = vsub.f32 %v16417_v17, %v18985_v63  ;;  %v18984_v13 = vand.u32 4294901760, %v16429_v38  ;;  %v19610_v48 = vand.u32 4294901760, %v16296_v2 }
 0x194   :  { %v18991_v20 = vand.u32 4294901760, %v16434_v19  ;;  %v18988_v63 = vand.u32 4294901760, %v16456_v9 }
 0x195   :  { %v1902_v58 = vand.u32 4294901760, %v1901_v15  ;;  %v1908_v29 = vsub.f32 %v16429_v38, %v18984_v13  ;;  %v16451_v7 = vsub.f32 %v16296_v2, %v19610_v48 }
 0x196   :  { %v1915_v45 = vsub.f32 %v16434_v19, %v18991_v20  ;;  %v1929_v48 = vsub.f32 %v16456_v9, %v18988_v63 }
 0x197   :  { %v16458_v32 = vpack.c.bf16 %v1902_v58, %v1895_v14  ;;  %v1909_v34 = vand.u32 4294901760, %v1908_v29  ;;  %v18987_v13 = vand.u32 4294901760, %v16451_v7  ;;  %v16473_v14 = vsub.f32 %v16312_v6, %v19614_v4 }
 0x198   :  { %v1916_v15 = vand.u32 4294901760, %v1915_v45  ;;  %v19615_v58 = vand.u32 4294901760, %v16314_v55  ;;  %v1930_v50 = vand.u32 4294901760, %v1929_v48  ;;  %v19617_v6 = vand.u32 4294901760, %v16328_v37 }
 0x199   :  { %19612 = vst [vmem:[#allocation117_spill] sm:$0xff] %v16458_v32  ;;  %v1922_v2 = vsub.f32 %v16451_v7, %v18987_v13 }
 0x19a   :  { %v16462_v27 = vpack.c.bf16 %v1916_v15, %v1909_v34  ;;  %v16478_v29 = vsub.f32 %v16314_v55, %v19615_v58  ;;  %v18989_v34 = vand.u32 4294901760, %v16473_v14  ;;  %v16490_v4 = vsub.f32 %v16328_v37, %v19617_v6 }
 0x19b   :  { %v1923_v45 = vand.u32 4294901760, %v1922_v2  ;;  %v19618_v55 = vand.u32 4294901760, %v16330_v44 }
 0x19c   :  { %19613 = vst [vmem:[#allocation118_spill] sm:$0xff] %v16462_v27  ;;  %v18990_v15 = vand.u32 4294901760, %v16478_v29  ;;  %v1936_v63 = vsub.f32 %v16473_v14, %v18989_v34 }
 0x19d   :  { %v16482_v13 = vpack.c.bf16 %v1930_v50, %v1923_v45  ;;  %v16495_v2 = vsub.f32 %v16330_v44, %v19618_v55  ;;  %v18993_v45 = vand.u32 4294901760, %v16490_v4  ;;  %v19619_v44 = vand.u32 4294901760, %v16344_v52 }
 0x19e   :  { %v1943_v48 = vsub.f32 %v16478_v29, %v18990_v15  ;;  %v1937_v58 = vand.u32 4294901760, %v1936_v63  ;;  %v19620_v63 = vand.u32 4294901760, %v16346_v57 }
 0x19f   :  { %19616 = vst [vmem:[#allocation119_spill] sm:$0xff] %v16482_v13  ;;  %v18996_v50 = vand.u32 4294901760, %v16495_v2  ;;  %v1950_v37 = vsub.f32 %v16490_v4, %v18993_v45  ;;  %v16511_v55 = vsub.f32 %v16344_v52, %v19619_v44 }
 0x1a0   :  { %v1944_v34 = vand.u32 4294901760, %v1943_v48  ;;  %v16516_v15 = vsub.f32 %v16346_v57, %v19620_v63 }
 0x1a1   :  { %v1957_v6 = vsub.f32 %v16495_v2, %v18996_v50  ;;  %v1951_v48 = vand.u32 4294901760, %v1950_v37  ;;  %v18998_v45 = vand.u32 4294901760, %v16511_v55  ;;  %v16534_v50 = vpack.c.bf16 %v16360_v61, %v16351_v62 }
 0x1a2   :  { %v16518_v20 = vpack.c.bf16 %v1944_v34, %v1937_v58  ;;  %v19000_v56 = vand.u32 4294901760, %v16516_v15 }
 0x1a3   :  { %v1958_v59 = vand.u32 4294901760, %v1957_v6  ;;  %v1964_v52 = vsub.f32 %v16511_v55, %v18998_v45  ;;  %19624 = vst [vmem:[#allocation123_spill] sm:$0xff] %v16534_v50 }
 0x1a4   :  { %19621 = vst [vmem:[#allocation120_spill] sm:$0xff] %v16518_v20  ;;  %v1971_v44 = vsub.f32 %v16516_v15, %v19000_v56 }
 0x1a5   :  { %v16522_v33 = vpack.c.bf16 %v1958_v59, %v1951_v48  ;;  %v1965_v57 = vand.u32 4294901760, %v1964_v52 }
 0x1a6   :  { %v1972_v63 = vand.u32 4294901760, %v1971_v44  ;;  %v16543_v44 = vpack.c.bf16 %v16417_v17, %v16409_v3 }
 0x1a7   :  { %19622 = vst [vmem:[#allocation121_spill] sm:$0xff] %v16522_v33 }
 0x1a8   :  { %v16530_v34 = vpack.c.bf16 %v1972_v63, %v1965_v57  ;;  %19626 = vst [vmem:[#allocation125_spill] sm:$0xff] %v16543_v44  ;;  %v16547_v57 = vpack.c.bf16 %v16434_v19, %v16429_v38  ;;  %v16551_v63 = vpack.c.bf16 %v16456_v9, %v16451_v7 }
 0x1aa   :  { %19623 = vst [vmem:[#allocation122_spill] sm:$0xff] %v16530_v34  ;;  %19627 = vst [vmem:[#allocation126_spill] sm:$0xff] %v16547_v57 }
 0x1ab   :  { %v9150_v58 = vpop.f32.mrb[12].mxu1  ;;  %19628 = vst [vmem:[#allocation127_spill] sm:$0xff] %v16551_v63 }
 0x1ac   :  { %v9151_v37 = vpop.f32.mrb[13].mxu1 }
 0x1ad   :  { %v9152_v6 = vadd.f32 %v9151_v37, %v9150_v58 }
 0x1af   :  { %v755_v59 = vadd.f32 %v9152_v6, %v16412_v41  ;;  %v9153_v48 = vpop.f32.mrb[14].mxu1  ;;  %v16555_v41 = vpack.c.bf16 %v16478_v29, %v16473_v14 }
 0x1b0   :  { %v9154_v25 = vpop.f32.mrb[15].mxu1 }
 0x1b1   :  { %v9155_v45 = vadd.f32 %v9154_v25, %v9153_v48  ;;  %19629 = vst [vmem:[#allocation128_spill] sm:$0xff] %v16555_v41  ;;  %v16559_v25 = vpack.c.bf16 %v16495_v2, %v16490_v4 }
 0x1b3   :  { %v766_v52 = vadd.f32 %v9155_v45, %v647_v12  ;;  %19630 = vst [vmem:[#allocation129_spill] sm:$0xff] %v16559_v25  ;;  %v16563_v12 = vpack.c.bf16 %v16516_v15, %v16511_v55 }
 0x1b5   :  { %19631 = vst [vmem:[#allocation130_spill] sm:$0xff] %v16563_v12 }
 0x1cb   :  { %v9188_v45 = vpop.f32.mrb[16].mxu1 }
 0x1cc   :  { %v9189_v58 = vpop.f32.mrb[17].mxu1 }
 0x1cd   :  { %v9190_v37 = vadd.f32 %v9189_v58, %v9188_v45 }
 0x1cf   :  { %v934_v6 = vadd.f32 %v9190_v37, %v755_v59  ;;  %v9191_v48 = vpop.f32.mrb[18].mxu1 }
 0x1d0   :  { %v9192_v56 = vpop.f32.mrb[19].mxu1 }
 0x1d1   :  { %v9193_v16 = vadd.f32 %v9192_v56, %v9191_v48 }
 0x1d3   :  { %v941_v49 = vadd.f32 %v9193_v16, %v766_v52 }
 0x1ea   :  { %v10833_v0 = vpop.f32.mrb[0].mxu0 }
 0x1eb   :  { %v9226_v46 = vpop.f32.mrb[20].mxu1  ;;  %v1729_v42 = vpop.f32.mrb[1].mxu0 }
 0x1ec   :  { %v9227_v11 = vpop.f32.mrb[21].mxu1 }
 0x1ed   :  { %v9228_v28 = vadd.f32 %v9227_v11, %v9226_v46 }
 0x1ef   :  { %v1045_v30 = vadd.f32 %v9228_v28, %v934_v6  ;;  %v9229_v43 = vpop.f32.mrb[22].mxu1 }
 0x1f0   :  { %v9230_v24 = vpop.f32.mrb[23].mxu1 }
 0x1f1   :  { %v16565_v60 = vadd.f32 %v1729_v42, %v1045_v30  ;;  %v9231_v40 = vadd.f32 %v9230_v24, %v9229_v43 }
 0x1f3   :  { %19632 = vst [vmem:[#allocation131_spill] sm:$0xff] %v16565_v60  ;;  %v1052_v22 = vadd.f32 %v9231_v40, %v941_v49  ;;  %v1746_v59 = vmul.f32 %v16565_v60, %v16565_v60 }
 0x1f5   :  { %v16567_v8 = vadd.f32 %v10833_v0, %v1052_v22 }
 0x1f7   :  { %19633 = vst [vmem:[#allocation132_spill] sm:$0xff] %v16567_v8  ;;  %v1739_v16 = vadd.f32 %v16565_v60, %v16567_v8  ;;  %v1747_v56 = vmul.f32 %v16567_v8, %v16567_v8 }
 0x1f9   :  { %v1740_v52 = vrot.slane %v1739_v16, 4  ;;  %v1748_v11 = vadd.f32 %v1747_v56, %v1746_v59 }
 0x1fb   :  { %v1741_v28 = vadd.f32 %v1740_v52, %v1739_v16  ;;  %v1749_v46 = vrot.slane %v1748_v11, 4 }
 0x1fd   :  { %v1742_v45 = vrot.slane %v1741_v28, 2  ;;  %v1750_v30 = vadd.f32 %v1749_v46, %v1748_v11  ;;  %v19634_v46 = vmov 0.0  }
 0x1ff   :  { %v1743_v42 = vadd.f32 %v1742_v45, %v1741_v28  ;;  %v1751_v24 = vrot.slane %v1750_v30, 2  ;;  %v19635_v45 = vand.u32 4294901760, %v16351_v62 }
 0x201   :  { %v1744_v40 = vrot.slane %v1743_v42, 1  ;;  %v1752_v22 = vadd.f32 %v1751_v24, %v1750_v30  ;;  %v19636_v30 = vand.u32 4294901760, %v16360_v61  ;;  %v19638_v24 = vand.u32 4294901760, %v16385_v47 }
 0x202   :  { %v19641_v61 = vand.u32 4294901760, %v16409_v3  ;;  %v19642_v47 = vand.u32 4294901760, %v16417_v17  ;;  %v19647_v3 = vand.u32 4294901760, %v16451_v7  ;;  %v19648_v17 = vand.u32 4294901760, %v16456_v9 }
 0x203   :  { %v1745_v43 = vadd.f32 %v1744_v40, %v1743_v42  ;;  %v1753_v49 = vrot.slane %v1752_v22, 1  ;;  %v16706_v42 = vpack.c.bf16 %v19636_v30, %v19635_v45  ;;  %v19639_v40 = vand.u32 4294901760, %v16390_v26 }
 0x204   :  { %v16734_v26 = vpack.c.bf16 %v19642_v47, %v19641_v61  ;;  %v19653_v7 = vand.u32 4294901760, %v16490_v4  ;;  %v19654_v9 = vand.u32 4294901760, %v16495_v2  ;;  %v16833_v4 = vld [vmem:[#allocation2 + $0x88] sm:$0xff]  ;;  %v16835_v2 = vld [vmem:[#allocation2 + $0x100] sm:$0xff]  ;;  %v3106_v61 = vld [vmem:[#allocation2 + $0x90] sm:$0xff] }
 0x205   :  { %v16575_v0 = vand.u32 4294901760, %v1745_v43  ;;  %v1754_v58 = vadd.f32 %v1753_v49, %v1752_v22  ;;  %19637 = vst [vmem:[#allocation133_spill] sm:$0xff] %v16706_v42  ;;  %v16718_v62 = vpack.c.bf16 %v19639_v40, %v19638_v24  ;;  %v19644_v22 = vand.u32 4294901760, %v16429_v38  ;;  %v3107_v47 = vld [vmem:[#allocation2 + $0x98] sm:$0xff] }
 0x206   :  { %19643 = vst [vmem:[#allocation135_spill] sm:$0xff] %v16734_v26  ;;  %v19650_v38 = vand.u32 4294901760, %v16473_v14  ;;  %v19656_v14 = vand.u32 4294901760, %v16511_v55 }
 0x207   :  { %v16578_v37 = vsub.f32 %v1745_v43, %v16575_v0  ;;  %v16580_v6 = vand.u32 4294901760, %v1754_v58  ;;  %19640 = vst [vmem:[#allocation134_spill] sm:$0xff] %v16718_v62  ;;  %v19645_v43 = vand.u32 4294901760, %v16434_v19  ;;  %v19651_v19 = vand.u32 4294901760, %v16478_v29 }
 0x208   :  { %v19657_v29 = vand.u32 4294901760, %v16516_v15  ;;  %v16831_v15 = vld [vmem:[#allocation2 + $0x80] sm:$0xff] }
 0x209   :  { %v1854_v48 = vand.u32 4294901760, %v16578_v37  ;;  %v16584_v59 = vsub.f32 %v1754_v58, %v16580_v6  ;;  %v16744_v49 = vpack.c.bf16 %v19645_v43, %v19644_v22  ;;  %v16754_v58 = vpack.c.bf16 %v19648_v17, %v19647_v3  ;;  %v16863_v22 = vld [vmem:[#allocation2 + $0x110] sm:$0xff]  ;;  %v16866_v17 = vld [vmem:[#allocation2 + $0x118] sm:$0xff] }
 0x20a   :  { %v19018_v55 = vand.u32 4294901760, %v16831_v15  ;;  %v3191_v43 = vand.u32 4294901760, %v3106_v61  ;;  %v3194_v3 = vand.u32 4294901760, %v3107_v47 }
 0x20b   :  { %v1855_v16 = vsub.f32 %v16578_v37, %v1854_v48  ;;  %v2496_v56 = vand.u32 4294901760, %v16584_v59  ;;  %19646 = vst [vmem:[#allocation136_spill] sm:$0xff] %v16744_v49  ;;  %19649 = vst [vmem:[#allocation137_spill] sm:$0xff] %v16754_v58 }
 0x20d   :  { %v1856_v52 = vand.u32 4294901760, %v1855_v16  ;;  %v2497_v11 = vsub.f32 %v16584_v59, %v2496_v56  ;;  %v19017_v16 = vand.u32 4294901760, %v16833_v4 }
 0x20f   :  { %10867 = vmatmul.mubr.f32.vlgmr.msra.gmra.mrb[24].mxu1 %v1856_v52  ;;  %v2498_v28 = vand.u32 4294901760, %v2497_v11  ;;  %v19016_v52 = vand.u32 4294901760, %v16835_v2  ;;  %v16842_v11 = vld [vmem:[#allocation2] sm:$0xff]  ;;  %v16853_v30 = vpack.c.bf16 %v19017_v16, %v19018_v55 }
 0x210   :  { %12924 = vmatpush3.bf16.msra.mxu1 %v16398_v35  ;;  %10901 = vmatprep.mubr.msk.f32.mxu1 %vm14694_vm4, %v19634_v46  ;;  %v3108_v55 = vld [vmem:[#allocation2 + $0xa0] sm:$0xff] }
 0x211   :  { %11077 = vmatmul.mubr.f32.vlgmr.msra.gmra.mrb[2].mxu0 %v2498_v28  ;;  %12925 = vmatprep.subr.bf16.mxu1 %v19600_v5  ;;  %v16844_v28 = vld [vmem:[#allocation2 + $0x8] sm:$0xff]  ;;  %19659 = vst [vmem:[#allocation141_spill] sm:$0xff] %v16853_v30 }
 0x212   :  { %13068 = vmatpush3.bf16.msra.mxu0 %v16398_v35  ;;  %11111 = vmatprep.mubr.msk.f32.mxu0 %vm14694_vm4, %v19634_v46  ;;  %v3140_v45 = vand.u32 4294901760, %v16844_v28 }
 0x213   :  { %13069 = vmatprep.subr.bf16.mxu0 %v19600_v5 }
 0x214   :  { %12927 = vmatpush3.bf16.msra.mxu1 %v16421_v54 }
 0x215   :  { %12928 = vmatprep.subr.bf16.mxu1 %v19600_v5 }
 0x216   :  { %13071 = vmatpush3.bf16.msra.mxu0 %v16421_v54  ;;  %v19669_v54 = vand.u32 4294901760, %v16831_v15 }
 0x217   :  { %13072 = vmatprep.subr.bf16.mxu0 %v19600_v5 }
 0x218   :  { %12930 = vmatpush3.bf16.msra.mxu1 %v16458_v32  ;;  %v16918_v35 = vsub.f32 %v16831_v15, %v19669_v54  ;;  %v3112_v54 = vld [vmem:[#allocation2 + $0xc0] sm:$0xff]  ;;  %v3113_v15 = vld [vmem:[#allocation2 + $0xc8] sm:$0xff] }
 0x219   :  { %12931 = vmatprep.subr.bf16.mxu1 %v19600_v5 }
 0x21a   :  { %13074 = vmatpush3.bf16.msra.mxu0 %v16458_v32 }
 0x21b   :  { %13075 = vmatprep.subr.bf16.mxu0 %v19600_v5 }
 0x21c   :  { %12933 = vmatpush3.bf16.msra.mxu1 %v16462_v27 }
 0x21d   :  { %12934 = vmatprep.subr.bf16.mxu1 %v19600_v5 }
 0x21e   :  { %13077 = vmatpush3.bf16.msra.mxu0 %v16462_v27 }
 0x21f   :  { %13078 = vmatprep.subr.bf16.mxu0 %v19600_v5 }
 0x220   :  { %12936 = vmatpush3.bf16.msra.mxu1 %v16482_v13 }
 0x221   :  { %12937 = vmatprep.subr.bf16.mxu1 %v19600_v5 }
 0x222   :  { %13080 = vmatpush3.bf16.msra.mxu0 %v16482_v13  ;;  %v16933_v13 = vsub.f32 %v3107_v47, %v3194_v3  ;;  %v3097_v47 = vld [vmem:[#allocation2 + $0x48] sm:$0xff] }
 0x223   :  { %13081 = vmatprep.subr.bf16.mxu0 %v19600_v5 }
 0x224   :  { %12939 = vmatpush3.bf16.msra.mxu1 %v16518_v20 }
 0x225   :  { %12940 = vmatprep.subr.bf16.mxu1 %v19600_v5 }
 0x226   :  { %13083 = vmatpush3.bf16.msra.mxu0 %v16518_v20  ;;  %v3095_v20 = vld [vmem:[#allocation2 + $0x38] sm:$0xff] }
 0x227   :  { %13084 = vmatprep.subr.bf16.mxu0 %v19600_v5  ;;  %v3158_v32 = vand.u32 4294901760, %v3095_v20 }
 0x228   :  { %12942 = vmatpush3.bf16.msra.mxu1 %v16522_v33 }
 0x229   :  { %12943 = vmatprep.subr.bf16.mxu1 %v19600_v5 }
 0x22a   :  { %13086 = vmatpush3.bf16.msra.mxu0 %v16522_v33  ;;  %v3094_v33 = vld [vmem:[#allocation2 + $0x30] sm:$0xff] }
 0x22b   :  { %13087 = vmatprep.subr.bf16.mxu0 %v19600_v5  ;;  %v3155_v27 = vand.u32 4294901760, %v3094_v33 }
 0x22c   :  { %12945 = vmatpush3.bf16.msra.mxu1 %v16530_v34 }
 0x22d   :  { %12946 = vmatprep.subr.bf16.mxu1 %v19600_v5 }
 0x22e   :  { %13089 = vmatpush3.bf16.msra.mxu0 %v16530_v34  ;;  %v16906_v34 = vld [vmem:[#allocation2 + $0x138] sm:$0xff] }
 0x22f   :  { %10902 = vmatmul.mubr.f32.vlgmr.msra.gmra.mrb[24].mxu1 %v16575_v0  ;;  %13090 = vmatprep.subr.bf16.mxu0 %v19600_v5 }
 0x230   :  { %12948 = vmatpush3.bf16.msra.mxu1 %v16534_v50  ;;  %10936 = vmatprep.mubr.msk.f32.mxu1 %vm14694_vm4, %v19634_v46 }
 0x231   :  { %11112 = vmatmul.mubr.f32.vlgmr.msra.gmra.mrb[2].mxu0 %v16580_v6  ;;  %12949 = vmatprep.subr.bf16.mxu1 %v19600_v5 }
 0x232   :  { %13092 = vmatpush3.bf16.msra.mxu0 %v16534_v50  ;;  %11146 = vmatprep.mubr.msk.f32.mxu0 %vm14694_vm4, %v19634_v46 }
 0x233   :  { %13093 = vmatprep.subr.bf16.mxu0 %v19600_v5 }
 0x234   :  { %12951 = vmatpush3.bf16.msra.mxu1 %v16539_v21 }
 0x235   :  { %12952 = vmatprep.subr.bf16.mxu1 %v19600_v5 }
 0x236   :  { %13095 = vmatpush3.bf16.msra.mxu0 %v16539_v21 }
 0x237   :  { %13096 = vmatprep.subr.bf16.mxu0 %v19600_v5 }
 0x238   :  { %12954 = vmatpush3.bf16.msra.mxu1 %v16543_v44 }
 0x239   :  { %12955 = vmatprep.subr.bf16.mxu1 %v19600_v5 }
 0x23a   :  { %13098 = vmatpush3.bf16.msra.mxu0 %v16543_v44  ;;  %v16903_v44 = vld [vmem:[#allocation2 + $0x130] sm:$0xff] }
 0x23b   :  { %13099 = vmatprep.subr.bf16.mxu0 %v19600_v5 }
 0x23c   :  { %12957 = vmatpush3.bf16.msra.mxu1 %v16547_v57 }
 0x23d   :  { %12958 = vmatprep.subr.bf16.mxu1 %v19600_v5 }
 0x23e   :  { %13101 = vmatpush3.bf16.msra.mxu0 %v16547_v57  ;;  %v3111_v57 = vld [vmem:[#allocation2 + $0xb8] sm:$0xff] }
 0x23f   :  { %13102 = vmatprep.subr.bf16.mxu0 %v19600_v5  ;;  %v3206_v50 = vand.u32 4294901760, %v3111_v57 }
 0x240   :  { %12960 = vmatpush3.bf16.msra.mxu1 %v16551_v63 }
 0x241   :  { %12961 = vmatprep.subr.bf16.mxu1 %v19600_v5 }
 0x242   :  { %13104 = vmatpush3.bf16.msra.mxu0 %v16551_v63  ;;  %v3110_v63 = vld [vmem:[#allocation2 + $0xb0] sm:$0xff] }
 0x243   :  { %13105 = vmatprep.subr.bf16.mxu0 %v19600_v5  ;;  %v3203_v21 = vand.u32 4294901760, %v3110_v63 }
 0x244   :  { %12963 = vmatpush3.bf16.msra.mxu1 %v16555_v41 }
 0x245   :  { %12964 = vmatprep.subr.bf16.mxu1 %v19600_v5 }
 0x246   :  { %13107 = vmatpush3.bf16.msra.mxu0 %v16555_v41 }
 0x247   :  { %13108 = vmatprep.subr.bf16.mxu0 %v19600_v5 }
 0x248   :  { %12966 = vmatpush3.bf16.msra.mxu1 %v16559_v25 }
 0x249   :  { %12967 = vmatprep.subr.bf16.mxu1 %v19600_v5 }
 0x24a   :  { %13110 = vmatpush3.bf16.msra.mxu0 %v16559_v25 }
 0x24b   :  { %13111 = vmatprep.subr.bf16.mxu0 %v19600_v5 }
 0x24c   :  { %12969 = vmatpush3.bf16.msra.mxu1 %v16563_v12 }
 0x24d   :  { %12970 = vmatprep.subr.bf16.mxu1 %v19600_v5 }
 0x24e   :  { %13113 = vmatpush3.bf16.msra.mxu0 %v16563_v12 }
 0x24f   :  { %10937 = vmatmul.mubr.f32.vlgmr.msra.gmra.mrb[24].mxu1 %v16578_v37  ;;  %13114 = vmatprep.subr.bf16.mxu0 %v19600_v5  ;;  %v16764_v37 = vpack.c.bf16 %v19651_v19, %v19650_v38  ;;  %v19035_v38 = vand.u32 4294901760, %v16863_v22  ;;  %v3090_v19 = vld [vmem:[#allocation2 + $0x10] sm:$0xff] }
 0x250   :  { %12972 = vmatpush3.bf16.msra.mxu1 %v16240_v53  ;;  %10971 = vmatprep.mubr.msk.f32.mxu1 %vm14694_vm4, %v19634_v46 }
 0x251   :  { %11147 = vmatmul.mubr.f32.vlgmr.msra.gmra.mrb[2].mxu0 %v16584_v59  ;;  %12973 = vmatprep.subr.bf16.mxu1 %v19600_v5  ;;  %19652 = vst [vmem:[#allocation138_spill] sm:$0xff] %v16764_v37  ;;  %v16784_v59 = vpack.c.bf16 %v19657_v29, %v19656_v14  ;;  %v3143_v14 = vand.u32 4294901760, %v3090_v19 }
 0x252   :  { %13116 = vmatpush3.bf16.msra.mxu0 %v16240_v53  ;;  %11181 = vmatprep.mubr.msk.f32.mxu0 %vm14694_vm4, %v19634_v46 }
 0x253   :  { %13117 = vmatprep.subr.bf16.mxu0 %v19600_v5  ;;  %19658 = vst [vmem:[#allocation140_spill] sm:$0xff] %v16784_v59 }
 0x254   :  { %12975 = vmatpush3.bf16.msra.mxu1 %v16260_v10 }
 0x255   :  { %12976 = vmatprep.subr.bf16.mxu1 %v19600_v5 }
 0x256   :  { %13119 = vmatpush3.bf16.msra.mxu0 %v16260_v10 }
 0x257   :  { %13120 = vmatprep.subr.bf16.mxu0 %v19600_v5 }
 0x258   :  { %12978 = vmatpush3.bf16.msra.mxu1 %v16278_v31 }
 0x259   :  { %12979 = vmatprep.subr.bf16.mxu1 %v19600_v5 }
 0x25a   :  { %13122 = vmatpush3.bf16.msra.mxu0 %v16278_v31 }
 0x25b   :  { %13123 = vmatprep.subr.bf16.mxu0 %v19600_v5 }
 0x25c   :  { %12981 = vmatpush3.bf16.msra.mxu1 %v16294_v39 }
 0x25d   :  { %12982 = vmatprep.subr.bf16.mxu1 %v19600_v5 }
 0x25e   :  { %13125 = vmatpush3.bf16.msra.mxu0 %v16294_v39 }
 0x25f   :  { %13126 = vmatprep.subr.bf16.mxu0 %v19600_v5 }
 0x260   :  { %12984 = vmatpush3.bf16.msra.mxu1 %v16310_v1 }
 0x261   :  { %12985 = vmatprep.subr.bf16.mxu1 %v19600_v5 }
 0x262   :  { %13128 = vmatpush3.bf16.msra.mxu0 %v16310_v1 }
 0x263   :  { %13129 = vmatprep.subr.bf16.mxu0 %v19600_v5 }
 0x264   :  { %12987 = vmatpush3.bf16.msra.mxu1 %v16326_v51 }
 0x265   :  { %12988 = vmatprep.subr.bf16.mxu1 %v19600_v5 }
 0x266   :  { %13131 = vmatpush3.bf16.msra.mxu0 %v16326_v51 }
 0x267   :  { %13132 = vmatprep.subr.bf16.mxu0 %v19600_v5 }
 0x268   :  { %12990 = vmatpush3.bf16.msra.mxu1 %v16342_v23 }
 0x269   :  { %12991 = vmatprep.subr.bf16.mxu1 %v19600_v5 }
 0x26a   :  { %13134 = vmatpush3.bf16.msra.mxu0 %v16342_v23 }
 0x26b   :  { %13135 = vmatprep.subr.bf16.mxu0 %v19600_v5 }
 0x26c   :  { %12993 = vmatpush3.bf16.msra.mxu1 %v16372_v36 }
 0x26d   :  { %12994 = vmatprep.subr.bf16.mxu1 %v19600_v5 }
 0x26e   :  { %13137 = vmatpush3.bf16.msra.mxu0 %v16372_v36 }
 0x26f   :  { %10972 = vmatmul.mubr.f32.vlgmr.msra.gmra.mrb[24].mxu1 %v1854_v48  ;;  %13138 = vmatprep.subr.bf16.mxu0 %v19600_v5  ;;  %v16774_v48 = vpack.c.bf16 %v19654_v9, %v19653_v7  ;;  %v3091_v7 = vld [vmem:[#allocation2 + $0x18] sm:$0xff]  ;;  %v19034_v9 = vand.u32 4294901760, %v16866_v17 }
 0x270   :  { %12996 = vmatpush3.bf16.msra.mxu1 %v16706_v42  ;;  %11006 = vmatprep.mubr.msk.f32.mxu1 %vm14694_vm4, %v19634_v46  ;;  %v3146_v29 = vand.u32 4294901760, %v3091_v7 }
 0x271   :  { %11182 = vmatmul.mubr.f32.vlgmr.msra.gmra.mrb[2].mxu0 %v2496_v56  ;;  %12997 = vmatprep.subr.bf16.mxu1 %v19600_v5  ;;  %19655 = vst [vmem:[#allocation139_spill] sm:$0xff] %v16774_v48  ;;  %v16839_v56 = vld [vmem:[#allocation2 + $0x108] sm:$0xff] }
 0x272   :  { %13140 = vmatpush3.bf16.msra.mxu0 %v16706_v42  ;;  %11216 = vmatprep.mubr.msk.f32.mxu0 %vm14694_vm4, %v19634_v46  ;;  %v16881_v16 = vpack.c.bf16 %v3146_v29, %v3143_v14 }
 0x273   :  { %13141 = vmatprep.subr.bf16.mxu0 %v19600_v5 }
 0x274   :  { %12999 = vmatpush3.bf16.msra.mxu1 %v16718_v62  ;;  %19664 = vst [vmem:[#allocation146_spill] sm:$0xff] %v16881_v16 }
 0x275   :  { %13000 = vmatprep.subr.bf16.mxu1 %v19600_v5 }
 0x276   :  { %13143 = vmatpush3.bf16.msra.mxu0 %v16718_v62  ;;  %v3093_v62 = vld [vmem:[#allocation2 + $0x28] sm:$0xff] }
 0x277   :  { %13144 = vmatprep.subr.bf16.mxu0 %v19600_v5  ;;  %v3152_v42 = vand.u32 4294901760, %v3093_v62 }
 0x278   :  { %13002 = vmatpush3.bf16.msra.mxu1 %v16734_v26 }
 0x279   :  { %13003 = vmatprep.subr.bf16.mxu1 %v19600_v5 }
 0x27a   :  { %13146 = vmatpush3.bf16.msra.mxu0 %v16734_v26  ;;  %v3092_v26 = vld [vmem:[#allocation2 + $0x20] sm:$0xff] }
 0x27b   :  { %13147 = vmatprep.subr.bf16.mxu0 %v19600_v5 }
 0x27c   :  { %13005 = vmatpush3.bf16.msra.mxu1 %v16744_v49 }
 0x27d   :  { %13006 = vmatprep.subr.bf16.mxu1 %v19600_v5 }
 0x27e   :  { %13149 = vmatpush3.bf16.msra.mxu0 %v16744_v49 }
 0x27f   :  { %13150 = vmatprep.subr.bf16.mxu0 %v19600_v5 }
 0x280   :  { %13008 = vmatpush3.bf16.msra.mxu1 %v16754_v58 }
 0x281   :  { %13009 = vmatprep.subr.bf16.mxu1 %v19600_v5 }
 0x282   :  { %13152 = vmatpush3.bf16.msra.mxu0 %v16754_v58  ;;  %v16886_v58 = vld [vmem:[#allocation2 + $0x128] sm:$0xff] }
 0x283   :  { %13153 = vmatprep.subr.bf16.mxu0 %v19600_v5 }
 0x284   :  { %13011 = vmatpush3.bf16.msra.mxu1 %v16764_v37 }
 0x285   :  { %13012 = vmatprep.subr.bf16.mxu1 %v19600_v5 }
 0x286   :  { %13155 = vmatpush3.bf16.msra.mxu0 %v16764_v37  ;;  %v3200_v37 = vand.u32 4294901760, %v3109_v18 }
 0x287   :  { %13156 = vmatprep.subr.bf16.mxu0 %v19600_v5 }
 0x288   :  { %13014 = vmatpush3.bf16.msra.mxu1 %v16774_v48 }
 0x289   :  { %13015 = vmatprep.subr.bf16.mxu1 %v19600_v5 }
 0x28a   :  { %13158 = vmatpush3.bf16.msra.mxu0 %v16774_v48  ;;  %v3197_v48 = vand.u32 4294901760, %v3108_v55 }
 0x28b   :  { %13159 = vmatprep.subr.bf16.mxu0 %v19600_v5 }
 0x28c   :  { %13017 = vmatpush3.bf16.msra.mxu1 %v16784_v59  ;;  %v16893_v12 = vpack.c.bf16 %v3200_v37, %v3197_v48 }
 0x28d   :  { %13018 = vmatprep.subr.bf16.mxu1 %v19600_v5 }
 0x28e   :  { %13161 = vmatpush3.bf16.msra.mxu0 %v16784_v59  ;;  %v16883_v59 = vld [vmem:[#allocation2 + $0x120] sm:$0xff]  ;;  %19665 = vst [vmem:[#allocation147_spill] sm:$0xff] %v16893_v12 }
 0x28f   :  { %11007 = vmatmul.mubr.f32.vlgmr.msra.gmra.mrb[24].mxu1 %v16575_v0  ;;  %13162 = vmatprep.subr.bf16.mxu0 %v19600_v5  ;;  %v19061_v49 = vand.u32 4294901760, %v16883_v59 }
 0x290   :  { %13020 = vmatpush3.bf16.msra.mxu1 %v16240_v53  ;;  %11041 = vmatprep.mubr.msk.f32.mxu1 %vm14694_vm4, %v19634_v46 }
 0x291   :  { %11217 = vmatmul.mubr.f32.vlgmr.msra.gmra.mrb[2].mxu0 %v16580_v6  ;;  %13021 = vmatprep.subr.bf16.mxu1 %v19600_v5 }
 0x292   :  { %13164 = vmatpush3.bf16.msra.mxu0 %v16240_v53  ;;  %11251 = vmatprep.mubr.msk.f32.mxu0 %vm14694_vm4, %v19634_v46  ;;  %v3117_v46 = vld [vmem:[#allocation2 + $0xe8] sm:$0xff] }
 0x293   :  { %13165 = vmatprep.subr.bf16.mxu0 %v19600_v5 }
 0x294   :  { %13023 = vmatpush3.bf16.msra.mxu1 %v16260_v10 }
 0x295   :  { %13024 = vmatprep.subr.bf16.mxu1 %v19600_v5 }
 0x296   :  { %13167 = vmatpush3.bf16.msra.mxu0 %v16260_v10  ;;  %v3116_v10 = vld [vmem:[#allocation2 + $0xe0] sm:$0xff] }
 0x297   :  { %13168 = vmatprep.subr.bf16.mxu0 %v19600_v5 }
 0x298   :  { %13026 = vmatpush3.bf16.msra.mxu1 %v16278_v31 }
 0x299   :  { %13027 = vmatprep.subr.bf16.mxu1 %v19600_v5 }
 0x29a   :  { %13170 = vmatpush3.bf16.msra.mxu0 %v16278_v31  ;;  %v16937_v31 = vsub.f32 %v3091_v7, %v3146_v29  ;;  %v19675_v7 = vand.u32 4294901760, %v16906_v34  ;;  %v16974_v29 = vld [vmem:[#allocation2 + $0x158] sm:$0xff] }
 0x29b   :  { %13171 = vmatprep.subr.bf16.mxu0 %v19600_v5 }
 0x29c   :  { %13029 = vmatpush3.bf16.msra.mxu1 %v16294_v39 }
 0x29d   :  { %13030 = vmatprep.subr.bf16.mxu1 %v19600_v5 }
 0x29e   :  { %13173 = vmatpush3.bf16.msra.mxu0 %v16294_v39  ;;  %v16935_v39 = vsub.f32 %v3090_v19, %v3143_v14  ;;  %v19674_v19 = vand.u32 4294901760, %v16903_v44  ;;  %v3164_v14 = vand.u32 4294901760, %v3097_v47 }
 0x29f   :  { %13174 = vmatprep.subr.bf16.mxu0 %v19600_v5 }
 0x2a0   :  { %13032 = vmatpush3.bf16.msra.mxu1 %v16310_v1 }
 0x2a1   :  { %13033 = vmatprep.subr.bf16.mxu1 %v19600_v5 }
 0x2a2   :  { %13176 = vmatpush3.bf16.msra.mxu0 %v16310_v1  ;;  %v16931_v1 = vsub.f32 %v3106_v61, %v3191_v43  ;;  %v3096_v61 = vld [vmem:[#allocation2 + $0x40] sm:$0xff] }
 0x2a3   :  { %13177 = vmatprep.subr.bf16.mxu0 %v19600_v5 }
 0x2a4   :  { %13035 = vmatpush3.bf16.msra.mxu1 %v16326_v51  ;;  %19673 = vst [vmem:[#allocation153_spill] sm:$0xff] %v16931_v1 }
 0x2a5   :  { %13036 = vmatprep.subr.bf16.mxu1 %v19600_v5 }
 0x2a6   :  { %13179 = vmatpush3.bf16.msra.mxu0 %v16326_v51  ;;  %v16929_v51 = vsub.f32 %v16844_v28, %v3140_v45 }
 0x2a7   :  { %13180 = vmatprep.subr.bf16.mxu0 %v19600_v5 }
 0x2a8   :  { %13038 = vmatpush3.bf16.msra.mxu1 %v16342_v23  ;;  %19672 = vst [vmem:[#allocation152_spill] sm:$0xff] %v16929_v51 }
 0x2a9   :  { %13039 = vmatprep.subr.bf16.mxu1 %v19600_v5 }
 0x2aa   :  { %13182 = vmatpush3.bf16.msra.mxu0 %v16342_v23 }
 0x2ab   :  { %13183 = vmatprep.subr.bf16.mxu0 %v19600_v5 }
 0x2ac   :  { %13041 = vmatpush3.bf16.msra.mxu1 %v16372_v36 }
 0x2ad   :  { %13187 = vmatprep.subr.bf16.mxu1 %v16853_v30 }
 0x2ae   :  { %13185 = vmatpush3.bf16.msra.mxu0 %v16372_v36  ;;  %v19670_v36 = vand.u32 4294901760, %v16833_v4 }
 0x2af   :  { %11042 = vmatmul.mubr.f32.vlgmr.msra.gmra.mrb[24].mxu1 %v16575_v0  ;;  %v19015_v0 = vand.u32 4294901760, %v16839_v56 }
 0x2b0   :  { %v16923_v23 = vsub.f32 %v16833_v4, %v19670_v36  ;;  %v16940_v36 = vld [vmem:[#allocation2 + $0x140] sm:$0xff]  ;;  %v16942_v4 = vsub.f32 %v3108_v55, %v3197_v48  ;;  %v16960_v48 = vpack.c.bf16 %v19675_v7, %v19674_v19  ;;  %v3212_v55 = vand.u32 4294901760, %v3113_v15  ;;  %v3099_v7 = vld [vmem:[#allocation2 + $0x58] sm:$0xff] }
 0x2b1   :  { %11252 = vmatmul.mubr.f32.vlgmr.msra.gmra.mrb[2].mxu0 %v16580_v6  ;;  %v3137_v6 = vand.u32 4294901760, %v16842_v11  ;;  %v16859_v24 = vpack.c.bf16 %v19015_v0, %v19016_v52  ;;  %v16873_v0 = vpack.c.bf16 %v3194_v3, %v3191_v43  ;;  %v16879_v52 = vpack.c.bf16 %v19034_v9, %v19035_v38 }
 0x2b2   :  { %v19060_v9 = vand.u32 4294901760, %v16886_v58  ;;  %v3149_v38 = vand.u32 4294901760, %v3092_v26  ;;  %v16952_v43 = vsub.f32 %v3110_v63, %v3203_v21  ;;  %v16954_v3 = vsub.f32 %v3111_v57, %v3206_v50  ;;  %19676 = vst [vmem:[#allocation154_spill] sm:$0xff] %v16960_v48 }
 0x2b3   :  { %19660 = vst [vmem:[#allocation142_spill] sm:$0xff] %v16859_v24  ;;  %v16861_v40 = vpack.c.bf16 %v3140_v45, %v3137_v6  ;;  %13379 = vmatprep.subr.bf16.mxu0 %v16859_v24  ;;  %19662 = vst [vmem:[#allocation144_spill] sm:$0xff] %v16873_v0  ;;  %v16950_v45 = vld [vmem:[#allocation2 + $0x148] sm:$0xff]  ;;  %v3161_v63 = vand.u32 4294901760, %v3096_v61 }
 0x2b4   :  { %13381 = vmatpush3.bf16.msra.mxu0 %v16859_v24  ;;  %19663 = vst [vmem:[#allocation145_spill] sm:$0xff] %v16879_v52  ;;  %v16899_v25 = vpack.c.bf16 %v19060_v9, %v19061_v49  ;;  %v16901_v41 = vpack.c.bf16 %v3152_v42, %v3149_v38  ;;  %v16912_v49 = vpack.c.bf16 %v3206_v50, %v3203_v21  ;;  %v16968_v21 = vld [vmem:[#allocation2 + $0x150] sm:$0xff]  ;;  %v19099_v50 = vand.u32 4294901760, %v16940_v36  ;;  %v3103_v24 = vld [vmem:[#allocation2 + $0x78] sm:$0xff] }
 0x2b5   :  { %19661 = vst [vmem:[#allocation143_spill] sm:$0xff] %v16861_v40  ;;  %13189 = vmatpush3.bf16.msra.mxu1 %v16861_v40  ;;  %13383 = vmatprep.subr.bf16.mxu0 %v16879_v52  ;;  %v16926_v9 = vsub.f32 %v16842_v11, %v3137_v6  ;;  %v16944_v11 = vsub.f32 %v3109_v18, %v3200_v37  ;;  %v19098_v57 = vand.u32 4294901760, %v16950_v45 }
 0x2b6   :  { %13191 = vmatprep.subr.bf16.mxu1 %v16873_v0  ;;  %19666 = vst [vmem:[#allocation148_spill] sm:$0xff] %v16899_v25  ;;  %19667 = vst [vmem:[#allocation149_spill] sm:$0xff] %v16901_v41  ;;  %v16946_v28 = vsub.f32 %v3092_v26, %v3149_v38  ;;  %v16948_v6 = vsub.f32 %v3093_v62, %v3152_v42  ;;  %v16962_v18 = vpack.c.bf16 %v3158_v32, %v3155_v27  ;;  %v3114_v26 = vld [vmem:[#allocation2 + $0xd0] sm:$0xff]  ;;  %v3115_v38 = vld [vmem:[#allocation2 + $0xd8] sm:$0xff] }
 0x2b7   :  { %19668 = vst [vmem:[#allocation150_spill] sm:$0xff] %v16912_v49  ;;  %19671 = vst [vmem:[#allocation151_spill] sm:$0xff] %v16926_v9  ;;  %v16964_v37 = vsub.f32 %v3094_v33, %v3155_v27  ;;  %v16966_v42 = vsub.f32 %v3095_v20, %v3158_v32  ;;  %v3209_v62 = vand.u32 4294901760, %v3112_v54  ;;  %v3098_v27 = vld [vmem:[#allocation2 + $0x50] sm:$0xff]  ;;  %v16981_v32 = vsub.f32 %v3113_v15, %v3212_v55 }
 0x2b8   :  { %13385 = vmatpush3.bf16.msra.mxu0 %v16879_v52  ;;  %19677 = vst [vmem:[#allocation155_spill] sm:$0xff] %v16962_v18  ;;  %v3215_v19 = vand.u32 4294901760, %v3114_v26  ;;  %v16987_v53 = vpack.c.bf16 %v19098_v57, %v19099_v50  ;;  %v16989_v5 = vpack.c.bf16 %v3164_v14, %v3161_v63  ;;  %v3218_v15 = vand.u32 4294901760, %v3115_v38  ;;  %v3100_v57 = vld [vmem:[#allocation2 + $0x60] sm:$0xff]  ;;  %v3101_v50 = vld [vmem:[#allocation2 + $0x68] sm:$0xff]  ;;  %v17018_v52 = vld [vmem:[#allocation2 + $0x170] sm:$0xff] }
 0x2b9   :  { %13193 = vmatpush3.bf16.msra.mxu1 %v16881_v16  ;;  %13387 = vmatprep.subr.bf16.mxu0 %v16899_v25  ;;  %v16977_v33 = vpack.c.bf16 %v3212_v55, %v3209_v62  ;;  %v16979_v20 = vsub.f32 %v3112_v54, %v3209_v62  ;;  %v16995_v54 = vld [vmem:[#allocation2 + $0x160] sm:$0xff]  ;;  %v19119_v55 = vand.u32 4294901760, %v16968_v21  ;;  %v3119_v16 = vld [vmem:[#allocation2 + $0xf8] sm:$0xff]  ;;  %v3173_v30 = vand.u32 4294901760, %v3100_v57 }
 0x2ba   :  { %13195 = vmatprep.subr.bf16.mxu1 %v16893_v12  ;;  %19679 = vst [vmem:[#allocation157_spill] sm:$0xff] %v16987_v53  ;;  %19680 = vst [vmem:[#allocation158_spill] sm:$0xff] %v16989_v5  ;;  %v16998_v62 = vsub.f32 %v3114_v26, %v3215_v19  ;;  %v17007_v26 = vpack.c.bf16 %v3218_v15, %v3215_v19  ;;  %v3118_v12 = vld [vmem:[#allocation2 + $0xf0] sm:$0xff] }
 0x2bb   :  { %19678 = vst [vmem:[#allocation156_spill] sm:$0xff] %v16977_v33 }
 0x2bc   :  { %13389 = vmatpush3.bf16.msra.mxu0 %v16899_v25  ;;  %19681 = vst [vmem:[#allocation159_spill] sm:$0xff] %v17007_v26 }
 0x2bd   :  { %13197 = vmatpush3.bf16.msra.mxu1 %v16901_v41  ;;  %13391 = vmatprep.subr.bf16.mxu0 %v16960_v48  ;;  %v17002_v41 = vld [vmem:[#allocation2 + $0x168] sm:$0xff] }
 0x2be   :  { %13199 = vmatprep.subr.bf16.mxu1 %v16912_v49  ;;  %v16993_v49 = vsub.f32 %v3097_v47, %v3164_v14  ;;  %v3170_v47 = vand.u32 4294901760, %v3099_v7  ;;  %v3224_v14 = vand.u32 4294901760, %v3117_v46 }
 0x2c0   :  { %13393 = vmatpush3.bf16.msra.mxu0 %v16960_v48  ;;  %v19118_v48 = vand.u32 4294901760, %v16974_v29  ;;  %v17024_v19 = vsub.f32 %v3099_v7, %v3170_v47  ;;  %v3227_v7 = vand.u32 4294901760, %v3118_v12 }
 0x2c1   :  { %13201 = vmatpush3.bf16.msra.mxu1 %v16962_v18  ;;  %v16991_v18 = vsub.f32 %v3096_v61, %v3161_v63  ;;  %13395 = vmatprep.subr.bf16.mxu0 %v16987_v53  ;;  %v3167_v61 = vand.u32 4294901760, %v3098_v27  ;;  %v3221_v63 = vand.u32 4294901760, %v3116_v10 }
 0x2c2   :  { %13203 = vmatprep.subr.bf16.mxu1 %v16977_v33  ;;  %v17009_v33 = vsub.f32 %v3115_v38, %v3218_v15  ;;  %v17015_v25 = vpack.c.bf16 %v19118_v48, %v19119_v55  ;;  %v17028_v15 = vld [vmem:[#allocation2 + $0x178] sm:$0xff]  ;;  %v17034_v55 = vsub.f32 %v3117_v46, %v3224_v14 }
 0x2c3   :  { %v17020_v0 = vpack.c.bf16 %v3170_v47, %v3167_v61  ;;  %v17022_v40 = vsub.f32 %v3098_v27, %v3167_v61  ;;  %v17026_v38 = vpack.c.bf16 %v3224_v14, %v3221_v63  ;;  %v17032_v48 = vsub.f32 %v3116_v10, %v3221_v63 }
 0x2c4   :  { %13397 = vmatpush3.bf16.msra.mxu0 %v16987_v53  ;;  %19682 = vst [vmem:[#allocation160_spill] sm:$0xff] %v17015_v25  ;;  %v3102_v53 = vld [vmem:[#allocation2 + $0x70] sm:$0xff]  ;;  %v3176_v27 = vand.u32 4294901760, %v3101_v50  ;;  %v3230_v61 = vand.u32 4294901760, %v3119_v16  ;;  %v19685_v10 = vand.u32 4294901760, %v16995_v54  ;;  %v17047_v63 = vsub.f32 %v3100_v57, %v3173_v30 }
 0x2c5   :  { %13205 = vmatpush3.bf16.msra.mxu1 %v16989_v5  ;;  %19683 = vst [vmem:[#allocation161_spill] sm:$0xff] %v17020_v0  ;;  %19684 = vst [vmem:[#allocation162_spill] sm:$0xff] %v17026_v38  ;;  %13399 = vmatprep.subr.bf16.mxu0 %v17015_v25  ;;  %v19133_v5 = vand.u32 4294901760, %v17002_v41  ;;  %v19135_v14 = vand.u32 4294901760, %v17028_v15 }
 0x2c6   :  { %13207 = vmatprep.subr.bf16.mxu1 %v17007_v26  ;;  %v17050_v26 = vpack.c.bf16 %v3176_v27, %v3173_v30  ;;  %v17052_v8 = vsub.f32 %v3101_v50, %v3176_v27  ;;  %v17054_v47 = vpack.c.bf16 %v3230_v61, %v3227_v7  ;;  %v19136_v30 = vand.u32 4294901760, %v16918_v35 }
 0x2c7   :  { %v17045_v46 = vpack.c.bf16 %v19133_v5, %v19685_v10  ;;  %v19691_v10 = vand.u32 4294901760, %v17018_v52  ;;  %v3182_v5 = vand.u32 4294901760, %v3103_v24  ;;  %v19694_v50 = vand.u32 4294901760, %v16835_v2 }
 0x2c8   :  { %13401 = vmatpush3.bf16.msra.mxu0 %v17015_v25  ;;  %19687 = vst [vmem:[#allocation164_spill] sm:$0xff] %v17050_v26  ;;  %19688 = vst [vmem:[#allocation165_spill] sm:$0xff] %v17054_v47  ;;  %v17056_v25 = vsub.f32 %v3118_v12, %v3227_v7  ;;  %v19139_v12 = vand.u32 4294901760, %v16923_v23  ;;  %v19696_v27 = vand.u32 4294901760, %v16839_v56 }
 0x2c9   :  { %13209 = vmatpush3.bf16.msra.mxu1 %v17020_v0  ;;  %19686 = vst [vmem:[#allocation163_spill] sm:$0xff] %v17045_v46  ;;  %v3179_v0 = vand.u32 4294901760, %v3102_v53  ;;  %13403 = vmatprep.subr.bf16.mxu0 %v17045_v46  ;;  %v17065_v57 = vpack.c.bf16 %v19135_v14, %v19691_v10  ;;  %v19142_v10 = vand.u32 4294901760, %v16926_v9  ;;  %v19145_v14 = vand.u32 4294901760, %v16929_v51 }
 0x2ca   :  { %13211 = vmatprep.subr.bf16.mxu1 %v17026_v38  ;;  %19689 = vst [vmem:[#allocation166_spill] sm:$0xff] %v17056_v25  ;;  %v17059_v38 = vsub.f32 %v3119_v16, %v3230_v61  ;;  %v17075_v16 = vsub.f32 %v16835_v2, %v19694_v50  ;;  %v17080_v7 = vsub.f32 %v16839_v56, %v19696_v27  ;;  %v19157_v27 = vand.u32 4294901760, %v16931_v1 }
 0x2cb   :  { %19692 = vst [vmem:[#allocation168_spill] sm:$0xff] %v17065_v57  ;;  %v17067_v60 = vsub.f32 %v3102_v53, %v3179_v0  ;;  %v17084_v53 = vpack.c.bf16 %v3182_v5, %v3179_v0  ;;  %v17086_v61 = vsub.f32 %v3103_v24, %v3182_v5  ;;  %v3379_v2 = vsub.f32 %v16918_v35, %v19136_v30 }
 0x2cc   :  { %19690 = vst [vmem:[#allocation167_spill] sm:$0xff] %v17059_v38  ;;  %19695 = vst [vmem:[#allocation170_spill] sm:$0xff] %v17075_v16  ;;  %13405 = vmatpush3.bf16.msra.mxu0 %v17045_v46  ;;  %v3386_v56 = vsub.f32 %v16923_v23, %v19139_v12  ;;  %v19152_v50 = vand.u32 4294901760, %v17075_v16  ;;  %v3267_v5 = vsub.f32 %v16926_v9, %v19142_v10 }
 0x2cd   :  { %19693 = vst [vmem:[#allocation169_spill] sm:$0xff] %v17067_v60  ;;  %13213 = vmatpush3.bf16.msra.mxu1 %v17050_v26  ;;  %19697 = vst [vmem:[#allocation171_spill] sm:$0xff] %v17080_v7  ;;  %13407 = vmatprep.subr.bf16.mxu0 %v17065_v57  ;;  %v3274_v24 = vsub.f32 %v16929_v51, %v19145_v14  ;;  %v19700_v26 = vand.u32 4294901760, %v17080_v7  ;;  %v3393_v30 = vsub.f32 %v16931_v1, %v19157_v27 }
 0x2ce   :  { %13215 = vmatprep.subr.bf16.mxu1 %v17054_v47  ;;  %19698 = vst [vmem:[#allocation172_spill] sm:$0xff] %v17084_v53  ;;  %19699 = vst [vmem:[#allocation173_spill] sm:$0xff] %v17086_v61  ;;  %v3380_v47 = vand.u32 4294901760, %v3379_v2  ;;  %v3387_v12 = vand.u32 4294901760, %v3386_v56  ;;  %v4159_v0 = vsub.f32 %v17075_v16, %v19152_v50  ;;  %v3268_v46 = vand.u32 4294901760, %v3267_v5 }
 0x2cf   :  { %v4166_v10 = vsub.f32 %v17080_v7, %v19700_v26  ;;  %v3275_v14 = vand.u32 4294901760, %v3274_v24  ;;  %v19702_v50 = vand.u32 4294901760, %v16863_v22  ;;  %v3394_v5 = vand.u32 4294901760, %v3393_v30 }
 0x2d0   :  { %13409 = vmatpush3.bf16.msra.mxu0 %v17065_v57  ;;  %v13218_v56 = vpack.c.bf16 %v3387_v12, %v3380_v47  ;;  %v4160_v51 = vand.u32 4294901760, %v4159_v0  ;;  %v19705_v57 = vand.u32 4294901760, %v16866_v17  ;;  %v19161_v12 = vand.u32 4294901760, %v16935_v39 }
 0x2d1   :  { %13217 = vmatpush3.bf16.msra.mxu1 %v17084_v53  ;;  %v19701_v53 = vand.u32 4294901760, %v16933_v13  ;;  %v4167_v9 = vand.u32 4294901760, %v4166_v10  ;;  %v17124_v16 = vsub.f32 %v16863_v22, %v19702_v50  ;;  %v17126_v26 = vpack.c.bf16 %v3275_v14, %v3268_v46 }
 0x2d2   :  { %v17131_v27 = vsub.f32 %v16866_v17, %v19705_v57  ;;  %13219 = vmatprep.subr.bf16.mxu1 %v13218_v56  ;;  %v19164_v14 = vand.u32 4294901760, %v16942_v4  ;;  %v19165_v30 = vand.u32 4294901760, %v16944_v11  ;;  %v3281_v17 = vsub.f32 %v16935_v39, %v19161_v12 }
 0x2d3   :  { %v3400_v2 = vsub.f32 %v16933_v13, %v19701_v53  ;;  %19703 = vst [vmem:[#allocation174_spill] sm:$0xff] %v17124_v16  ;;  %19704 = vst [vmem:[#allocation175_spill] sm:$0xff] %v17126_v26  ;;  %v17133_v1 = vpack.c.bf16 %v4167_v9, %v4160_v51  ;;  %v19163_v47 = vand.u32 4294901760, %v17124_v16  ;;  %v19160_v53 = vand.u32 4294901760, %v16937_v31 }
 0x2d4   :  { %19706 = vst [vmem:[#allocation176_spill] sm:$0xff] %v17131_v27  ;;  %v19162_v46 = vand.u32 4294901760, %v17131_v27  ;;  %v19708_v57 = vand.u32 4294901760, %v16883_v59  ;;  %v3407_v0 = vsub.f32 %v16942_v4, %v19164_v14  ;;  %v19710_v56 = vand.u32 4294901760, %v16886_v58 }
 0x2d5   :  { %v3401_v24 = vand.u32 4294901760, %v3400_v2  ;;  %13411 = vmatprep.subr.bf16.mxu0 %v17133_v1  ;;  %v4173_v51 = vsub.f32 %v17124_v16, %v19163_v47  ;;  %v3288_v9 = vsub.f32 %v16937_v31, %v19160_v53  ;;  %v3414_v2 = vsub.f32 %v16944_v11, %v19165_v30 }
 0x2d6   :  { %v17156_v10 = vsub.f32 %v16883_v59, %v19708_v57  ;;  %v4180_v50 = vsub.f32 %v17131_v27, %v19162_v46  ;;  %v3282_v59 = vand.u32 4294901760, %v3281_v17  ;;  %v3408_v46 = vand.u32 4294901760, %v3407_v0 }
 0x2d7   :  { %v17138_v22 = vpack.c.bf16 %v3401_v24, %v3394_v5  ;;  %v17170_v5 = vsub.f32 %v16886_v58, %v19710_v56  ;;  %v4174_v24 = vand.u32 4294901760, %v4173_v51  ;;  %v3289_v57 = vand.u32 4294901760, %v3288_v9 }
 0x2d8   :  { %19709 = vst [vmem:[#allocation178_spill] sm:$0xff] %v17156_v10  ;;  %v19169_v53 = vand.u32 4294901760, %v17156_v10  ;;  %v4181_v12 = vand.u32 4294901760, %v4180_v50  ;;  %v3415_v47 = vand.u32 4294901760, %v3414_v2  ;;  %v19166_v26 = vand.u32 4294901760, %v16946_v28 }
 0x2d9   :  { %19707 = vst [vmem:[#allocation177_spill] sm:$0xff] %v17138_v22  ;;  %19711 = vst [vmem:[#allocation179_spill] sm:$0xff] %v17170_v5  ;;  %v19167_v22 = vand.u32 4294901760, %v17170_v5  ;;  %v17174_v14 = vpack.c.bf16 %v3289_v57, %v3282_v59  ;;  %v19168_v58 = vand.u32 4294901760, %v16948_v6  ;;  %v19170_v50 = vand.u32 4294901760, %v16952_v43 }
 0x2da   :  { %v4187_v30 = vsub.f32 %v17156_v10, %v19169_v53  ;;  %v17181_v51 = vpack.c.bf16 %v4181_v12, %v4174_v24  ;;  %v17183_v17 = vpack.c.bf16 %v3415_v47, %v3408_v46  ;;  %v3295_v2 = vsub.f32 %v16946_v28, %v19166_v26 }
 0x2db   :  { %19712 = vst [vmem:[#allocation180_spill] sm:$0xff] %v17174_v14  ;;  %v4194_v9 = vsub.f32 %v17170_v5, %v19167_v22  ;;  %v3302_v56 = vsub.f32 %v16948_v6, %v19168_v58  ;;  %v19172_v12 = vand.u32 4294901760, %v16954_v3  ;;  %v3421_v47 = vsub.f32 %v16952_v43, %v19170_v50 }
 0x2dc   :  { %19713 = vst [vmem:[#allocation181_spill] sm:$0xff] %v17181_v51  ;;  %19714 = vst [vmem:[#allocation182_spill] sm:$0xff] %v17183_v17  ;;  %v4188_v0 = vand.u32 4294901760, %v4187_v30  ;;  %v19715_v46 = vand.u32 4294901760, %v16903_v44  ;;  %v19717_v30 = vand.u32 4294901760, %v16906_v34  ;;  %v3296_v26 = vand.u32 4294901760, %v3295_v2 }
 0x2dd   :  { %v4195_v24 = vand.u32 4294901760, %v4194_v9  ;;  %v3303_v22 = vand.u32 4294901760, %v3302_v56  ;;  %v3428_v9 = vsub.f32 %v16954_v3, %v19172_v12  ;;  %v19171_v58 = vand.u32 4294901760, %v16964_v37 }
 0x2de   :  { %v17202_v59 = vsub.f32 %v16903_v44, %v19715_v46  ;;  %v17207_v57 = vsub.f32 %v16906_v34, %v19717_v30  ;;  %v3422_v50 = vand.u32 4294901760, %v3421_v47  ;;  %v19175_v2 = vand.u32 4294901760, %v16966_v42 }
 0x2df   :  { %v17213_v53 = vpack.c.bf16 %v4195_v24, %v4188_v0  ;;  %v17217_v46 = vpack.c.bf16 %v3303_v22, %v3296_v26  ;;  %v3429_v14 = vand.u32 4294901760, %v3428_v9  ;;  %v3309_v34 = vsub.f32 %v16964_v37, %v19171_v58 }
 0x2e0   :  { %19716 = vst [vmem:[#allocation183_spill] sm:$0xff] %v17202_v59  ;;  %19718 = vst [vmem:[#allocation184_spill] sm:$0xff] %v17207_v57  ;;  %v19173_v17 = vand.u32 4294901760, %v17202_v59  ;;  %v19174_v44 = vand.u32 4294901760, %v17207_v57  ;;  %v19176_v24 = vand.u32 4294901760, %v16979_v20  ;;  %v19177_v26 = vand.u32 4294901760, %v16981_v32 }
 0x2e1   :  { %19719 = vst [vmem:[#allocation185_spill] sm:$0xff] %v17213_v53  ;;  %19720 = vst [vmem:[#allocation186_spill] sm:$0xff] %v17217_v46  ;;  %v17231_v22 = vpack.c.bf16 %v3429_v14, %v3422_v50  ;;  %v3310_v47 = vand.u32 4294901760, %v3309_v34  ;;  %v3316_v30 = vsub.f32 %v16966_v42, %v19175_v2  ;;  %v19722_v9 = vand.u32 4294901760, %v16940_v36 }
 0x2e2   :  { %v4201_v56 = vsub.f32 %v17202_v59, %v19173_v17  ;;  %v4208_v0 = vsub.f32 %v17207_v57, %v19174_v44  ;;  %v3435_v44 = vsub.f32 %v16979_v20, %v19176_v24  ;;  %v3442_v14 = vsub.f32 %v16981_v32, %v19177_v26 }
 0x2e3   :  { %19721 = vst [vmem:[#allocation187_spill] sm:$0xff] %v17231_v22  ;;  %v17239_v58 = vsub.f32 %v16940_v36, %v19722_v9  ;;  %v3317_v50 = vand.u32 4294901760, %v3316_v30  ;;  %v19724_v2 = vand.u32 4294901760, %v16950_v45  ;;  %v19179_v36 = vand.u32 4294901760, %v16991_v18 }
 0x2e4   :  { %v4202_v12 = vand.u32 4294901760, %v4201_v56  ;;  %v4209_v17 = vand.u32 4294901760, %v4208_v0  ;;  %v3436_v0 = vand.u32 4294901760, %v3435_v44  ;;  %v3443_v9 = vand.u32 4294901760, %v3442_v14 }
 0x2e5   :  { %19723 = vst [vmem:[#allocation188_spill] sm:$0xff] %v17239_v58  ;;  %v19178_v34 = vand.u32 4294901760, %v17239_v58  ;;  %v17251_v22 = vsub.f32 %v16950_v45, %v19724_v2  ;;  %v19180_v24 = vand.u32 4294901760, %v16993_v49  ;;  %v17257_v46 = vpack.c.bf16 %v3317_v50, %v3310_v47 }
 0x2e6   :  { %v17254_v56 = vpack.c.bf16 %v4209_v17, %v4202_v12  ;;  %v3323_v45 = vsub.f32 %v16991_v18, %v19179_v36  ;;  %v17266_v2 = vpack.c.bf16 %v3443_v9, %v3436_v0  ;;  %v19182_v12 = vand.u32 4294901760, %v16998_v62 }
 0x2e7   :  { %19725 = vst [vmem:[#allocation189_spill] sm:$0xff] %v17251_v22  ;;  %19727 = vst [vmem:[#allocation191_spill] sm:$0xff] %v17257_v46  ;;  %v4215_v30 = vsub.f32 %v17239_v58, %v19178_v34  ;;  %v19181_v26 = vand.u32 4294901760, %v17251_v22  ;;  %v3330_v17 = vsub.f32 %v16993_v49, %v19180_v24  ;;  %v19185_v44 = vand.u32 4294901760, %v17009_v33 }
 0x2e8   :  { %19726 = vst [vmem:[#allocation190_spill] sm:$0xff] %v17254_v56  ;;  %19728 = vst [vmem:[#allocation192_spill] sm:$0xff] %v17266_v2  ;;  %v3324_v50 = vand.u32 4294901760, %v3323_v45  ;;  %v19729_v34 = vand.u32 4294901760, %v16968_v21  ;;  %v3449_v9 = vsub.f32 %v16998_v62, %v19182_v12 }
 0x2e9   :  { %v4216_v47 = vand.u32 4294901760, %v4215_v30  ;;  %v4222_v14 = vsub.f32 %v17251_v22, %v19181_v26  ;;  %v3331_v0 = vand.u32 4294901760, %v3330_v17  ;;  %v3456_v24 = vsub.f32 %v17009_v33, %v19185_v44 }
 0x2ea   :  { %v17279_v36 = vsub.f32 %v16968_v21, %v19729_v34  ;;  %v19731_v30 = vand.u32 4294901760, %v16974_v29  ;;  %v19187_v21 = vand.u32 4294901760, %v17022_v40  ;;  %v19188_v34 = vand.u32 4294901760, %v17024_v19 }
 0x2eb   :  { %v4223_v45 = vand.u32 4294901760, %v4222_v14  ;;  %v17295_v17 = vpack.c.bf16 %v3331_v0, %v3324_v50  ;;  %v3450_v46 = vand.u32 4294901760, %v3449_v9  ;;  %v3457_v12 = vand.u32 4294901760, %v3456_v24 }
 0x2ec   :  { %19730 = vst [vmem:[#allocation193_spill] sm:$0xff] %v17279_v36  ;;  %v17290_v2 = vsub.f32 %v16974_v29, %v19731_v30  ;;  %v19186_v26 = vand.u32 4294901760, %v17279_v36  ;;  %v3337_v14 = vsub.f32 %v17022_v40, %v19187_v21  ;;  %v3344_v30 = vsub.f32 %v17024_v19, %v19188_v34 }
 0x2ed   :  { %19733 = vst [vmem:[#allocation195_spill] sm:$0xff] %v17295_v17  ;;  %v17298_v53 = vpack.c.bf16 %v4223_v45, %v4216_v47  ;;  %v17309_v50 = vpack.c.bf16 %v3457_v12, %v3450_v46  ;;  %v19189_v47 = vand.u32 4294901760, %v17032_v48  ;;  %v19191_v0 = vand.u32 4294901760, %v17034_v55 }
 0x2ee   :  { %19732 = vst [vmem:[#allocation194_spill] sm:$0xff] %v17290_v2  ;;  %v19190_v56 = vand.u32 4294901760, %v17290_v2  ;;  %v4229_v29 = vsub.f32 %v17279_v36, %v19186_v26  ;;  %v3338_v45 = vand.u32 4294901760, %v3337_v14  ;;  %v3345_v44 = vand.u32 4294901760, %v3344_v30 }
 0x2ef   :  { %19734 = vst [vmem:[#allocation196_spill] sm:$0xff] %v17298_v53  ;;  %19735 = vst [vmem:[#allocation197_spill] sm:$0xff] %v17309_v50  ;;  %v19736_v26 = vand.u32 4294901760, %v16995_v54  ;;  %v3463_v46 = vsub.f32 %v17032_v48, %v19189_v47  ;;  %v3470_v12 = vsub.f32 %v17034_v55, %v19191_v0  ;;  %v19738_v34 = vand.u32 4294901760, %v17002_v41 }
 0x2f0   :  { %v4236_v24 = vsub.f32 %v17290_v2, %v19190_v56  ;;  %v4230_v9 = vand.u32 4294901760, %v4229_v29  ;;  %v17332_v14 = vpack.c.bf16 %v3345_v44, %v3338_v45  ;;  %v19197_v45 = vand.u32 4294901760, %v17059_v38 }
 0x2f1   :  { %v17319_v21 = vsub.f32 %v16995_v54, %v19736_v26  ;;  %v17330_v29 = vsub.f32 %v17002_v41, %v19738_v34  ;;  %v19192_v54 = vand.u32 4294901760, %v17047_v63  ;;  %v19194_v26 = vand.u32 4294901760, %v17052_v8 }
 0x2f2   :  { %v4237_v17 = vand.u32 4294901760, %v4236_v24  ;;  %19740 = vst [vmem:[#allocation200_spill] sm:$0xff] %v17332_v14  ;;  %v3464_v47 = vand.u32 4294901760, %v3463_v46  ;;  %v3471_v56 = vand.u32 4294901760, %v3470_v12  ;;  %v19198_v34 = vand.u32 4294901760, %v17056_v25 }
 0x2f3   :  { %19737 = vst [vmem:[#allocation198_spill] sm:$0xff] %v17319_v21  ;;  %19739 = vst [vmem:[#allocation199_spill] sm:$0xff] %v17330_v29  ;;  %v19193_v30 = vand.u32 4294901760, %v17319_v21  ;;  %v19195_v50 = vand.u32 4294901760, %v17330_v29  ;;  %v3351_v41 = vsub.f32 %v17047_v63, %v19192_v54  ;;  %v3358_v44 = vsub.f32 %v17052_v8, %v19194_v26 }
 0x2f4   :  { %v17337_v24 = vpack.c.bf16 %v4237_v17, %v4230_v9  ;;  %v17350_v17 = vpack.c.bf16 %v3471_v56, %v3464_v47  ;;  %v19743_v46 = vand.u32 4294901760, %v17018_v52  ;;  %v3477_v26 = vsub.f32 %v17056_v25, %v19198_v34 }
 0x2f5   :  { %v4243_v0 = vsub.f32 %v17319_v21, %v19193_v30  ;;  %v4250_v9 = vsub.f32 %v17330_v29, %v19195_v50  ;;  %v3352_v30 = vand.u32 4294901760, %v3351_v41  ;;  %v3359_v14 = vand.u32 4294901760, %v3358_v44 }
 0x2f6   :  { %19741 = vst [vmem:[#allocation201_spill] sm:$0xff] %v17337_v24  ;;  %19742 = vst [vmem:[#allocation202_spill] sm:$0xff] %v17350_v17  ;;  %v17359_v12 = vsub.f32 %v17018_v52, %v19743_v46  ;;  %v3484_v47 = vsub.f32 %v17059_v38, %v19197_v45  ;;  %v19745_v17 = vand.u32 4294901760, %v17028_v15  ;;  %v19200_v41 = vand.u32 4294901760, %v17067_v60 }
 0x2f7   :  { %v4244_v54 = vand.u32 4294901760, %v4243_v0  ;;  %v4251_v56 = vand.u32 4294901760, %v4250_v9  ;;  %v17373_v52 = vpack.c.bf16 %v3359_v14, %v3352_v30  ;;  %v3478_v0 = vand.u32 4294901760, %v3477_v26 }
 0x2f8   :  { %19744 = vst [vmem:[#allocation203_spill] sm:$0xff] %v17359_v12  ;;  %v19199_v50 = vand.u32 4294901760, %v17359_v12  ;;  %v17371_v24 = vsub.f32 %v17028_v15, %v19745_v17  ;;  %v19203_v44 = vand.u32 4294901760, %v17086_v61  ;;  %v3485_v9 = vand.u32 4294901760, %v3484_v47 }
 0x2f9   :  { %19747 = vst [vmem:[#allocation205_spill] sm:$0xff] %v17373_v52  ;;  %v17377_v46 = vpack.c.bf16 %v4251_v56, %v4244_v54  ;;  %v3365_v15 = vsub.f32 %v17067_v60, %v19200_v41  ;;  %v19749_v54 = vld [vmem:[#allocation170_spill] sm:$0xff]  ;;  %v19751_v41 = vld [vmem:[#allocation152_spill] sm:$0xff]  ;;  %v17406_v30 = vpack.c.bf16 %v17131_v27, %v17124_v16 }
 0x2fa   :  { %19746 = vst [vmem:[#allocation204_spill] sm:$0xff] %v17371_v24  ;;  %v4257_v45 = vsub.f32 %v17359_v12, %v19199_v50  ;;  %v19206_v34 = vand.u32 4294901760, %v17371_v24  ;;  %v3372_v14 = vsub.f32 %v17086_v61, %v19203_v44  ;;  %v17393_v26 = vpack.c.bf16 %v17080_v7, %v19749_v54  ;;  %v19750_v50 = vld [vmem:[#allocation151_spill] sm:$0xff]  ;;  %v19752_v44 = vld [vmem:[#allocation153_spill] sm:$0xff] }
 0x2fb   :  { %19748 = vst [vmem:[#allocation206_spill] sm:$0xff] %v17377_v46  ;;  %v17395_v17 = vpack.c.bf16 %v3485_v9, %v3478_v0  ;;  %v3366_v46 = vand.u32 4294901760, %v3365_v15  ;;  %v17414_v9 = vpack.c.bf16 %v17170_v5, %v17156_v10  ;;  %v17450_v0 = vpack.c.bf16 %v17330_v29, %v17319_v21 }
 0x2fc   :  { %v4258_v56 = vand.u32 4294901760, %v4257_v45  ;;  %v4264_v47 = vsub.f32 %v17371_v24, %v19206_v34  ;;  %v3373_v53 = vand.u32 4294901760, %v3372_v14  ;;  %v17458_v14 = vpack.c.bf16 %v17371_v24, %v17359_v12  ;;  %v69_v34 = vld [vmem:[%s18672_s3] sm:$0x1] }
 0x2fe   :  { %v4265_v7 = vand.u32 4294901760, %v4264_v47  ;;  %v17416_v15 = vpack.c.bf16 %v3373_v53, %v3366_v46  ;;  %v17424_v47 = vpack.c.bf16 %v17207_v57, %v17202_v59  ;;  %v17434_v53 = vpack.c.bf16 %v17251_v22, %v17239_v58  ;;  %19753 = vst [vmem:[#allocation151_spill] sm:$0xff] %v17458_v14  ;;  %v19754_v46 = vld [vmem:[#allocation8_spill] sm:$0xff] }
 0x2ff   :  { %v17466_v24 = vsub.s32 0, %v19754_v46 }
 0x300   :  { %v17426_v45 = vpack.c.bf16 %v4265_v7, %v4258_v56  ;;  %v17442_v7 = vpack.c.bf16 %v17290_v2, %v17279_v36 }
 0x301   :  { %19755 = vst [vmem:[#allocation152_spill] sm:$0xff] %v17466_v24 }
 0x382   :  { %v2408_v52 = vpop.f32.mrb[24].mxu1 }
 0x383   :  { %v2412_v2 = vmul.f32 0.001953125, %v2408_v52  ;;  %v11043_v51 = vpop.f32.mrb[25].mxu1 }
 0x384   :  { %v3050_v36 = vpop.f32.mrb[2].mxu0  ;;  %v70_v51 = vld [vmem:[%s18672_s3 + $0x1] sm:$0x1] }
 0x385   :  { %v3055_v22 = vmul.f32 %v2412_v2, %v2412_v2  ;;  %v3054_v29 = vmul.f32 0.001953125, %v3050_v36  ;;  %v11253_v21 = vpop.f32.mrb[3].mxu0 }
 0x387   :  { %v3056_v58 = vsub.f32 %v3054_v29, %v3055_v22  ;;  %v19756_v22 = vld [vmem:[#allocation131_spill] sm:$0xff] }
 0x389   :  { %v3057_v57 = vadd.f32 1e-05, %v3056_v58 }
 0x38b   :  { %14633 = vrsqrt.f32 %v3057_v57  ;;  %v19757_v57 = vld [vmem:[#allocation132_spill] sm:$0xff] }
 0x395   :  { %v14634_v12 = vpop.eup %14633 }
 0x396   :  { %v3059_v59 = vmul.f32 %v14634_v12, %v69_v34 }
 0x398   :  { %v3060_v52 = vmul.f32 %v3059_v59, %v2412_v2  ;;  %v3065_v36 = vrot.slane %v3059_v59, %v17466_v24 }
 0x39a   :  { %v3061_v21 = vsub.f32 %v70_v51, %v3060_v52  ;;  %v3066_v58 = vmul.f32 %v19756_v22, %v3065_v36  ;;  %v3067_v29 = vmul.f32 %v19757_v57, %v3065_v36 }
 0x39c   :  { %v3071_v56 = vrot.slane %v3061_v21, %v17466_v24 }
 0x39e   :  { %v3072_v5 = vadd.f32 %v3071_v56, %v3066_v58  ;;  %v3073_v10 = vadd.f32 %v3071_v56, %v3067_v29 }
 0x3a0   :  { %v3074_v27 = vmax.f32 %v3072_v5, 0.0  ;;  %v3075_v16 = vmax.f32 %v3073_v10, 0.0 }
 0x3a2   :  { %v17475_v54 = vand.u32 4294901760, %v3074_v27  ;;  %v3082_v34 = vrot.slane %v3074_v27, 1  ;;  %v3083_v12 = vrot.slane %v3075_v16, 1  ;;  %v3076_v60 = vrot.slane %v3074_v27, 7 }
 0x3a3   :  { %v3077_v61 = vrot.slane %v3075_v16, 7  ;;  %v17477_v2 = vand.u32 4294901760, %v3075_v16 }
 0x3a4   :  { %v17480_v59 = vsub.f32 %v3074_v27, %v17475_v54  ;;  %v3084_v51 = vsel %vm84_vm2, %v3082_v34, %v3083_v12  ;;  %v3085_v52 = vsel %vm84_vm2, %v3083_v12, %v3082_v34 }
 0x3a5   :  { %v17486_v56 = vand.u32 4294901760, %v3084_v51  ;;  %v3079_v10 = vsel %vm77_vm0, %v3077_v61, %v3076_v60  ;;  %v3087_v36 = vsel %vm64_vm3, %v3085_v52, 0.0  ;;  %v17493_v21 = vsub.f32 %v3075_v16, %v17477_v2 }
 0x3a6   :  { %v19226_v27 = vand.u32 4294901760, %v17480_v59  ;;  %v3080_v58 = vsel %vm53_vm1, %v3079_v10, 0.0  ;;  %v17498_v57 = vand.u32 4294901760, %v3087_v36  ;;  %v3078_v29 = vsel %vm77_vm0, %v3076_v60, %v3077_v61 }
 0x3a7   :  { %v17503_v34 = vsub.f32 %v3084_v51, %v17486_v56  ;;  %v17505_v12 = vand.u32 4294901760, %v3080_v58  ;;  %v17507_v5 = vand.u32 4294901760, %v3078_v29  ;;  %v19236_v10 = vand.u32 4294901760, %v17493_v21 }
 0x3a8   :  { %v3235_v16 = vsub.f32 %v17480_v59, %v19226_v27  ;;  %v17513_v52 = vsub.f32 %v3087_v36, %v17498_v57 }
 0x3a9   :  { %v19233_v22 = vand.u32 4294901760, %v17503_v34  ;;  %v17518_v60 = vsub.f32 %v3080_v58, %v17505_v12  ;;  %v17521_v61 = vsub.f32 %v3078_v29, %v17507_v5  ;;  %v3250_v29 = vsub.f32 %v17493_v21, %v19236_v10 }
 0x3aa   :  { %v3236_v51 = vand.u32 4294901760, %v3235_v16  ;;  %v19235_v46 = vand.u32 4294901760, %v17513_v52 }
 0x3ab   :  { %v4138_v27 = vsub.f32 %v17503_v34, %v19233_v22  ;;  %v19238_v36 = vand.u32 4294901760, %v17518_v60  ;;  %v19237_v24 = vand.u32 4294901760, %v17521_v61  ;;  %v3251_v14 = vand.u32 4294901760, %v3250_v29  ;;  %v19770_v29 = vld [vmem:[#allocation196_spill] sm:$0xff] }
 0x3ac   :  { %3237 = vmatprep.mubr.f32.mxu1 %v3236_v51  ;;  %v4148_v58 = vsub.f32 %v17513_v52, %v19235_v46  ;;  %v19760_v46 = vld [vmem:[#allocation175_spill] sm:$0xff] }
 0x3ad   :  { %v4139_v16 = vand.u32 4294901760, %v4138_v27  ;;  %v3241_v25 = vsub.f32 %v17518_v60, %v19238_v36  ;;  %v3256_v51 = vsub.f32 %v17521_v61, %v19237_v24  ;;  %v19761_v27 = vld [vmem:[#allocation177_spill] sm:$0xff]  ;;  %v19822_v24 = vld [vmem:[#allocation164_spill] sm:$0xff] }
 0x3ae   :  { %v4149_v38 = vand.u32 4294901760, %v4148_v58  ;;  %v19762_v58 = vld [vmem:[#allocation181_spill] sm:$0xff]  ;;  %v19823_v36 = vld [vmem:[#allocation168_spill] sm:$0xff] }
 0x3af   :  { %11286 = vmatprep.mubr.f32.mxu0 %v4139_v16  ;;  %v3242_v22 = vand.u32 4294901760, %v3241_v25  ;;  %v3257_v10 = vand.u32 4294901760, %v3256_v51  ;;  %v19763_v25 = vld [vmem:[#allocation180_spill] sm:$0xff]  ;;  %v19772_v51 = vld [vmem:[#allocation195_spill] sm:$0xff] }
 0x3b0   :  { %11287 = vmatmul.mubr.f32.vlgmr.msra.gmra.mrb[4].mxu0 %v4149_v38  ;;  %v19764_v38 = vld [vmem:[#allocation182_spill] sm:$0xff]  ;;  %v19771_v16 = vld [vmem:[#allocation192_spill] sm:$0xff] }
 0x3b1   :  { %3243 = vmatmul.mubr.f32.vlgmr.msra.gmra.mrb[26].mxu1 %v3242_v22  ;;  %13413 = vmatpush3.bf16.msra.mxu0 %v17133_v1  ;;  %v19765_v1 = vld [vmem:[#allocation185_spill] sm:$0xff]  ;;  %v19768_v22 = vld [vmem:[#allocation187_spill] sm:$0xff] }
 0x3b2   :  { %13221 = vmatpush3.bf16.msra.mxu1 %v19760_v46  ;;  %3252 = vmatprep.mubr.f32.mxu1 %v3251_v14  ;;  %v19766_v14 = vld [vmem:[#allocation186_spill] sm:$0xff] }
 0x3b3   :  { %11321 = vmatprep.mubr.f32.mxu0 %v17486_v56  ;;  %13223 = vmatprep.subr.bf16.mxu1 %v19761_v27  ;;  %v19767_v46 = vld [vmem:[#allocation190_spill] sm:$0xff]  ;;  %v19773_v27 = vld [vmem:[#allocation201_spill] sm:$0xff] }
 0x3b4   :  { %13415 = vmatprep.subr.bf16.mxu0 %v19762_v58 }
 0x3b5   :  { %3258 = vmatmul.mubr.f32.gmra.mrb[28].mxu1 %v3257_v10  ;;  %13417 = vmatpush3.bf16.msra.mxu0 %v19762_v58  ;;  %v19769_v10 = vld [vmem:[#allocation191_spill] sm:$0xff]  ;;  %v19774_v58 = vld [vmem:[#allocation197_spill] sm:$0xff] }
 0x3b6   :  { %13225 = vmatpush3.bf16.msra.mxu1 %v19763_v25  ;;  %3488 = vmatprep.mubr.f32.mxu1 %v17475_v54  ;;  %v19775_v25 = vld [vmem:[#allocation200_spill] sm:$0xff] }
 0x3b7   :  { %13227 = vmatprep.subr.bf16.mxu1 %v19764_v38  ;;  %13419 = vmatprep.subr.bf16.mxu0 %v19765_v1  ;;  %v19776_v38 = vld [vmem:[#allocation206_spill] sm:$0xff] }
 0x3b9   :  { %13421 = vmatpush3.bf16.msra.mxu0 %v19765_v1  ;;  %v19777_v1 = vld [vmem:[#allocation202_spill] sm:$0xff] }
 0x3ba   :  { %13229 = vmatpush3.bf16.msra.mxu1 %v19766_v14  ;;  %13423 = vmatprep.subr.bf16.mxu0 %v19767_v46  ;;  %v19778_v14 = vld [vmem:[#allocation205_spill] sm:$0xff] }
 0x3bb   :  { %13231 = vmatprep.subr.bf16.mxu1 %v19768_v22  ;;  %v19784_v22 = vpack.c.bf16 %v16948_v6, %v16946_v28 }
 0x3bd   :  { %13425 = vmatpush3.bf16.msra.mxu0 %v19767_v46  ;;  %v19779_v46 = vpack.c.bf16 %v16923_v23, %v16918_v35 }
 0x3be   :  { %13233 = vmatpush3.bf16.msra.mxu1 %v19769_v10  ;;  %13427 = vmatprep.subr.bf16.mxu0 %v19770_v29  ;;  %v19786_v10 = vpack.c.bf16 %v16966_v42, %v16964_v37 }
 0x3bf   :  { %13235 = vmatprep.subr.bf16.mxu1 %v19771_v16  ;;  %v19790_v16 = vpack.c.bf16 %v17024_v19, %v17022_v40 }
 0x3c1   :  { %13429 = vmatpush3.bf16.msra.mxu0 %v19770_v29  ;;  %v19788_v29 = vpack.c.bf16 %v16993_v49, %v16991_v18 }
 0x3c2   :  { %13237 = vmatpush3.bf16.msra.mxu1 %v19772_v51  ;;  %13431 = vmatprep.subr.bf16.mxu0 %v19773_v27  ;;  %v19792_v51 = vpack.c.bf16 %v17052_v8, %v17047_v63 }
 0x3c3   :  { %13239 = vmatprep.subr.bf16.mxu1 %v19774_v58  ;;  %v19794_v58 = vld [vmem:[#allocation167_spill] sm:$0xff] }
 0x3c5   :  { %13433 = vmatpush3.bf16.msra.mxu0 %v19773_v27  ;;  %v19793_v27 = vld [vmem:[#allocation151_spill] sm:$0xff] }
 0x3c6   :  { %13241 = vmatpush3.bf16.msra.mxu1 %v19775_v25  ;;  %13435 = vmatprep.subr.bf16.mxu0 %v19776_v38 }
 0x3c7   :  { %13243 = vmatprep.subr.bf16.mxu1 %v19777_v1  ;;  %v19798_v1 = vld [vmem:[#allocation169_spill] sm:$0xff] }
 0x3c9   :  { %13437 = vmatpush3.bf16.msra.mxu0 %v19776_v38  ;;  %v19797_v38 = vld [vmem:[#allocation173_spill] sm:$0xff] }
 0x3ca   :  { %13245 = vmatpush3.bf16.msra.mxu1 %v19778_v14  ;;  %13439 = vmatprep.subr.bf16.mxu0 %v17426_v45  ;;  %v19799_v14 = vpack.c.bf16 %v19797_v38, %v19798_v1 }
 0x3cb   :  { %13247 = vmatprep.subr.bf16.mxu1 %v17395_v17  ;;  %v19780_v17 = vpack.c.bf16 %v19751_v41, %v19750_v50 }
 0x3cd   :  { %13441 = vmatpush3.bf16.msra.mxu0 %v17426_v45  ;;  %v19781_v45 = vpack.c.bf16 %v16933_v13, %v19752_v44 }
 0x3ce   :  { %13249 = vmatpush3.bf16.msra.mxu1 %v17416_v15  ;;  %13443 = vmatprep.subr.bf16.mxu0 %v17393_v26  ;;  %v19783_v15 = vpack.c.bf16 %v16944_v11, %v16942_v4 }
 0x3cf   :  { %13251 = vmatprep.subr.bf16.mxu1 %v19779_v46  ;;  %v19800_v46 = vld [vmem:[#allocation142_spill] sm:$0xff] }
 0x3d0   :  { %11322 = vmatmul.mubr.f32.vlgmr.msra.gmra.mrb[4].mxu0 %v17498_v57 }
 0x3d1   :  { %3490 = vmatmul.mubr.f32.vlgmr.msra.gmra.mrb[30].mxu1 %v17505_v12  ;;  %13445 = vmatpush3.bf16.msra.mxu0 %v17393_v26  ;;  %v19782_v26 = vpack.c.bf16 %v16937_v31, %v16935_v39 }
 0x3d2   :  { %3495 = vmatprep.mubr.f32.mxu1 %v17477_v2  ;;  %13253 = vmatpush3.bf16.msra.mxu1 %v19780_v17  ;;  %v19801_v17 = vld [vmem:[#allocation141_spill] sm:$0xff] }
 0x3d3   :  { %11356 = vmatprep.mubr.f32.mxu0 %v17503_v34  ;;  %13255 = vmatprep.subr.bf16.mxu1 %v19781_v45  ;;  %v19803_v45 = vand.u32 4294901760, %v17503_v34  ;;  %v19810_v34 = vld [vmem:[#allocation149_spill] sm:$0xff] }
 0x3d4   :  { %13447 = vmatprep.subr.bf16.mxu0 %v17406_v30 }
 0x3d5   :  { %3497 = vmatmul.mubr.f32.gmra.mrb[32].mxu1 %v17507_v5  ;;  %13449 = vmatpush3.bf16.msra.mxu0 %v17406_v30  ;;  %v19785_v30 = vpack.c.bf16 %v16954_v3, %v16952_v43 }
 0x3d6   :  { %13257 = vmatpush3.bf16.msra.mxu1 %v19782_v26  ;;  %3632 = vmatprep.mubr.f32.mxu1 %v17480_v59  ;;  %v19804_v26 = vld [vmem:[#allocation144_spill] sm:$0xff] }
 0x3d7   :  { %13259 = vmatprep.subr.bf16.mxu1 %v19783_v15  ;;  %13451 = vmatprep.subr.bf16.mxu0 %v17414_v9  ;;  %v19805_v15 = vld [vmem:[#allocation145_spill] sm:$0xff] }
 0x3d9   :  { %13453 = vmatpush3.bf16.msra.mxu0 %v17414_v9  ;;  %v19787_v9 = vpack.c.bf16 %v16981_v32, %v16979_v20 }
 0x3da   :  { %13261 = vmatpush3.bf16.msra.mxu1 %v19784_v22  ;;  %13455 = vmatprep.subr.bf16.mxu0 %v17424_v47  ;;  %v19806_v22 = vld [vmem:[#allocation146_spill] sm:$0xff] }
 0x3db   :  { %13263 = vmatprep.subr.bf16.mxu1 %v19785_v30  ;;  %v19807_v30 = vand.u32 4294901760, %v17480_v59  ;;  %v19815_v59 = vld [vmem:[#allocation156_spill] sm:$0xff] }
 0x3dd   :  { %13457 = vmatpush3.bf16.msra.mxu0 %v17424_v47  ;;  %v19789_v47 = vpack.c.bf16 %v17009_v33, %v16998_v62 }
 0x3de   :  { %13265 = vmatpush3.bf16.msra.mxu1 %v19786_v10  ;;  %13459 = vmatprep.subr.bf16.mxu0 %v17434_v53  ;;  %v19808_v10 = vld [vmem:[#allocation147_spill] sm:$0xff] }
 0x3df   :  { %13267 = vmatprep.subr.bf16.mxu1 %v19787_v9  ;;  %v19809_v9 = vld [vmem:[#allocation148_spill] sm:$0xff] }
 0x3e1   :  { %13461 = vmatpush3.bf16.msra.mxu0 %v17434_v53  ;;  %v19791_v53 = vpack.c.bf16 %v17034_v55, %v17032_v48 }
 0x3e2   :  { %13269 = vmatpush3.bf16.msra.mxu1 %v19788_v29  ;;  %13463 = vmatprep.subr.bf16.mxu0 %v17442_v7  ;;  %v19811_v29 = vld [vmem:[#allocation154_spill] sm:$0xff] }
 0x3e3   :  { %13271 = vmatprep.subr.bf16.mxu1 %v19789_v47  ;;  %v19812_v47 = vld [vmem:[#allocation150_spill] sm:$0xff] }
 0x3e5   :  { %13465 = vmatpush3.bf16.msra.mxu0 %v17442_v7  ;;  %v19795_v7 = vld [vmem:[#allocation166_spill] sm:$0xff] }
 0x3e6   :  { %13273 = vmatpush3.bf16.msra.mxu1 %v19790_v16  ;;  %13467 = vmatprep.subr.bf16.mxu0 %v17450_v0  ;;  %v19796_v25 = vpack.c.bf16 %v19794_v58, %v19795_v7  ;;  %v19813_v16 = vld [vmem:[#allocation155_spill] sm:$0xff] }
 0x3e7   :  { %13275 = vmatprep.subr.bf16.mxu1 %v19791_v53  ;;  %v19814_v53 = vld [vmem:[#allocation157_spill] sm:$0xff] }
 0x3e9   :  { %13469 = vmatpush3.bf16.msra.mxu0 %v17450_v0  ;;  %v19802_v0 = vld [vmem:[#allocation143_spill] sm:$0xff] }
 0x3ea   :  { %13277 = vmatpush3.bf16.msra.mxu1 %v19792_v51  ;;  %13471 = vmatprep.subr.bf16.mxu0 %v19793_v27  ;;  %v19816_v51 = vld [vmem:[#allocation158_spill] sm:$0xff] }
 0x3eb   :  { %13279 = vmatprep.subr.bf16.mxu1 %v19796_v25  ;;  %v19818_v25 = vld [vmem:[#allocation159_spill] sm:$0xff] }
 0x3ed   :  { %13473 = vmatpush3.bf16.msra.mxu0 %v19793_v27  ;;  %v19817_v27 = vld [vmem:[#allocation160_spill] sm:$0xff] }
 0x3ee   :  { %13281 = vmatpush3.bf16.msra.mxu1 %v19799_v14  ;;  %13475 = vmatprep.subr.bf16.mxu0 %v19800_v46  ;;  %v19819_v14 = vld [vmem:[#allocation161_spill] sm:$0xff] }
 0x3ef   :  { %13283 = vmatprep.subr.bf16.mxu1 %v19801_v17 }
 0x3f0   :  { %11357 = vmatmul.mubr.f32.vlgmr.msra.gmra.mrb[4].mxu0 %v17513_v52 }
 0x3f1   :  { %3635 = vmatmul.mubr.f32.vlgmr.msra.gmra.mrb[34].mxu1 %v17518_v60  ;;  %13477 = vmatpush3.bf16.msra.mxu0 %v19800_v46 }
 0x3f2   :  { %3641 = vmatprep.mubr.f32.mxu1 %v17493_v21  ;;  %13285 = vmatpush3.bf16.msra.mxu1 %v19802_v0 }
 0x3f3   :  { %11391 = vmatprep.mubr.f32.mxu0 %v19803_v45  ;;  %13287 = vmatprep.subr.bf16.mxu1 %v19804_v26  ;;  %v19820_v45 = vld [vmem:[#allocation163_spill] sm:$0xff] }
 0x3f4   :  { %13479 = vmatprep.subr.bf16.mxu0 %v19805_v15 }
 0x3f5   :  { %3644 = vmatmul.mubr.f32.gmra.mrb[36].mxu1 %v17521_v61  ;;  %13481 = vmatpush3.bf16.msra.mxu0 %v19805_v15 }
 0x3f6   :  { %13289 = vmatpush3.bf16.msra.mxu1 %v19806_v22  ;;  %3748 = vmatprep.mubr.f32.mxu1 %v19807_v30  ;;  %v19821_v30 = vld [vmem:[#allocation162_spill] sm:$0xff] }
 0x3f7   :  { %13291 = vmatprep.subr.bf16.mxu1 %v19808_v10  ;;  %13483 = vmatprep.subr.bf16.mxu0 %v19809_v9 }
 0x3f9   :  { %13485 = vmatpush3.bf16.msra.mxu0 %v19809_v9 }
 0x3fa   :  { %13293 = vmatpush3.bf16.msra.mxu1 %v19810_v34  ;;  %13487 = vmatprep.subr.bf16.mxu0 %v19811_v29 }
 0x3fb   :  { %13295 = vmatprep.subr.bf16.mxu1 %v19812_v47 }
 0x3fd   :  { %13489 = vmatpush3.bf16.msra.mxu0 %v19811_v29 }
 0x3fe   :  { %13297 = vmatpush3.bf16.msra.mxu1 %v19813_v16  ;;  %13491 = vmatprep.subr.bf16.mxu0 %v19814_v53 }
 0x3ff   :  { %13299 = vmatprep.subr.bf16.mxu1 %v19815_v59  ;;  %v19824_v59 = vld [vmem:[#allocation170_spill] sm:$0xff] }
 0x401   :  { %13493 = vmatpush3.bf16.msra.mxu0 %v19814_v53  ;;  %v19826_v53 = vld [vmem:[#allocation171_spill] sm:$0xff] }
 0x402   :  { %13301 = vmatpush3.bf16.msra.mxu1 %v19816_v51  ;;  %13495 = vmatprep.subr.bf16.mxu0 %v19817_v27  ;;  %v19825_v51 = vand.u32 4294901760, %v19824_v59  ;;  %v19827_v16 = vand.u32 4294901760, %v19826_v53  ;;  %v19835_v53 = vand.u32 4294901760, %v16933_v13  ;;  %v19844_v13 = vand.u32 4294901760, %v16937_v31 }
 0x403   :  { %13303 = vmatprep.subr.bf16.mxu1 %v19818_v25  ;;  %v19828_v25 = vld [vmem:[#allocation165_spill] sm:$0xff]  ;;  %v19853_v31 = vand.u32 4294901760, %v16948_v6  ;;  %v19861_v6 = vand.u32 4294901760, %v16966_v42 }
 0x404   :  { %v13506_v47 = vpack.c.bf16 %v19827_v16, %v19825_v51  ;;  %v19834_v16 = vand.u32 4294901760, %v19752_v44  ;;  %v19845_v44 = vand.u32 4294901760, %v16942_v4 }
 0x405   :  { %13497 = vmatpush3.bf16.msra.mxu0 %v19817_v27  ;;  %v19829_v27 = vand.u32 4294901760, %v16918_v35  ;;  %v19836_v35 = vand.u32 4294901760, %v17513_v52  ;;  %v19846_v52 = vand.u32 4294901760, %v16944_v11  ;;  %v19854_v11 = vld [vmem:[#allocation183_spill] sm:$0xff] }
 0x406   :  { %13305 = vmatpush3.bf16.msra.mxu1 %v19819_v14  ;;  %13499 = vmatprep.subr.bf16.mxu0 %v19820_v45  ;;  %v19830_v14 = vand.u32 4294901760, %v16923_v23  ;;  %v13318_v51 = vpack.c.bf16 %v19835_v53, %v19834_v16  ;;  %v19837_v23 = vld [vmem:[#allocation174_spill] sm:$0xff]  ;;  %v19856_v16 = vld [vmem:[#allocation184_spill] sm:$0xff] }
 0x407   :  { %13307 = vmatprep.subr.bf16.mxu1 %v19821_v30  ;;  %v19831_v30 = vld [vmem:[#allocation172_spill] sm:$0xff]  ;;  %v19857_v53 = vand.u32 4294901760, %v19856_v16  ;;  %v19884_v16 = vand.u32 4294901760, %v17047_v63  ;;  %v19893_v63 = vand.u32 4294901760, %v19797_v38  ;;  %v19897_v38 = vld [vmem:[#allocation157_spill] sm:$0xff] }
 0x408   :  { %v13314_v29 = vpack.c.bf16 %v19830_v14, %v19829_v27  ;;  %v19838_v27 = vand.u32 4294901760, %v19837_v23  ;;  %v19839_v14 = vld [vmem:[#allocation176_spill] sm:$0xff] }
 0x409   :  { %13501 = vmatpush3.bf16.msra.mxu0 %v19820_v45  ;;  %v19833_v45 = vand.u32 4294901760, %v19751_v41 }
 0x40a   :  { %13309 = vmatpush3.bf16.msra.mxu1 %v19822_v24  ;;  %13503 = vmatprep.subr.bf16.mxu0 %v19823_v36  ;;  %v19832_v24 = vand.u32 4294901760, %v19750_v50  ;;  %v19842_v50 = vand.u32 4294901760, %v17493_v21 }
 0x40b   :  { %13311 = vmatprep.subr.bf16.mxu1 %v19828_v25  ;;  %v19840_v25 = vand.u32 4294901760, %v19839_v14 }
 0x40c   :  { %v13316_v59 = vpack.c.bf16 %v19833_v45, %v19832_v24  ;;  %v19843_v24 = vand.u32 4294901760, %v16935_v39  ;;  %v19851_v45 = vand.u32 4294901760, %v17521_v61  ;;  %v19852_v39 = vand.u32 4294901760, %v16946_v28 }
 0x40d   :  { %13505 = vmatpush3.bf16.msra.mxu0 %v19823_v36  ;;  %v19841_v36 = vand.u32 4294901760, %v17518_v60  ;;  %v19847_v60 = vld [vmem:[#allocation178_spill] sm:$0xff]  ;;  %v19859_v61 = vand.u32 4294901760, %v16954_v3  ;;  %v19860_v28 = vand.u32 4294901760, %v16964_v37  ;;  %v19869_v37 = vand.u32 4294901760, %v16993_v49 }
 0x40e   :  { %13313 = vmatpush3.bf16.msra.mxu1 %v19831_v30  ;;  %13507 = vmatprep.subr.bf16.mxu0 %v13506_v47  ;;  %v13510_v30 = vpack.c.bf16 %v19840_v25, %v19838_v27  ;;  %v13320_v41 = vpack.c.bf16 %v19844_v13, %v19843_v24  ;;  %v13324_v4 = vpack.c.bf16 %v19853_v31, %v19852_v39  ;;  %v19862_v27 = vld [vmem:[#allocation188_spill] sm:$0xff]  ;;  %v19880_v31 = vld [vmem:[#allocation199_spill] sm:$0xff] }
 0x40f   :  { %13315 = vmatprep.subr.bf16.mxu1 %v13314_v29  ;;  %v13322_v29 = vpack.c.bf16 %v19846_v52, %v19845_v44  ;;  %v13328_v23 = vpack.c.bf16 %v19861_v6, %v19860_v28  ;;  %v19863_v14 = vand.u32 4294901760, %v19862_v27  ;;  %v19868_v44 = vand.u32 4294901760, %v16991_v18  ;;  %v19870_v52 = vld [vmem:[#allocation193_spill] sm:$0xff]  ;;  %v19910_v27 = vld [vmem:[#allocation34_spill] sm:$0xff] }
 0x410   :  { %11392 = vmatmul.mubr.f32.vlgmr.msra.gmra.mrb[4].mxu0 %v19836_v35  ;;  %v19858_v35 = vand.u32 4294901760, %v16952_v43  ;;  %v19867_v43 = vand.u32 4294901760, %v16981_v32  ;;  %v19877_v18 = vand.u32 4294901760, %v17024_v19  ;;  %v19890_v28 = vand.u32 4294901760, %v19795_v7  ;;  %v19896_v7 = vld [vmem:[#allocation155_spill] sm:$0xff] }
 0x411   :  { %3752 = vmatmul.mubr.f32.vlgmr.msra.gmra.mrb[38].mxu1 %v19841_v36  ;;  %13509 = vmatpush3.bf16.msra.mxu0 %v13506_v47  ;;  %v19848_v36 = vand.u32 4294901760, %v19847_v60  ;;  %v19849_v47 = vld [vmem:[#allocation179_spill] sm:$0xff]  ;;  %v13332_v42 = vpack.c.bf16 %v19869_v37, %v19868_v44  ;;  %v19872_v60 = vld [vmem:[#allocation194_spill] sm:$0xff]  ;;  %v19892_v6 = vand.u32 4294901760, %v19798_v1  ;;  %v19898_v1 = vld [vmem:[#allocation156_spill] sm:$0xff] }
 0x412   :  { %3759 = vmatprep.mubr.f32.mxu1 %v19842_v50  ;;  %13317 = vmatpush3.bf16.msra.mxu1 %v13316_v59  ;;  %v19850_v25 = vand.u32 4294901760, %v19849_v47  ;;  %v19855_v59 = vand.u32 4294901760, %v19854_v11  ;;  %v19864_v50 = vld [vmem:[#allocation189_spill] sm:$0xff] }
 0x413   :  { %11426 = vmatprep.mubr.f32.mxu0 %v17486_v56  ;;  %13319 = vmatprep.subr.bf16.mxu1 %v13318_v51  ;;  %v19865_v24 = vand.u32 4294901760, %v19864_v50  ;;  %v19912_v50 = vld [vmem:[#allocation74_spill] sm:$0xff] }
 0x414   :  { %v13514_v21 = vpack.c.bf16 %v19850_v25, %v19848_v36  ;;  %13511 = vmatprep.subr.bf16.mxu0 %v13510_v30  ;;  %v13518_v51 = vpack.c.bf16 %v19857_v53, %v19855_v59  ;;  %v19873_v36 = vand.u32 4294901760, %v19872_v60  ;;  %v19874_v25 = vand.u32 4294901760, %v16998_v62  ;;  %v19886_v53 = vld [vmem:[#allocation203_spill] sm:$0xff] }
 0x415   :  { %3763 = vmatmul.mubr.f32.gmra.mrb[40].mxu1 %v19851_v45  ;;  %13513 = vmatpush3.bf16.msra.mxu0 %v13510_v30  ;;  %v13326_v30 = vpack.c.bf16 %v19859_v61, %v19858_v35  ;;  %v13522_v13 = vpack.c.bf16 %v19865_v24, %v19863_v14  ;;  %v19878_v45 = vld [vmem:[#allocation198_spill] sm:$0xff]  ;;  %v19882_v59 = vand.u32 4294901760, %v17032_v48  ;;  %v19883_v62 = vand.u32 4294901760, %v17034_v55  ;;  %v19888_v35 = vld [vmem:[#allocation204_spill] sm:$0xff]  ;;  %v19917_v24 = vld [vmem:[#allocation57_spill] sm:$0xff] }
 0x416   :  { %13321 = vmatpush3.bf16.msra.mxu1 %v13320_v41  ;;  %3929 = vmatprep.mubr.f32.mxu1 %v17475_v54  ;;  %v19866_v41 = vand.u32 4294901760, %v16979_v20  ;;  %v19875_v20 = vand.u32 4294901760, %v17009_v33  ;;  %v19879_v39 = vand.u32 4294901760, %v19878_v45  ;;  %v19889_v61 = vand.u32 4294901760, %v19888_v35 }
 0x417   :  { %13323 = vmatprep.subr.bf16.mxu1 %v13322_v29  ;;  %13515 = vmatprep.subr.bf16.mxu0 %v13514_v21  ;;  %v19871_v29 = vand.u32 4294901760, %v19870_v52  ;;  %v13338_v33 = vpack.c.bf16 %v19883_v62, %v19882_v59  ;;  %v19891_v48 = vand.u32 4294901760, %v19794_v58  ;;  %v19895_v58 = vld [vmem:[#allocation150_spill] sm:$0xff]  ;;  %v19911_v14 = vmov 0.0  }
 0x418   :  { %v13330_v3 = vpack.c.bf16 %v19867_v43, %v19866_v41  ;;  %v13334_v32 = vpack.c.bf16 %v19875_v20, %v19874_v25 }
 0x419   :  { %13517 = vmatpush3.bf16.msra.mxu0 %v13514_v21  ;;  %v13526_v47 = vpack.c.bf16 %v19873_v36, %v19871_v29  ;;  %v19876_v21 = vand.u32 4294901760, %v17022_v40  ;;  %v19885_v40 = vand.u32 4294901760, %v17052_v8  ;;  %v13342_v55 = vpack.c.bf16 %v19891_v48, %v19890_v28 }
 0x41a   :  { %13325 = vmatpush3.bf16.msra.mxu1 %v13324_v4  ;;  %13519 = vmatprep.subr.bf16.mxu0 %v13518_v51  ;;  %v19881_v4 = vand.u32 4294901760, %v19880_v31  ;;  %v13344_v8 = vpack.c.bf16 %v19893_v63, %v19892_v6 }
 0x41b   :  { %13327 = vmatprep.subr.bf16.mxu1 %v13326_v30  ;;  %v13336_v49 = vpack.c.bf16 %v19877_v18, %v19876_v21  ;;  %v13340_v19 = vpack.c.bf16 %v19885_v40, %v19884_v16 }
 0x41c   :  { %v13530_v11 = vpack.c.bf16 %v19881_v4, %v19879_v39 }
 0x41d   :  { %13521 = vmatpush3.bf16.msra.mxu0 %v13518_v51  ;;  %v19887_v51 = vand.u32 4294901760, %v19886_v53 }
 0x41e   :  { %13329 = vmatpush3.bf16.msra.mxu1 %v13328_v23  ;;  %13523 = vmatprep.subr.bf16.mxu0 %v13522_v13  ;;  %v19909_v23 = vmov 0.0|0.0  }
 0x41f   :  { %13331 = vmatprep.subr.bf16.mxu1 %v13330_v3  ;;  %v13534_v30 = vpack.c.bf16 %v19889_v61, %v19887_v51 }
 0x421   :  { %13525 = vmatpush3.bf16.msra.mxu0 %v13522_v13  ;;  %v19918_v13 = vld [vmem:[#allocation52_spill] sm:$0xff] }
 0x422   :  { %13333 = vmatpush3.bf16.msra.mxu1 %v13332_v42  ;;  %13527 = vmatprep.subr.bf16.mxu0 %v13526_v47 }
 0x423   :  { %13335 = vmatprep.subr.bf16.mxu1 %v13334_v32 }
 0x425   :  { %13529 = vmatpush3.bf16.msra.mxu0 %v13526_v47 }
 0x426   :  { %13337 = vmatpush3.bf16.msra.mxu1 %v13336_v49  ;;  %13531 = vmatprep.subr.bf16.mxu0 %v13530_v11 }
 0x427   :  { %13339 = vmatprep.subr.bf16.mxu1 %v13338_v33 }
 0x429   :  { %13533 = vmatpush3.bf16.msra.mxu0 %v13530_v11 }
 0x42a   :  { %13341 = vmatpush3.bf16.msra.mxu1 %v13340_v19  ;;  %13535 = vmatprep.subr.bf16.mxu0 %v13534_v30 }
 0x42b   :  { %13343 = vmatprep.subr.bf16.mxu1 %v13342_v55 }
 0x42d   :  { %13537 = vmatpush3.bf16.msra.mxu0 %v13534_v30 }
 0x42e   :  { %13345 = vmatpush3.bf16.msra.mxu1 %v13344_v8  ;;  %13539 = vmatprep.subr.bf16.mxu0 %v19800_v46 }
 0x42f   :  { %13347 = vmatprep.subr.bf16.mxu1 %v19801_v17  ;;  %v19901_v17 = vld [vmem:[#allocation159_spill] sm:$0xff] }
 0x430   :  { %11427 = vmatmul.mubr.f32.vlgmr.msra.gmra.mrb[4].mxu0 %v17498_v57 }
 0x431   :  { %3931 = vmatmul.mubr.f32.vlgmr.msra.gmra.mrb[42].mxu1 %v17505_v12  ;;  %13541 = vmatpush3.bf16.msra.mxu0 %v19800_v46  ;;  %v19900_v46 = vld [vmem:[#allocation160_spill] sm:$0xff] }
 0x432   :  { %3936 = vmatprep.mubr.f32.mxu1 %v17477_v2  ;;  %13349 = vmatpush3.bf16.msra.mxu1 %v19802_v0  ;;  %v19902_v0 = vld [vmem:[#allocation161_spill] sm:$0xff] }
 0x433   :  { %11461 = vmatprep.mubr.f32.mxu0 %v17486_v56  ;;  %13351 = vmatprep.subr.bf16.mxu1 %v19804_v26  ;;  %v19894_v56 = vld [vmem:[#allocation154_spill] sm:$0xff]  ;;  %v19903_v26 = vld [vmem:[#allocation163_spill] sm:$0xff] }
 0x434   :  { %13543 = vmatprep.subr.bf16.mxu0 %v19805_v15 }
 0x435   :  { %3938 = vmatmul.mubr.f32.gmra.mrb[44].mxu1 %v17507_v5  ;;  %13545 = vmatpush3.bf16.msra.mxu0 %v19805_v15  ;;  %v19904_v15 = vld [vmem:[#allocation162_spill] sm:$0xff] }
 0x436   :  { %13353 = vmatpush3.bf16.msra.mxu1 %v19806_v22  ;;  %4040 = vmatprep.mubr.f32.mxu1 %v17475_v54  ;;  %v19899_v54 = vld [vmem:[#allocation158_spill] sm:$0xff]  ;;  %v19905_v22 = vld [vmem:[#allocation164_spill] sm:$0xff] }
 0x437   :  { %13355 = vmatprep.subr.bf16.mxu1 %v19808_v10  ;;  %13547 = vmatprep.subr.bf16.mxu0 %v19809_v9  ;;  %v19906_v10 = vld [vmem:[#allocation168_spill] sm:$0xff] }
 0x439   :  { %13549 = vmatpush3.bf16.msra.mxu0 %v19809_v9  ;;  %v19907_v9 = vld [vmem:[#allocation165_spill] sm:$0xff] }
 0x43a   :  { %13357 = vmatpush3.bf16.msra.mxu1 %v19810_v34  ;;  %13551 = vmatprep.subr.bf16.mxu0 %v19894_v56  ;;  %v19908_v34 = vld [vmem:[#allocation172_spill] sm:$0xff] }
 0x43b   :  { %13359 = vmatprep.subr.bf16.mxu1 %v19895_v58 }
 0x43d   :  { %13553 = vmatpush3.bf16.msra.mxu0 %v19894_v56 }
 0x43e   :  { %13361 = vmatpush3.bf16.msra.mxu1 %v19896_v7  ;;  %13555 = vmatprep.subr.bf16.mxu0 %v19897_v38 }
 0x43f   :  { %13363 = vmatprep.subr.bf16.mxu1 %v19898_v1 }
 0x441   :  { %13557 = vmatpush3.bf16.msra.mxu0 %v19897_v38 }
 0x442   :  { %13365 = vmatpush3.bf16.msra.mxu1 %v19899_v54  ;;  %13559 = vmatprep.subr.bf16.mxu0 %v19900_v46 }
 0x443   :  { %13367 = vmatprep.subr.bf16.mxu1 %v19901_v17 }
 0x445   :  { %13561 = vmatpush3.bf16.msra.mxu0 %v19900_v46 }
 0x446   :  { %13369 = vmatpush3.bf16.msra.mxu1 %v19902_v0  ;;  %13563 = vmatprep.subr.bf16.mxu0 %v19903_v26 }
 0x447   :  { %13371 = vmatprep.subr.bf16.mxu1 %v19904_v15 }
 0x449   :  { %13565 = vmatpush3.bf16.msra.mxu0 %v19903_v26 }
 0x44a   :  { %13373 = vmatpush3.bf16.msra.mxu1 %v19905_v22  ;;  %13567 = vmatprep.subr.bf16.mxu0 %v19906_v10 }
 0x44b   :  { %13375 = vmatprep.subr.bf16.mxu1 %v19907_v9 }
 0x44d   :  { %13569 = vmatpush3.bf16.msra.mxu0 %v19906_v10 }
 0x44e   :  { %13377 = vmatpush3.bf16.msra.mxu1 %v19908_v34  ;;  %13714 = vmatprep.subr.bf16.mxu0 %v19909_v23 }
 0x44f   :  { %13570 = vmatprep.subr.bf16.mxu1 %v19909_v23 }
 0x450   :  { %11462 = vmatmul.mubr.f32.vlgmr.msra.gmra.mrb[4].mxu0 %v17498_v57  ;;  %v19915_v57 = vld [vmem:[#allocation53_spill] sm:$0xff] }
 0x451   :  { %4042 = vmatmul.mubr.f32.vlgmr.msra.gmra.mrb[46].mxu1 %v17505_v12  ;;  %13716 = vmatpush3.bf16.msra.mxu0 %v19910_v27  ;;  %v19916_v12 = vld [vmem:[#allocation45_spill] sm:$0xff] }
 0x452   :  { %4047 = vmatprep.mubr.f32.mxu1 %v17477_v2  ;;  %13572 = vmatpush3.bf16.msra.mxu1 %v19910_v27  ;;  %v19913_v2 = vld [vmem:[#allocation50_spill] sm:$0xff] }
 0x453   :  { %13573 = vmatprep.subr.bf16.mxu1 %v19909_v23  ;;  %13717 = vmatprep.subr.bf16.mxu0 %v19909_v23 }
 0x454   :  { %11706 = vmatprep.mubr.msk.f32.mxu0 %vm14694_vm4, %v19911_v14 }
 0x455   :  { %4049 = vmatmul.mubr.f32.gmra.mrb[48].mxu1 %v17507_v5  ;;  %13719 = vmatpush3.bf16.msra.mxu0 %v19912_v50  ;;  %v19914_v5 = vld [vmem:[#allocation51_spill] sm:$0xff] }
 0x456   :  { %13575 = vmatpush3.bf16.msra.mxu1 %v19912_v50  ;;  %13720 = vmatprep.subr.bf16.mxu0 %v19909_v23 }
 0x457   :  { %13576 = vmatprep.subr.bf16.mxu1 %v19909_v23  ;;  %11496 = vmatprep.mubr.msk.f32.mxu1 %vm14694_vm4, %v19911_v14 }
 0x459   :  { %13722 = vmatpush3.bf16.msra.mxu0 %v19913_v2 }
 0x45a   :  { %13578 = vmatpush3.bf16.msra.mxu1 %v19913_v2  ;;  %13723 = vmatprep.subr.bf16.mxu0 %v19909_v23 }
 0x45b   :  { %13579 = vmatprep.subr.bf16.mxu1 %v19909_v23 }
 0x45d   :  { %13725 = vmatpush3.bf16.msra.mxu0 %v19914_v5 }
 0x45e   :  { %13581 = vmatpush3.bf16.msra.mxu1 %v19914_v5  ;;  %13726 = vmatprep.subr.bf16.mxu0 %v19909_v23 }
 0x45f   :  { %13582 = vmatprep.subr.bf16.mxu1 %v19909_v23 }
 0x461   :  { %13728 = vmatpush3.bf16.msra.mxu0 %v19915_v57 }
 0x462   :  { %13584 = vmatpush3.bf16.msra.mxu1 %v19915_v57  ;;  %13729 = vmatprep.subr.bf16.mxu0 %v19909_v23 }
 0x463   :  { %13585 = vmatprep.subr.bf16.mxu1 %v19909_v23 }
 0x465   :  { %13731 = vmatpush3.bf16.msra.mxu0 %v19916_v12 }
 0x466   :  { %13587 = vmatpush3.bf16.msra.mxu1 %v19916_v12  ;;  %13732 = vmatprep.subr.bf16.mxu0 %v19909_v23 }
 0x467   :  { %13588 = vmatprep.subr.bf16.mxu1 %v19909_v23 }
 0x469   :  { %13734 = vmatpush3.bf16.msra.mxu0 %v19917_v24 }
 0x46a   :  { %13590 = vmatpush3.bf16.msra.mxu1 %v19917_v24  ;;  %13735 = vmatprep.subr.bf16.mxu0 %v19909_v23 }
 0x46b   :  { %13591 = vmatprep.subr.bf16.mxu1 %v19909_v23 }
 0x46d   :  { %13737 = vmatpush3.bf16.msra.mxu0 %v19918_v13 }
 0x46e   :  { %13593 = vmatpush3.bf16.msra.mxu1 %v19918_v13  ;;  %13738 = vmatprep.subr.bf16.mxu0 %v19909_v23 }
 0x46f   :  { %13594 = vmatprep.subr.bf16.mxu1 %v19909_v23 }
 0x484   :  { %v9576_v41 = vpop.f32.mrb[26].mxu1 }
 0x485   :  { %v9577_v43 = vpop.f32.mrb[27].mxu1 }
 0x486   :  { %v9578_v3 = vadd.f32 %v9577_v43, %v9576_v41 }
 0x488   :  { %v9579_v44 = vpop.f32.mrb[28].mxu1 }
 0x489   :  { %v9580_v37 = vpop.f32.mrb[29].mxu1 }
 0x48a   :  { %v9581_v42 = vadd.f32 %v9580_v37, %v9579_v44 }
 0x4a4   :  { %v9614_v52 = vpop.f32.mrb[30].mxu1 }
 0x4a5   :  { %v9615_v29 = vpop.f32.mrb[31].mxu1 }
 0x4a6   :  { %v9616_v60 = vadd.f32 %v9615_v29, %v9614_v52 }
 0x4a8   :  { %v3492_v36 = vadd.f32 %v9616_v60, %v9578_v3  ;;  %v9617_v47 = vpop.f32.mrb[32].mxu1 }
 0x4a9   :  { %v9618_v25 = vpop.f32.mrb[33].mxu1 }
 0x4aa   :  { %v9619_v20 = vadd.f32 %v9618_v25, %v9617_v47 }
 0x4ac   :  { %v3499_v32 = vadd.f32 %v9619_v20, %v9581_v42 }
 0x4c4   :  { %v9652_v21 = vpop.f32.mrb[34].mxu1 }
 0x4c5   :  { %v9653_v18 = vpop.f32.mrb[35].mxu1 }
 0x4c6   :  { %v9654_v49 = vadd.f32 %v9653_v18, %v9652_v21 }
 0x4c8   :  { %v3637_v45 = vadd.f32 %v9654_v49, %v3492_v36  ;;  %v9655_v39 = vpop.f32.mrb[36].mxu1 }
 0x4c9   :  { %v9656_v31 = vpop.f32.mrb[37].mxu1 }
 0x4ca   :  { %v9657_v4 = vadd.f32 %v9656_v31, %v9655_v39 }
 0x4cc   :  { %v3646_v11 = vadd.f32 %v9657_v4, %v3499_v32 }
 0x4e4   :  { %v9690_v59 = vpop.f32.mrb[38].mxu1 }
 0x4e5   :  { %v9691_v62 = vpop.f32.mrb[39].mxu1 }
 0x4e6   :  { %v9692_v33 = vadd.f32 %v9691_v62, %v9690_v59  ;;  %v19919_v59 = vld [vmem:[#allocation63_spill] sm:$0xff]  ;;  %v19920_v62 = vld [vmem:[#allocation116_spill] sm:$0xff] }
 0x4e8   :  { %v3754_v16 = vadd.f32 %v9692_v33, %v3637_v45  ;;  %v9693_v40 = vpop.f32.mrb[40].mxu1  ;;  %v19921_v33 = vld [vmem:[#allocation117_spill] sm:$0xff] }
 0x4e9   :  { %v9694_v19 = vpop.f32.mrb[41].mxu1 }
 0x4ea   :  { %v9695_v53 = vadd.f32 %v9694_v19, %v9693_v40  ;;  %v19923_v40 = vld [vmem:[#allocation119_spill] sm:$0xff]  ;;  %v19924_v19 = vld [vmem:[#allocation120_spill] sm:$0xff] }
 0x4ec   :  { %v3765_v51 = vadd.f32 %v9695_v53, %v3646_v11  ;;  %v19925_v53 = vld [vmem:[#allocation121_spill] sm:$0xff] }
 0x504   :  { %v9728_v35 = vpop.f32.mrb[42].mxu1 }
 0x505   :  { %v9729_v61 = vpop.f32.mrb[43].mxu1 }
 0x506   :  { %v9730_v30 = vadd.f32 %v9729_v61, %v9728_v35  ;;  %v19927_v35 = vld [vmem:[#allocation123_spill] sm:$0xff]  ;;  %v19928_v61 = vld [vmem:[#allocation124_spill] sm:$0xff] }
 0x508   :  { %v3933_v28 = vadd.f32 %v9730_v30, %v3754_v16  ;;  %v9731_v48 = vpop.f32.mrb[44].mxu1  ;;  %v19922_v16 = vld [vmem:[#allocation118_spill] sm:$0xff]  ;;  %v19929_v30 = vld [vmem:[#allocation125_spill] sm:$0xff] }
 0x509   :  { %v9732_v55 = vpop.f32.mrb[45].mxu1 }
 0x50a   :  { %v9733_v6 = vadd.f32 %v9732_v55, %v9731_v48  ;;  %v19931_v48 = vld [vmem:[#allocation127_spill] sm:$0xff]  ;;  %v19932_v55 = vld [vmem:[#allocation128_spill] sm:$0xff] }
 0x50c   :  { %v3940_v63 = vadd.f32 %v9733_v6, %v3765_v51  ;;  %v19926_v51 = vld [vmem:[#allocation122_spill] sm:$0xff]  ;;  %v19933_v6 = vld [vmem:[#allocation129_spill] sm:$0xff] }
 0x523   :  { %v11463_v8 = vpop.f32.mrb[4].mxu0 }
 0x524   :  { %v9766_v56 = vpop.f32.mrb[46].mxu1  ;;  %v4728_v58 = vpop.f32.mrb[5].mxu0 }
 0x525   :  { %v9767_v7 = vpop.f32.mrb[47].mxu1 }
 0x526   :  { %v9768_v38 = vadd.f32 %v9767_v7, %v9766_v56  ;;  %v19936_v56 = vld [vmem:[#allocation134_spill] sm:$0xff]  ;;  %v19938_v7 = vld [vmem:[#allocation136_spill] sm:$0xff] }
 0x528   :  { %v4044_v1 = vadd.f32 %v9768_v38, %v3933_v28  ;;  %v9769_v54 = vpop.f32.mrb[48].mxu1  ;;  %v19930_v28 = vld [vmem:[#allocation126_spill] sm:$0xff]  ;;  %v19939_v38 = vld [vmem:[#allocation137_spill] sm:$0xff] }
 0x529   :  { %v9770_v46 = vpop.f32.mrb[49].mxu1 }
 0x52a   :  { %v17869_v17 = vadd.f32 %v4728_v58, %v4044_v1  ;;  %v9771_v0 = vadd.f32 %v9770_v46, %v9769_v54  ;;  %v19937_v58 = vld [vmem:[#allocation135_spill] sm:$0xff]  ;;  %v19940_v1 = vld [vmem:[#allocation138_spill] sm:$0xff]  ;;  %v19942_v46 = vld [vmem:[#allocation140_spill] sm:$0xff] }
 0x52b   :  { %v19941_v54 = vld [vmem:[#allocation139_spill] sm:$0xff] }
 0x52c   :  { %v4051_v26 = vadd.f32 %v9771_v0, %v3940_v63  ;;  %v4745_v22 = vmul.f32 %v17869_v17, %v17869_v17  ;;  %v19934_v63 = vld [vmem:[#allocation130_spill] sm:$0xff]  ;;  %v19943_v0 = vld [vmem:[#allocation11_spill] sm:$0xff] }
 0x52e   :  { %v17871_v15 = vadd.f32 %v11463_v8, %v4051_v26  ;;  %v19935_v8 = vld [vmem:[#allocation133_spill] sm:$0xff]  ;;  %v19944_v26 = vld [vmem:[#allocation12_spill] sm:$0xff] }
 0x530   :  { %v4738_v10 = vadd.f32 %v17869_v17, %v17871_v15  ;;  %v4746_v9 = vmul.f32 %v17871_v15, %v17871_v15 }
 0x532   :  { %v4739_v34 = vrot.slane %v4738_v10, 4  ;;  %v4747_v41 = vadd.f32 %v4746_v9, %v4745_v22  ;;  %v19945_v22 = vld [vmem:[#allocation13_spill] sm:$0xff]  ;;  %v19947_v9 = vld [vmem:[#allocation15_spill] sm:$0xff] }
 0x534   :  { %v4740_v43 = vadd.f32 %v4739_v34, %v4738_v10  ;;  %v4748_v3 = vrot.slane %v4747_v41, 4  ;;  %v19946_v10 = vld [vmem:[#allocation14_spill] sm:$0xff]  ;;  %v19948_v34 = vld [vmem:[#allocation16_spill] sm:$0xff] }
 0x536   :  { %v4741_v44 = vrot.slane %v4740_v43, 2  ;;  %v4749_v37 = vadd.f32 %v4748_v3, %v4747_v41  ;;  %v19949_v41 = vld [vmem:[#allocation17_spill] sm:$0xff]  ;;  %v19951_v3 = vld [vmem:[#allocation19_spill] sm:$0xff] }
 0x538   :  { %v4742_v42 = vadd.f32 %v4741_v44, %v4740_v43  ;;  %v4750_v52 = vrot.slane %v4749_v37, 2  ;;  %v19950_v43 = vld [vmem:[#allocation18_spill] sm:$0xff]  ;;  %v19952_v44 = vld [vmem:[#allocation20_spill] sm:$0xff] }
 0x53a   :  { %v4743_v29 = vrot.slane %v4742_v42, 1  ;;  %v4751_v60 = vadd.f32 %v4750_v52, %v4749_v37  ;;  %v19953_v37 = vld [vmem:[#allocation21_spill] sm:$0xff]  ;;  %v19955_v52 = vld [vmem:[#allocation28_spill] sm:$0xff] }
 0x53c   :  { %v4744_v36 = vadd.f32 %v4743_v29, %v4742_v42  ;;  %v4752_v47 = vrot.slane %v4751_v60, 1  ;;  %v19954_v42 = vld [vmem:[#allocation24_spill] sm:$0xff] }
 0x53d   :  { %v19956_v29 = vld [vmem:[#allocation32_spill] sm:$0xff] }
 0x53e   :  { %v17879_v25 = vand.u32 4294901760, %v4744_v36  ;;  %v4753_v20 = vadd.f32 %v4752_v47, %v4751_v60  ;;  %v19957_v60 = vld [vmem:[#allocation33_spill] sm:$0xff] }
 0x53f   :  { %v19959_v47 = vld [vmem:[#allocation37_spill] sm:$0xff] }
 0x540   :  { %v17882_v32 = vsub.f32 %v4744_v36, %v17879_v25  ;;  %v17884_v21 = vand.u32 4294901760, %v4753_v20  ;;  %v19958_v36 = vld [vmem:[#allocation35_spill] sm:$0xff] }
 0x542   :  { %v4837_v18 = vand.u32 4294901760, %v17882_v32  ;;  %v17888_v49 = vsub.f32 %v4753_v20, %v17884_v21  ;;  %v19961_v20 = vld [vmem:[#allocation42_spill] sm:$0xff] }
 0x544   :  { %v4838_v45 = vsub.f32 %v17882_v32, %v4837_v18  ;;  %v5479_v39 = vand.u32 4294901760, %v17888_v49 }
 0x546   :  { %v4839_v31 = vand.u32 4294901760, %v4838_v45  ;;  %v5480_v4 = vsub.f32 %v17888_v49, %v5479_v39  ;;  %v19966_v45 = vld [vmem:[#allocation48_spill] sm:$0xff] }
 0x548   :  { %11497 = vmatmul.mubr.f32.vlgmr.msra.gmra.mrb[50].mxu1 %v4839_v31  ;;  %v5481_v11 = vand.u32 4294901760, %v5480_v4  ;;  %v19968_v31 = vld [vmem:[#allocation56_spill] sm:$0xff] }
 0x549   :  { %13596 = vmatpush3.bf16.msra.mxu1 %v19919_v59  ;;  %11531 = vmatprep.mubr.msk.f32.mxu1 %vm14694_vm4, %v19911_v14 }
 0x54a   :  { %11707 = vmatmul.mubr.f32.vlgmr.msra.gmra.mrb[6].mxu0 %v5481_v11  ;;  %13597 = vmatprep.subr.bf16.mxu1 %v19909_v23 }
 0x54b   :  { %13740 = vmatpush3.bf16.msra.mxu0 %v19919_v59  ;;  %11741 = vmatprep.mubr.msk.f32.mxu0 %vm14694_vm4, %v19911_v14 }
 0x54c   :  { %13741 = vmatprep.subr.bf16.mxu0 %v19909_v23 }
 0x54d   :  { %13599 = vmatpush3.bf16.msra.mxu1 %v19920_v62 }
 0x54e   :  { %13600 = vmatprep.subr.bf16.mxu1 %v19909_v23 }
 0x54f   :  { %13743 = vmatpush3.bf16.msra.mxu0 %v19920_v62 }
 0x550   :  { %13744 = vmatprep.subr.bf16.mxu0 %v19909_v23 }
 0x551   :  { %13602 = vmatpush3.bf16.msra.mxu1 %v19921_v33 }
 0x552   :  { %13603 = vmatprep.subr.bf16.mxu1 %v19909_v23 }
 0x553   :  { %13746 = vmatpush3.bf16.msra.mxu0 %v19921_v33 }
 0x554   :  { %13747 = vmatprep.subr.bf16.mxu0 %v19909_v23 }
 0x555   :  { %13605 = vmatpush3.bf16.msra.mxu1 %v19922_v16 }
 0x556   :  { %13606 = vmatprep.subr.bf16.mxu1 %v19909_v23 }
 0x557   :  { %13749 = vmatpush3.bf16.msra.mxu0 %v19922_v16 }
 0x558   :  { %13750 = vmatprep.subr.bf16.mxu0 %v19909_v23 }
 0x559   :  { %13608 = vmatpush3.bf16.msra.mxu1 %v19923_v40 }
 0x55a   :  { %13609 = vmatprep.subr.bf16.mxu1 %v19909_v23 }
 0x55b   :  { %13752 = vmatpush3.bf16.msra.mxu0 %v19923_v40 }
 0x55c   :  { %13753 = vmatprep.subr.bf16.mxu0 %v19909_v23 }
 0x55d   :  { %13611 = vmatpush3.bf16.msra.mxu1 %v19924_v19 }
 0x55e   :  { %13612 = vmatprep.subr.bf16.mxu1 %v19909_v23 }
 0x55f   :  { %13755 = vmatpush3.bf16.msra.mxu0 %v19924_v19 }
 0x560   :  { %13756 = vmatprep.subr.bf16.mxu0 %v19909_v23 }
 0x561   :  { %13614 = vmatpush3.bf16.msra.mxu1 %v19925_v53 }
 0x562   :  { %13615 = vmatprep.subr.bf16.mxu1 %v19909_v23 }
 0x563   :  { %13758 = vmatpush3.bf16.msra.mxu0 %v19925_v53 }
 0x564   :  { %13759 = vmatprep.subr.bf16.mxu0 %v19909_v23 }
 0x565   :  { %13617 = vmatpush3.bf16.msra.mxu1 %v19926_v51 }
 0x566   :  { %13618 = vmatprep.subr.bf16.mxu1 %v19909_v23 }
 0x567   :  { %13761 = vmatpush3.bf16.msra.mxu0 %v19926_v51 }
 0x568   :  { %11532 = vmatmul.mubr.f32.vlgmr.msra.gmra.mrb[50].mxu1 %v17879_v25  ;;  %13762 = vmatprep.subr.bf16.mxu0 %v19909_v23 }
 0x569   :  { %13620 = vmatpush3.bf16.msra.mxu1 %v19927_v35  ;;  %11566 = vmatprep.mubr.msk.f32.mxu1 %vm14694_vm4, %v19911_v14 }
 0x56a   :  { %11742 = vmatmul.mubr.f32.vlgmr.msra.gmra.mrb[6].mxu0 %v17884_v21  ;;  %13621 = vmatprep.subr.bf16.mxu1 %v19909_v23 }
 0x56b   :  { %13764 = vmatpush3.bf16.msra.mxu0 %v19927_v35  ;;  %11776 = vmatprep.mubr.msk.f32.mxu0 %vm14694_vm4, %v19911_v14 }
 0x56c   :  { %13765 = vmatprep.subr.bf16.mxu0 %v19909_v23 }
 0x56d   :  { %13623 = vmatpush3.bf16.msra.mxu1 %v19928_v61 }
 0x56e   :  { %13624 = vmatprep.subr.bf16.mxu1 %v19909_v23 }
 0x56f   :  { %13767 = vmatpush3.bf16.msra.mxu0 %v19928_v61 }
 0x570   :  { %13768 = vmatprep.subr.bf16.mxu0 %v19909_v23 }
 0x571   :  { %13626 = vmatpush3.bf16.msra.mxu1 %v19929_v30 }
 0x572   :  { %13627 = vmatprep.subr.bf16.mxu1 %v19909_v23 }
 0x573   :  { %13770 = vmatpush3.bf16.msra.mxu0 %v19929_v30 }
 0x574   :  { %13771 = vmatprep.subr.bf16.mxu0 %v19909_v23 }
 0x575   :  { %13629 = vmatpush3.bf16.msra.mxu1 %v19930_v28 }
 0x576   :  { %13630 = vmatprep.subr.bf16.mxu1 %v19909_v23 }
 0x577   :  { %13773 = vmatpush3.bf16.msra.mxu0 %v19930_v28 }
 0x578   :  { %13774 = vmatprep.subr.bf16.mxu0 %v19909_v23 }
 0x579   :  { %13632 = vmatpush3.bf16.msra.mxu1 %v19931_v48 }
 0x57a   :  { %13633 = vmatprep.subr.bf16.mxu1 %v19909_v23 }
 0x57b   :  { %13776 = vmatpush3.bf16.msra.mxu0 %v19931_v48 }
 0x57c   :  { %13777 = vmatprep.subr.bf16.mxu0 %v19909_v23 }
 0x57d   :  { %13635 = vmatpush3.bf16.msra.mxu1 %v19932_v55 }
 0x57e   :  { %13636 = vmatprep.subr.bf16.mxu1 %v19909_v23 }
 0x57f   :  { %13779 = vmatpush3.bf16.msra.mxu0 %v19932_v55 }
 0x580   :  { %13780 = vmatprep.subr.bf16.mxu0 %v19909_v23 }
 0x581   :  { %13638 = vmatpush3.bf16.msra.mxu1 %v19933_v6 }
 0x582   :  { %13639 = vmatprep.subr.bf16.mxu1 %v19909_v23 }
 0x583   :  { %13782 = vmatpush3.bf16.msra.mxu0 %v19933_v6  ;;  %v72_v6 = vld [vmem:[%s18672_s3 + $0x3] sm:$0x1] }
 0x584   :  { %13783 = vmatprep.subr.bf16.mxu0 %v19909_v23 }
 0x585   :  { %13641 = vmatpush3.bf16.msra.mxu1 %v19934_v63 }
 0x586   :  { %13642 = vmatprep.subr.bf16.mxu1 %v19909_v23 }
 0x587   :  { %13785 = vmatpush3.bf16.msra.mxu0 %v19934_v63 }
 0x588   :  { %11567 = vmatmul.mubr.f32.vlgmr.msra.gmra.mrb[50].mxu1 %v17882_v32  ;;  %13786 = vmatprep.subr.bf16.mxu0 %v19909_v23  ;;  %v19962_v32 = vld [vmem:[#allocation43_spill] sm:$0xff] }
 0x589   :  { %13644 = vmatpush3.bf16.msra.mxu1 %v19910_v27  ;;  %11601 = vmatprep.mubr.msk.f32.mxu1 %vm14694_vm4, %v19911_v14 }
 0x58a   :  { %11777 = vmatmul.mubr.f32.vlgmr.msra.gmra.mrb[6].mxu0 %v17888_v49  ;;  %13645 = vmatprep.subr.bf16.mxu1 %v19909_v23  ;;  %v19965_v49 = vld [vmem:[#allocation47_spill] sm:$0xff] }
 0x58b   :  { %13788 = vmatpush3.bf16.msra.mxu0 %v19910_v27  ;;  %11811 = vmatprep.mubr.msk.f32.mxu0 %vm14694_vm4, %v19911_v14 }
 0x58c   :  { %13789 = vmatprep.subr.bf16.mxu0 %v19909_v23 }
 0x58d   :  { %13647 = vmatpush3.bf16.msra.mxu1 %v19912_v50 }
 0x58e   :  { %13648 = vmatprep.subr.bf16.mxu1 %v19909_v23 }
 0x58f   :  { %13791 = vmatpush3.bf16.msra.mxu0 %v19912_v50 }
 0x590   :  { %13792 = vmatprep.subr.bf16.mxu0 %v19909_v23 }
 0x591   :  { %13650 = vmatpush3.bf16.msra.mxu1 %v19913_v2 }
 0x592   :  { %13651 = vmatprep.subr.bf16.mxu1 %v19909_v23 }
 0x593   :  { %13794 = vmatpush3.bf16.msra.mxu0 %v19913_v2 }
 0x594   :  { %13795 = vmatprep.subr.bf16.mxu0 %v19909_v23 }
 0x595   :  { %13653 = vmatpush3.bf16.msra.mxu1 %v19914_v5 }
 0x596   :  { %13654 = vmatprep.subr.bf16.mxu1 %v19909_v23 }
 0x597   :  { %13797 = vmatpush3.bf16.msra.mxu0 %v19914_v5 }
 0x598   :  { %13798 = vmatprep.subr.bf16.mxu0 %v19909_v23 }
 0x599   :  { %13656 = vmatpush3.bf16.msra.mxu1 %v19915_v57 }
 0x59a   :  { %13657 = vmatprep.subr.bf16.mxu1 %v19909_v23 }
 0x59b   :  { %13800 = vmatpush3.bf16.msra.mxu0 %v19915_v57 }
 0x59c   :  { %13801 = vmatprep.subr.bf16.mxu0 %v19909_v23 }
 0x59d   :  { %13659 = vmatpush3.bf16.msra.mxu1 %v19916_v12 }
 0x59e   :  { %13660 = vmatprep.subr.bf16.mxu1 %v19909_v23 }
 0x59f   :  { %13803 = vmatpush3.bf16.msra.mxu0 %v19916_v12 }
 0x5a0   :  { %13804 = vmatprep.subr.bf16.mxu0 %v19909_v23 }
 0x5a1   :  { %13662 = vmatpush3.bf16.msra.mxu1 %v19917_v24 }
 0x5a2   :  { %13663 = vmatprep.subr.bf16.mxu1 %v19909_v23 }
 0x5a3   :  { %13806 = vmatpush3.bf16.msra.mxu0 %v19917_v24 }
 0x5a4   :  { %13807 = vmatprep.subr.bf16.mxu0 %v19909_v23 }
 0x5a5   :  { %13665 = vmatpush3.bf16.msra.mxu1 %v19918_v13 }
 0x5a6   :  { %13666 = vmatprep.subr.bf16.mxu1 %v19909_v23 }
 0x5a7   :  { %13809 = vmatpush3.bf16.msra.mxu0 %v19918_v13 }
 0x5a8   :  { %11602 = vmatmul.mubr.f32.vlgmr.msra.gmra.mrb[50].mxu1 %v4837_v18  ;;  %13810 = vmatprep.subr.bf16.mxu0 %v19909_v23  ;;  %v19964_v18 = vld [vmem:[#allocation46_spill] sm:$0xff] }
 0x5a9   :  { %13668 = vmatpush3.bf16.msra.mxu1 %v19935_v8  ;;  %11636 = vmatprep.mubr.msk.f32.mxu1 %vm14694_vm4, %v19911_v14 }
 0x5aa   :  { %11812 = vmatmul.mubr.f32.vlgmr.msra.gmra.mrb[6].mxu0 %v5479_v39  ;;  %13669 = vmatprep.subr.bf16.mxu1 %v19909_v23  ;;  %v19967_v39 = vld [vmem:[#allocation55_spill] sm:$0xff] }
 0x5ab   :  { %13812 = vmatpush3.bf16.msra.mxu0 %v19935_v8  ;;  %11846 = vmatprep.mubr.msk.f32.mxu0 %vm14694_vm4, %v19911_v14  ;;  %v71_v8 = vld [vmem:[%s18672_s3 + $0x2] sm:$0x1] }
 0x5ac   :  { %13813 = vmatprep.subr.bf16.mxu0 %v19909_v23 }
 0x5ad   :  { %13671 = vmatpush3.bf16.msra.mxu1 %v19936_v56 }
 0x5ae   :  { %13672 = vmatprep.subr.bf16.mxu1 %v19909_v23 }
 0x5af   :  { %13815 = vmatpush3.bf16.msra.mxu0 %v19936_v56 }
 0x5b0   :  { %13816 = vmatprep.subr.bf16.mxu0 %v19909_v23 }
 0x5b1   :  { %13674 = vmatpush3.bf16.msra.mxu1 %v19937_v58 }
 0x5b2   :  { %13675 = vmatprep.subr.bf16.mxu1 %v19909_v23 }
 0x5b3   :  { %13818 = vmatpush3.bf16.msra.mxu0 %v19937_v58 }
 0x5b4   :  { %13819 = vmatprep.subr.bf16.mxu0 %v19909_v23 }
 0x5b5   :  { %13677 = vmatpush3.bf16.msra.mxu1 %v19938_v7 }
 0x5b6   :  { %13678 = vmatprep.subr.bf16.mxu1 %v19909_v23 }
 0x5b7   :  { %13821 = vmatpush3.bf16.msra.mxu0 %v19938_v7 }
 0x5b8   :  { %13822 = vmatprep.subr.bf16.mxu0 %v19909_v23 }
 0x5b9   :  { %13680 = vmatpush3.bf16.msra.mxu1 %v19939_v38 }
 0x5ba   :  { %13681 = vmatprep.subr.bf16.mxu1 %v19909_v23 }
 0x5bb   :  { %13824 = vmatpush3.bf16.msra.mxu0 %v19939_v38 }
 0x5bc   :  { %13825 = vmatprep.subr.bf16.mxu0 %v19909_v23 }
 0x5bd   :  { %13683 = vmatpush3.bf16.msra.mxu1 %v19940_v1 }
 0x5be   :  { %13684 = vmatprep.subr.bf16.mxu1 %v19909_v23 }
 0x5bf   :  { %13827 = vmatpush3.bf16.msra.mxu0 %v19940_v1 }
 0x5c0   :  { %13828 = vmatprep.subr.bf16.mxu0 %v19909_v23 }
 0x5c1   :  { %13686 = vmatpush3.bf16.msra.mxu1 %v19941_v54 }
 0x5c2   :  { %13687 = vmatprep.subr.bf16.mxu1 %v19909_v23 }
 0x5c3   :  { %13830 = vmatpush3.bf16.msra.mxu0 %v19941_v54 }
 0x5c4   :  { %13831 = vmatprep.subr.bf16.mxu0 %v19909_v23 }
 0x5c5   :  { %13689 = vmatpush3.bf16.msra.mxu1 %v19942_v46 }
 0x5c6   :  { %13690 = vmatprep.subr.bf16.mxu1 %v19909_v23 }
 0x5c7   :  { %13833 = vmatpush3.bf16.msra.mxu0 %v19942_v46 }
 0x5c8   :  { %11637 = vmatmul.mubr.f32.vlgmr.msra.gmra.mrb[50].mxu1 %v17879_v25  ;;  %13834 = vmatprep.subr.bf16.mxu0 %v19909_v23 }
 0x5c9   :  { %13692 = vmatpush3.bf16.msra.mxu1 %v19910_v27  ;;  %11671 = vmatprep.mubr.msk.f32.mxu1 %vm14694_vm4, %v19911_v14 }
 0x5ca   :  { %11847 = vmatmul.mubr.f32.vlgmr.msra.gmra.mrb[6].mxu0 %v17884_v21  ;;  %13693 = vmatprep.subr.bf16.mxu1 %v19909_v23 }
 0x5cb   :  { %13836 = vmatpush3.bf16.msra.mxu0 %v19910_v27  ;;  %11881 = vmatprep.mubr.msk.f32.mxu0 %vm14694_vm4, %v19911_v14 }
 0x5cc   :  { %13837 = vmatprep.subr.bf16.mxu0 %v19909_v23 }
 0x5cd   :  { %13695 = vmatpush3.bf16.msra.mxu1 %v19912_v50 }
 0x5ce   :  { %13696 = vmatprep.subr.bf16.mxu1 %v19909_v23 }
 0x5cf   :  { %13839 = vmatpush3.bf16.msra.mxu0 %v19912_v50 }
 0x5d0   :  { %13840 = vmatprep.subr.bf16.mxu0 %v19909_v23 }
 0x5d1   :  { %13698 = vmatpush3.bf16.msra.mxu1 %v19913_v2 }
 0x5d2   :  { %13699 = vmatprep.subr.bf16.mxu1 %v19909_v23 }
 0x5d3   :  { %13842 = vmatpush3.bf16.msra.mxu0 %v19913_v2 }
 0x5d4   :  { %13843 = vmatprep.subr.bf16.mxu0 %v19909_v23 }
 0x5d5   :  { %13701 = vmatpush3.bf16.msra.mxu1 %v19914_v5 }
 0x5d6   :  { %13702 = vmatprep.subr.bf16.mxu1 %v19909_v23 }
 0x5d7   :  { %13845 = vmatpush3.bf16.msra.mxu0 %v19914_v5 }
 0x5d8   :  { %13846 = vmatprep.subr.bf16.mxu0 %v19909_v23 }
 0x5d9   :  { %13704 = vmatpush3.bf16.msra.mxu1 %v19915_v57 }
 0x5da   :  { %13705 = vmatprep.subr.bf16.mxu1 %v19909_v23 }
 0x5db   :  { %13848 = vmatpush3.bf16.msra.mxu0 %v19915_v57 }
 0x5dc   :  { %13849 = vmatprep.subr.bf16.mxu0 %v19909_v23 }
 0x5dd   :  { %13707 = vmatpush3.bf16.msra.mxu1 %v19916_v12 }
 0x5de   :  { %13708 = vmatprep.subr.bf16.mxu1 %v19909_v23 }
 0x5df   :  { %13851 = vmatpush3.bf16.msra.mxu0 %v19916_v12 }
 0x5e0   :  { %13852 = vmatprep.subr.bf16.mxu0 %v19909_v23 }
 0x5e1   :  { %13710 = vmatpush3.bf16.msra.mxu1 %v19917_v24 }
 0x5e2   :  { %13711 = vmatprep.subr.bf16.mxu1 %v19909_v23 }
 0x5e3   :  { %13854 = vmatpush3.bf16.msra.mxu0 %v19917_v24 }
 0x5e4   :  { %13855 = vmatprep.subr.bf16.mxu0 %v19909_v23 }
 0x5e5   :  { %13713 = vmatpush3.bf16.msra.mxu1 %v19918_v13 }
 0x5e6   :  { %13859 = vmatprep.subr.bf16.mxu1 %v19943_v0 }
 0x5e7   :  { %13857 = vmatpush3.bf16.msra.mxu0 %v19918_v13 }
 0x5e8   :  { %11672 = vmatmul.mubr.f32.vlgmr.msra.gmra.mrb[50].mxu1 %v17879_v25  ;;  %14051 = vmatprep.subr.bf16.mxu0 %v19944_v26  ;;  %v19960_v25 = vld [vmem:[#allocation41_spill] sm:$0xff] }
 0x5e9   :  { %13861 = vmatpush3.bf16.msra.mxu1 %v19945_v22 }
 0x5ea   :  { %11882 = vmatmul.mubr.f32.vlgmr.msra.gmra.mrb[6].mxu0 %v17884_v21  ;;  %13863 = vmatprep.subr.bf16.mxu1 %v19946_v10  ;;  %v19963_v21 = vld [vmem:[#allocation44_spill] sm:$0xff] }
 0x5eb   :  { %14053 = vmatpush3.bf16.msra.mxu0 %v19944_v26 }
 0x5ec   :  { %14055 = vmatprep.subr.bf16.mxu0 %v19947_v9 }
 0x5ed   :  { %13865 = vmatpush3.bf16.msra.mxu1 %v19948_v34 }
 0x5ee   :  { %13867 = vmatprep.subr.bf16.mxu1 %v19949_v41 }
 0x5ef   :  { %14057 = vmatpush3.bf16.msra.mxu0 %v19947_v9 }
 0x5f0   :  { %14059 = vmatprep.subr.bf16.mxu0 %v19950_v43 }
 0x5f1   :  { %13869 = vmatpush3.bf16.msra.mxu1 %v19951_v3 }
 0x5f2   :  { %13871 = vmatprep.subr.bf16.mxu1 %v19952_v44 }
 0x5f3   :  { %14061 = vmatpush3.bf16.msra.mxu0 %v19950_v43 }
 0x5f4   :  { %14063 = vmatprep.subr.bf16.mxu0 %v19953_v37 }
 0x5f5   :  { %13873 = vmatpush3.bf16.msra.mxu1 %v19954_v42 }
 0x5f6   :  { %13875 = vmatprep.subr.bf16.mxu1 %v19955_v52 }
 0x5f7   :  { %14065 = vmatpush3.bf16.msra.mxu0 %v19953_v37 }
 0x5f8   :  { %14067 = vmatprep.subr.bf16.mxu0 %v19956_v29 }
 0x5f9   :  { %13877 = vmatpush3.bf16.msra.mxu1 %v19957_v60 }
 0x5fa   :  { %13879 = vmatprep.subr.bf16.mxu1 %v19958_v36 }
 0x5fb   :  { %14069 = vmatpush3.bf16.msra.mxu0 %v19956_v29 }
 0x5fc   :  { %14071 = vmatprep.subr.bf16.mxu0 %v19959_v47 }
 0x5fd   :  { %13881 = vmatpush3.bf16.msra.mxu1 %v19960_v25 }
 0x5fe   :  { %13883 = vmatprep.subr.bf16.mxu1 %v19961_v20 }
 0x5ff   :  { %14073 = vmatpush3.bf16.msra.mxu0 %v19959_v47 }
 0x600   :  { %14075 = vmatprep.subr.bf16.mxu0 %v19962_v32 }
 0x601   :  { %13885 = vmatpush3.bf16.msra.mxu1 %v19963_v21 }
 0x602   :  { %13887 = vmatprep.subr.bf16.mxu1 %v19964_v18 }
 0x603   :  { %14077 = vmatpush3.bf16.msra.mxu0 %v19962_v32 }
 0x604   :  { %14079 = vmatprep.subr.bf16.mxu0 %v19965_v49 }
 0x605   :  { %13889 = vmatpush3.bf16.msra.mxu1 %v19966_v45 }
 0x606   :  { %13891 = vmatprep.subr.bf16.mxu1 %v19967_v39 }
 0x607   :  { %14081 = vmatpush3.bf16.msra.mxu0 %v19965_v49 }
 0x608   :  { %14083 = vmatprep.subr.bf16.mxu0 %v19968_v31 }
 0x6bb   :  { %v5391_v4 = vpop.f32.mrb[50].mxu1 }
 0x6bc   :  { %v5395_v11 = vmul.f32 0.001953125, %v5391_v4  ;;  %v11673_v46 = vpop.f32.mrb[51].mxu1  ;;  %v19969_v4 = vld [vmem:[#allocation152_spill] sm:$0xff] }
 0x6bd   :  { %v6033_v54 = vpop.f32.mrb[6].mxu0 }
 0x6be   :  { %v6038_v1 = vmul.f32 %v5395_v11, %v5395_v11  ;;  %v6037_v38 = vmul.f32 0.001953125, %v6033_v54  ;;  %v11883_v7 = vpop.f32.mrb[7].mxu0 }
 0x6c0   :  { %v6039_v58 = vsub.f32 %v6037_v38, %v6038_v1 }
 0x6c2   :  { %v6040_v56 = vadd.f32 1e-05, %v6039_v58 }
 0x6c4   :  { %14635 = vrsqrt.f32 %v6040_v56 }
 0x6ce   :  { %v14636_v63 = vpop.eup %14635 }
 0x6cf   :  { %v6042_v39 = vmul.f32 %v14636_v63, %v71_v8 }
 0x6d1   :  { %v6043_v55 = vmul.f32 %v6042_v39, %v5395_v11  ;;  %v6048_v46 = vrot.slane %v6042_v39, %v19969_v4 }
 0x6d3   :  { %v6044_v48 = vsub.f32 %v72_v6, %v6043_v55  ;;  %v6049_v54 = vmul.f32 %v17869_v17, %v6048_v46  ;;  %v6050_v7 = vmul.f32 %v17871_v15, %v6048_v46 }
 0x6d5   :  { %v6054_v56 = vrot.slane %v6044_v48, %v19969_v4 }
 0x6d7   :  { %v6055_v58 = vadd.f32 %v6054_v56, %v6049_v54  ;;  %v6056_v38 = vadd.f32 %v6054_v56, %v6050_v7 }
 0x6d9   :  { %v6057_v1 = vmax.f32 %v6055_v58, 0.0  ;;  %v6058_v28 = vmax.f32 %v6056_v38, 0.0 }
 0x6db   :  { %v18131_v30 = vand.u32 4294901760, %v6057_v1  ;;  %v6065_v63 = vrot.slane %v6057_v1, 1  ;;  %v6066_v8 = vrot.slane %v6058_v28, 1  ;;  %v6059_v61 = vrot.slane %v6057_v1, 7 }
 0x6dc   :  { %v6060_v35 = vrot.slane %v6058_v28, 7  ;;  %v18133_v11 = vand.u32 4294901760, %v6058_v28 }
 0x6dd   :  { %v18136_v55 = vsub.f32 %v6057_v1, %v18131_v30  ;;  %v6067_v15 = vsel %vm84_vm2, %v6065_v63, %v6066_v8  ;;  %v6068_v48 = vsel %vm84_vm2, %v6066_v8, %v6065_v63 }
 0x6de   :  { %v18142_v6 = vand.u32 4294901760, %v6067_v15  ;;  %v6062_v39 = vsel %vm77_vm0, %v6060_v35, %v6059_v61  ;;  %v6070_v54 = vsel %vm64_vm3, %v6068_v48, 0.0  ;;  %v18149_v7 = vsub.f32 %v6058_v28, %v18133_v11 }
 0x6df   :  { %v19261_v56 = vand.u32 4294901760, %v18136_v55  ;;  %v6063_v38 = vsel %vm53_vm1, %v6062_v39, 0.0  ;;  %v18154_v1 = vand.u32 4294901760, %v6070_v54  ;;  %v6061_v63 = vsel %vm77_vm0, %v6059_v61, %v6060_v35 }
 0x6e0   :  { %v18159_v8 = vsub.f32 %v6067_v15, %v18142_v6  ;;  %v18161_v4 = vand.u32 4294901760, %v6063_v38  ;;  %v18163_v46 = vand.u32 4294901760, %v6061_v63  ;;  %v19268_v39 = vand.u32 4294901760, %v18149_v7 }
 0x6e1   :  { %v6170_v28 = vsub.f32 %v18136_v55, %v19261_v56  ;;  %v18169_v48 = vsub.f32 %v6070_v54, %v18154_v1 }
 0x6e2   :  { %v19265_v58 = vand.u32 4294901760, %v18159_v8  ;;  %v18174_v35 = vsub.f32 %v6063_v38, %v18161_v4  ;;  %v18177_v61 = vsub.f32 %v6061_v63, %v18163_v46  ;;  %v6185_v63 = vsub.f32 %v18149_v7, %v19268_v39 }
 0x6e3   :  { %v6171_v17 = vand.u32 4294901760, %v6170_v28  ;;  %v19267_v15 = vand.u32 4294901760, %v18169_v48 }
 0x6e4   :  { %v7073_v56 = vsub.f32 %v18159_v8, %v19265_v58  ;;  %v6175_v54 = vand.u32 4294901760, %v18174_v35  ;;  %v6190_v51 = vand.u32 4294901760, %v18177_v61  ;;  %v6186_v40 = vand.u32 4294901760, %v6185_v63  ;;  %v19983_v63 = vld [vmem:[#allocation23_spill] sm:$0xff] }
 0x6e5   :  { %6172 = vmatprep.mubr.f32.mxu1 %v6171_v17  ;;  %v7083_v38 = vsub.f32 %v18169_v48, %v19267_v15  ;;  %v19973_v15 = vld [vmem:[#allocation59_spill] sm:$0xff] }
 0x6e6   :  { %v7074_v28 = vand.u32 4294901760, %v7073_v56  ;;  %v6176_v53 = vsub.f32 %v18174_v35, %v6175_v54  ;;  %v6191_v17 = vsub.f32 %v18177_v61, %v6190_v51  ;;  %v19974_v56 = vld [vmem:[#allocation60_spill] sm:$0xff] }
 0x6e7   :  { %v7084_v19 = vand.u32 4294901760, %v7083_v38  ;;  %v19975_v38 = vld [vmem:[#allocation61_spill] sm:$0xff] }
 0x6e8   :  { %11916 = vmatprep.mubr.f32.mxu0 %v7074_v28  ;;  %v6177_v58 = vand.u32 4294901760, %v6176_v53  ;;  %v6192_v39 = vand.u32 4294901760, %v6191_v17  ;;  %v19976_v53 = vld [vmem:[#allocation62_spill] sm:$0xff]  ;;  %v19985_v17 = vld [vmem:[#allocation27_spill] sm:$0xff] }
 0x6e9   :  { %11917 = vmatmul.mubr.f32.vlgmr.msra.gmra.mrb[8].mxu0 %v7084_v19  ;;  %v19977_v19 = vld [vmem:[#allocation64_spill] sm:$0xff]  ;;  %v19984_v28 = vld [vmem:[#allocation22_spill] sm:$0xff] }
 0x6ea   :  { %6178 = vmatmul.mubr.f32.vlgmr.msra.gmra.mrb[52].mxu1 %v6177_v58  ;;  %14085 = vmatpush3.bf16.msra.mxu0 %v19968_v31  ;;  %v19978_v31 = vld [vmem:[#allocation65_spill] sm:$0xff]  ;;  %v19980_v58 = vld [vmem:[#allocation68_spill] sm:$0xff] }
 0x6eb   :  { %13893 = vmatpush3.bf16.msra.mxu1 %v19973_v15  ;;  %6187 = vmatprep.mubr.f32.mxu1 %v6186_v40  ;;  %v19979_v40 = vld [vmem:[#allocation66_spill] sm:$0xff]  ;;  %v19981_v15 = vld [vmem:[#allocation67_spill] sm:$0xff] }
 0x6ec   :  { %11951 = vmatprep.mubr.f32.mxu0 %v18142_v6  ;;  %13895 = vmatprep.subr.bf16.mxu1 %v19974_v56  ;;  %v19986_v56 = vld [vmem:[#allocation30_spill] sm:$0xff] }
 0x6ed   :  { %14087 = vmatprep.subr.bf16.mxu0 %v19975_v38 }
 0x6ee   :  { %6193 = vmatmul.mubr.f32.gmra.mrb[54].mxu1 %v6192_v39  ;;  %14089 = vmatpush3.bf16.msra.mxu0 %v19975_v38  ;;  %v19982_v39 = vld [vmem:[#allocation69_spill] sm:$0xff] }
 0x6ef   :  { %13897 = vmatpush3.bf16.msra.mxu1 %v19976_v53  ;;  %6423 = vmatprep.mubr.f32.mxu1 %v18131_v30  ;;  %v19987_v38 = vld [vmem:[#allocation29_spill] sm:$0xff]  ;;  %v19988_v53 = vld [vmem:[#allocation31_spill] sm:$0xff] }
 0x6f0   :  { %13899 = vmatprep.subr.bf16.mxu1 %v19977_v19  ;;  %14091 = vmatprep.subr.bf16.mxu0 %v19978_v31  ;;  %v19989_v19 = vld [vmem:[#allocation72_spill] sm:$0xff] }
 0x6f2   :  { %14093 = vmatpush3.bf16.msra.mxu0 %v19978_v31  ;;  %v19990_v31 = vld [vmem:[#allocation71_spill] sm:$0xff] }
 0x6f3   :  { %13901 = vmatpush3.bf16.msra.mxu1 %v19979_v40  ;;  %14095 = vmatprep.subr.bf16.mxu0 %v19980_v58  ;;  %v19991_v40 = vld [vmem:[#allocation36_spill] sm:$0xff] }
 0x6f4   :  { %13903 = vmatprep.subr.bf16.mxu1 %v19981_v15  ;;  %v19993_v15 = vld [vmem:[#allocation38_spill] sm:$0xff] }
 0x6f6   :  { %14097 = vmatpush3.bf16.msra.mxu0 %v19980_v58  ;;  %v19992_v58 = vld [vmem:[#allocation39_spill] sm:$0xff] }
 0x6f7   :  { %13905 = vmatpush3.bf16.msra.mxu1 %v19982_v39  ;;  %14099 = vmatprep.subr.bf16.mxu0 %v19983_v63  ;;  %v19994_v39 = vld [vmem:[#allocation76_spill] sm:$0xff] }
 0x6f8   :  { %13907 = vmatprep.subr.bf16.mxu1 %v19984_v28  ;;  %v19996_v28 = vld [vmem:[#allocation75_spill] sm:$0xff] }
 0x6fa   :  { %14101 = vmatpush3.bf16.msra.mxu0 %v19983_v63  ;;  %v19995_v63 = vld [vmem:[#allocation40_spill] sm:$0xff] }
 0x6fb   :  { %13909 = vmatpush3.bf16.msra.mxu1 %v19985_v17  ;;  %14103 = vmatprep.subr.bf16.mxu0 %v19986_v56  ;;  %v19997_v17 = vld [vmem:[#allocation77_spill] sm:$0xff] }
 0x6fc   :  { %13911 = vmatprep.subr.bf16.mxu1 %v19987_v38  ;;  %v19999_v38 = vld [vmem:[#allocation79_spill] sm:$0xff] }
 0x6fe   :  { %14105 = vmatpush3.bf16.msra.mxu0 %v19986_v56  ;;  %v19998_v56 = vld [vmem:[#allocation78_spill] sm:$0xff] }
 0x6ff   :  { %13913 = vmatpush3.bf16.msra.mxu1 %v19988_v53  ;;  %14107 = vmatprep.subr.bf16.mxu0 %v19989_v19  ;;  %v20000_v53 = vld [vmem:[#allocation80_spill] sm:$0xff] }
 0x700   :  { %13915 = vmatprep.subr.bf16.mxu1 %v19990_v31  ;;  %v20002_v31 = vld [vmem:[#allocation82_spill] sm:$0xff] }
 0x702   :  { %14109 = vmatpush3.bf16.msra.mxu0 %v19989_v19  ;;  %v20001_v19 = vld [vmem:[#allocation81_spill] sm:$0xff] }
 0x703   :  { %13917 = vmatpush3.bf16.msra.mxu1 %v19991_v40  ;;  %14111 = vmatprep.subr.bf16.mxu0 %v19992_v58  ;;  %v20003_v40 = vld [vmem:[#allocation101_spill] sm:$0xff] }
 0x704   :  { %13919 = vmatprep.subr.bf16.mxu1 %v19993_v15  ;;  %v20005_v15 = vld [vmem:[#allocation103_spill] sm:$0xff] }
 0x706   :  { %14113 = vmatpush3.bf16.msra.mxu0 %v19992_v58  ;;  %v20004_v58 = vld [vmem:[#allocation102_spill] sm:$0xff] }
 0x707   :  { %13921 = vmatpush3.bf16.msra.mxu1 %v19994_v39  ;;  %14115 = vmatprep.subr.bf16.mxu0 %v19995_v63  ;;  %v20006_v39 = vld [vmem:[#allocation49_spill] sm:$0xff] }
 0x708   :  { %13923 = vmatprep.subr.bf16.mxu1 %v19996_v28  ;;  %v20008_v28 = vld [vmem:[#allocation105_spill] sm:$0xff] }
 0x709   :  { %11952 = vmatmul.mubr.f32.vlgmr.msra.gmra.mrb[8].mxu0 %v18154_v1 }
 0x70a   :  { %6425 = vmatmul.mubr.f32.vlgmr.msra.gmra.mrb[56].mxu1 %v18161_v4  ;;  %14117 = vmatpush3.bf16.msra.mxu0 %v19995_v63  ;;  %v20007_v63 = vld [vmem:[#allocation104_spill] sm:$0xff] }
 0x70b   :  { %6430 = vmatprep.mubr.f32.mxu1 %v18133_v11  ;;  %13925 = vmatpush3.bf16.msra.mxu1 %v19997_v17  ;;  %v20009_v17 = vld [vmem:[#allocation106_spill] sm:$0xff] }
 0x70c   :  { %11986 = vmatprep.mubr.f32.mxu0 %v18159_v8  ;;  %13927 = vmatprep.subr.bf16.mxu1 %v19998_v56  ;;  %v20010_v56 = vld [vmem:[#allocation107_spill] sm:$0xff] }
 0x70d   :  { %14119 = vmatprep.subr.bf16.mxu0 %v19999_v38 }
 0x70e   :  { %6432 = vmatmul.mubr.f32.gmra.mrb[58].mxu1 %v18163_v46  ;;  %14121 = vmatpush3.bf16.msra.mxu0 %v19999_v38  ;;  %v20011_v38 = vld [vmem:[#allocation108_spill] sm:$0xff] }
 0x70f   :  { %13929 = vmatpush3.bf16.msra.mxu1 %v20000_v53  ;;  %6567 = vmatprep.mubr.f32.mxu1 %v18136_v55  ;;  %v20012_v53 = vld [vmem:[#allocation109_spill] sm:$0xff] }
 0x710   :  { %13931 = vmatprep.subr.bf16.mxu1 %v20001_v19  ;;  %14123 = vmatprep.subr.bf16.mxu0 %v20002_v31  ;;  %v20013_v19 = vld [vmem:[#allocation110_spill] sm:$0xff] }
 0x712   :  { %14125 = vmatpush3.bf16.msra.mxu0 %v20002_v31  ;;  %v20014_v31 = vld [vmem:[#allocation111_spill] sm:$0xff] }
 0x713   :  { %13933 = vmatpush3.bf16.msra.mxu1 %v20003_v40  ;;  %14127 = vmatprep.subr.bf16.mxu0 %v20004_v58  ;;  %v20015_v40 = vld [vmem:[#allocation112_spill] sm:$0xff] }
 0x714   :  { %13935 = vmatprep.subr.bf16.mxu1 %v20005_v15  ;;  %v20017_v15 = vld [vmem:[#allocation114_spill] sm:$0xff] }
 0x716   :  { %14129 = vmatpush3.bf16.msra.mxu0 %v20004_v58  ;;  %v20016_v58 = vld [vmem:[#allocation113_spill] sm:$0xff] }
 0x717   :  { %13937 = vmatpush3.bf16.msra.mxu1 %v20006_v39  ;;  %14131 = vmatprep.subr.bf16.mxu0 %v20007_v63  ;;  %v20018_v39 = vld [vmem:[#allocation115_spill] sm:$0xff] }
 0x718   :  { %13939 = vmatprep.subr.bf16.mxu1 %v20008_v28  ;;  %v20020_v28 = vand.u32 4294901760, %v18136_v55  ;;  %v20021_v55 = vld [vmem:[#allocation58_spill] sm:$0xff] }
 0x71a   :  { %14133 = vmatpush3.bf16.msra.mxu0 %v20007_v63  ;;  %v20019_v63 = vand.u32 4294901760, %v18159_v8  ;;  %v20022_v8 = vld [vmem:[#allocation54_spill] sm:$0xff] }
 0x71b   :  { %13941 = vmatpush3.bf16.msra.mxu1 %v20009_v17  ;;  %14135 = vmatprep.subr.bf16.mxu0 %v20010_v56  ;;  %v20023_v17 = vand.u32 4294901760, %v18169_v48 }
 0x71c   :  { %13943 = vmatprep.subr.bf16.mxu1 %v20011_v38  ;;  %v20025_v38 = vld [vmem:[#allocation83_spill] sm:$0xff] }
 0x71e   :  { %14137 = vmatpush3.bf16.msra.mxu0 %v20010_v56  ;;  %v20024_v56 = vand.u32 4294901760, %v18149_v7 }
 0x71f   :  { %13945 = vmatpush3.bf16.msra.mxu1 %v20012_v53  ;;  %14139 = vmatprep.subr.bf16.mxu0 %v20013_v19  ;;  %v20026_v53 = vld [vmem:[#allocation84_spill] sm:$0xff] }
 0x720   :  { %13947 = vmatprep.subr.bf16.mxu1 %v20014_v31  ;;  %v20032_v31 = vld [vmem:[#allocation91_spill] sm:$0xff] }
 0x722   :  { %14141 = vmatpush3.bf16.msra.mxu0 %v20013_v19  ;;  %v20027_v19 = vld [vmem:[#allocation85_spill] sm:$0xff] }
 0x723   :  { %13949 = vmatpush3.bf16.msra.mxu1 %v20015_v40  ;;  %14143 = vmatprep.subr.bf16.mxu0 %v20016_v58  ;;  %v20033_v40 = vld [vmem:[#allocation90_spill] sm:$0xff] }
 0x724   :  { %13951 = vmatprep.subr.bf16.mxu1 %v20017_v15  ;;  %v20037_v15 = vld [vmem:[#allocation95_spill] sm:$0xff] }
 0x726   :  { %14145 = vmatpush3.bf16.msra.mxu0 %v20016_v58  ;;  %v20036_v58 = vld [vmem:[#allocation93_spill] sm:$0xff] }
 0x727   :  { %13953 = vmatpush3.bf16.msra.mxu1 %v20018_v39  ;;  %14147 = vmatprep.subr.bf16.mxu0 %v19944_v26  ;;  %v20038_v39 = vld [vmem:[#allocation97_spill] sm:$0xff] }
 0x728   :  { %13955 = vmatprep.subr.bf16.mxu1 %v19943_v0 }
 0x729   :  { %11987 = vmatmul.mubr.f32.vlgmr.msra.gmra.mrb[8].mxu0 %v18169_v48  ;;  %v20028_v48 = vld [vmem:[#allocation86_spill] sm:$0xff] }
 0x72a   :  { %6570 = vmatmul.mubr.f32.vlgmr.msra.gmra.mrb[60].mxu1 %v18174_v35  ;;  %14149 = vmatpush3.bf16.msra.mxu0 %v19944_v26  ;;  %v20029_v35 = vld [vmem:[#allocation87_spill] sm:$0xff] }
 0x72b   :  { %6576 = vmatprep.mubr.f32.mxu1 %v18149_v7  ;;  %13957 = vmatpush3.bf16.msra.mxu1 %v19945_v22  ;;  %v20030_v7 = vld [vmem:[#allocation88_spill] sm:$0xff] }
 0x72c   :  { %12021 = vmatprep.mubr.f32.mxu0 %v20019_v63  ;;  %13959 = vmatprep.subr.bf16.mxu1 %v19946_v10  ;;  %v20039_v63 = vld [vmem:[#allocation96_spill] sm:$0xff] }
 0x72d   :  { %14151 = vmatprep.subr.bf16.mxu0 %v19947_v9 }
 0x72e   :  { %6579 = vmatmul.mubr.f32.gmra.mrb[62].mxu1 %v18177_v61  ;;  %14153 = vmatpush3.bf16.msra.mxu0 %v19947_v9  ;;  %v20035_v61 = vld [vmem:[#allocation94_spill] sm:$0xff] }
 0x72f   :  { %13961 = vmatpush3.bf16.msra.mxu1 %v19948_v34  ;;  %6683 = vmatprep.mubr.f32.mxu1 %v20020_v28  ;;  %v20040_v28 = vld [vmem:[#allocation25_spill] sm:$0xff] }
 0x730   :  { %13963 = vmatprep.subr.bf16.mxu1 %v19949_v41  ;;  %14155 = vmatprep.subr.bf16.mxu0 %v19950_v43 }
 0x732   :  { %14157 = vmatpush3.bf16.msra.mxu0 %v19950_v43 }
 0x733   :  { %13965 = vmatpush3.bf16.msra.mxu1 %v19951_v3  ;;  %14159 = vmatprep.subr.bf16.mxu0 %v19953_v37 }
 0x734   :  { %13967 = vmatprep.subr.bf16.mxu1 %v19952_v44 }
 0x736   :  { %14161 = vmatpush3.bf16.msra.mxu0 %v19953_v37 }
 0x737   :  { %13969 = vmatpush3.bf16.msra.mxu1 %v19954_v42  ;;  %14163 = vmatprep.subr.bf16.mxu0 %v19956_v29 }
 0x738   :  { %13971 = vmatprep.subr.bf16.mxu1 %v19955_v52 }
 0x73a   :  { %14165 = vmatpush3.bf16.msra.mxu0 %v19956_v29 }
 0x73b   :  { %13973 = vmatpush3.bf16.msra.mxu1 %v19957_v60  ;;  %14167 = vmatprep.subr.bf16.mxu0 %v19959_v47 }
 0x73c   :  { %13975 = vmatprep.subr.bf16.mxu1 %v19958_v36 }
 0x73e   :  { %14169 = vmatpush3.bf16.msra.mxu0 %v19959_v47 }
 0x73f   :  { %13977 = vmatpush3.bf16.msra.mxu1 %v19960_v25  ;;  %14171 = vmatprep.subr.bf16.mxu0 %v19962_v32 }
 0x740   :  { %13979 = vmatprep.subr.bf16.mxu1 %v19961_v20 }
 0x742   :  { %14173 = vmatpush3.bf16.msra.mxu0 %v19962_v32 }
 0x743   :  { %13981 = vmatpush3.bf16.msra.mxu1 %v19963_v21  ;;  %14175 = vmatprep.subr.bf16.mxu0 %v19965_v49 }
 0x744   :  { %13983 = vmatprep.subr.bf16.mxu1 %v19964_v18 }
 0x746   :  { %14177 = vmatpush3.bf16.msra.mxu0 %v19965_v49 }
 0x747   :  { %13985 = vmatpush3.bf16.msra.mxu1 %v19966_v45  ;;  %14179 = vmatprep.subr.bf16.mxu0 %v20021_v55 }
 0x748   :  { %13987 = vmatprep.subr.bf16.mxu1 %v20022_v8  ;;  %v20042_v8 = vld [vmem:[#allocation26_spill] sm:$0xff] }
 0x749   :  { %12022 = vmatmul.mubr.f32.vlgmr.msra.gmra.mrb[8].mxu0 %v20023_v17  ;;  %v20043_v17 = vld [vmem:[#allocation99_spill] sm:$0xff] }
 0x74a   :  { %6687 = vmatmul.mubr.f32.vlgmr.msra.gmra.mrb[64].mxu1 %v6175_v54  ;;  %14181 = vmatpush3.bf16.msra.mxu0 %v20021_v55  ;;  %v20031_v54 = vld [vmem:[#allocation89_spill] sm:$0xff]  ;;  %v20041_v55 = vld [vmem:[#allocation98_spill] sm:$0xff] }
 0x74b   :  { %6694 = vmatprep.mubr.f32.mxu1 %v20024_v56  ;;  %13989 = vmatpush3.bf16.msra.mxu1 %v20025_v38  ;;  %v20044_v56 = vld [vmem:[#allocation73_spill] sm:$0xff]  ;;  %v20045_v38 = vld [vmem:[#allocation70_spill] sm:$0xff] }
 0x74c   :  { %12056 = vmatprep.mubr.f32.mxu0 %v18142_v6  ;;  %13991 = vmatprep.subr.bf16.mxu1 %v20026_v53  ;;  %v20046_v53 = vld [vmem:[#allocation100_spill] sm:$0xff] }
 0x74d   :  { %14183 = vmatprep.subr.bf16.mxu0 %v20027_v19 }
 0x74e   :  { %6698 = vmatmul.mubr.f32.gmra.mrb[66].mxu1 %v6190_v51  ;;  %14185 = vmatpush3.bf16.msra.mxu0 %v20027_v19  ;;  %v20034_v51 = vld [vmem:[#allocation92_spill] sm:$0xff] }
 0x74f   :  { %13993 = vmatpush3.bf16.msra.mxu1 %v20028_v48  ;;  %6864 = vmatprep.mubr.f32.mxu1 %v18131_v30 }
 0x750   :  { %13995 = vmatprep.subr.bf16.mxu1 %v20029_v35  ;;  %14187 = vmatprep.subr.bf16.mxu0 %v20030_v7 }
 0x752   :  { %14189 = vmatpush3.bf16.msra.mxu0 %v20030_v7 }
 0x753   :  { %13997 = vmatpush3.bf16.msra.mxu1 %v20031_v54  ;;  %14191 = vmatprep.subr.bf16.mxu0 %v20032_v31 }
 0x754   :  { %13999 = vmatprep.subr.bf16.mxu1 %v20033_v40 }
 0x756   :  { %14193 = vmatpush3.bf16.msra.mxu0 %v20032_v31 }
 0x757   :  { %14001 = vmatpush3.bf16.msra.mxu1 %v20034_v51  ;;  %14195 = vmatprep.subr.bf16.mxu0 %v20035_v61 }
 0x758   :  { %14003 = vmatprep.subr.bf16.mxu1 %v20036_v58 }
 0x75a   :  { %14197 = vmatpush3.bf16.msra.mxu0 %v20035_v61 }
 0x75b   :  { %14005 = vmatpush3.bf16.msra.mxu1 %v20037_v15  ;;  %14199 = vmatprep.subr.bf16.mxu0 %v20038_v39 }
 0x75c   :  { %14007 = vmatprep.subr.bf16.mxu1 %v20039_v63 }
 0x75e   :  { %14201 = vmatpush3.bf16.msra.mxu0 %v20038_v39 }
 0x75f   :  { %14009 = vmatpush3.bf16.msra.mxu1 %v20040_v28  ;;  %14203 = vmatprep.subr.bf16.mxu0 %v20041_v55 }
 0x760   :  { %14011 = vmatprep.subr.bf16.mxu1 %v20042_v8 }
 0x762   :  { %14205 = vmatpush3.bf16.msra.mxu0 %v20041_v55 }
 0x763   :  { %14013 = vmatpush3.bf16.msra.mxu1 %v20043_v17  ;;  %14207 = vmatprep.subr.bf16.mxu0 %v20044_v56 }
 0x764   :  { %14015 = vmatprep.subr.bf16.mxu1 %v20045_v38 }
 0x766   :  { %14209 = vmatpush3.bf16.msra.mxu0 %v20044_v56 }
 0x767   :  { %14017 = vmatpush3.bf16.msra.mxu1 %v20046_v53  ;;  %14211 = vmatprep.subr.bf16.mxu0 %v19944_v26 }
 0x768   :  { %14019 = vmatprep.subr.bf16.mxu1 %v19943_v0 }
 0x769   :  { %12057 = vmatmul.mubr.f32.vlgmr.msra.gmra.mrb[8].mxu0 %v18154_v1 }
 0x76a   :  { %6866 = vmatmul.mubr.f32.vlgmr.msra.gmra.mrb[68].mxu1 %v18161_v4  ;;  %14213 = vmatpush3.bf16.msra.mxu0 %v19944_v26 }
 0x76b   :  { %6871 = vmatprep.mubr.f32.mxu1 %v18133_v11  ;;  %14021 = vmatpush3.bf16.msra.mxu1 %v19945_v22 }
 0x76c   :  { %12091 = vmatprep.mubr.f32.mxu0 %v18142_v6  ;;  %14023 = vmatprep.subr.bf16.mxu1 %v19946_v10 }
 0x76d   :  { %14215 = vmatprep.subr.bf16.mxu0 %v19947_v9 }
 0x76e   :  { %6873 = vmatmul.mubr.f32.gmra.mrb[70].mxu1 %v18163_v46  ;;  %14217 = vmatpush3.bf16.msra.mxu0 %v19947_v9 }
 0x76f   :  { %14025 = vmatpush3.bf16.msra.mxu1 %v19948_v34  ;;  %6975 = vmatprep.mubr.f32.mxu1 %v18131_v30 }
 0x770   :  { %14027 = vmatprep.subr.bf16.mxu1 %v19949_v41  ;;  %14219 = vmatprep.subr.bf16.mxu0 %v19950_v43 }
 0x772   :  { %14221 = vmatpush3.bf16.msra.mxu0 %v19950_v43 }
 0x773   :  { %14029 = vmatpush3.bf16.msra.mxu1 %v19951_v3  ;;  %14223 = vmatprep.subr.bf16.mxu0 %v19953_v37 }
 0x774   :  { %14031 = vmatprep.subr.bf16.mxu1 %v19952_v44 }
 0x776   :  { %14225 = vmatpush3.bf16.msra.mxu0 %v19953_v37 }
 0x777   :  { %14033 = vmatpush3.bf16.msra.mxu1 %v19954_v42  ;;  %14227 = vmatprep.subr.bf16.mxu0 %v19956_v29 }
 0x778   :  { %14035 = vmatprep.subr.bf16.mxu1 %v19955_v52 }
 0x77a   :  { %14229 = vmatpush3.bf16.msra.mxu0 %v19956_v29 }
 0x77b   :  { %14037 = vmatpush3.bf16.msra.mxu1 %v19957_v60  ;;  %14231 = vmatprep.subr.bf16.mxu0 %v19959_v47 }
 0x77c   :  { %14039 = vmatprep.subr.bf16.mxu1 %v19958_v36 }
 0x77e   :  { %14233 = vmatpush3.bf16.msra.mxu0 %v19959_v47 }
 0x77f   :  { %14041 = vmatpush3.bf16.msra.mxu1 %v19960_v25  ;;  %14235 = vmatprep.subr.bf16.mxu0 %v19962_v32 }
 0x780   :  { %14043 = vmatprep.subr.bf16.mxu1 %v19961_v20 }
 0x782   :  { %14237 = vmatpush3.bf16.msra.mxu0 %v19962_v32 }
 0x783   :  { %14045 = vmatpush3.bf16.msra.mxu1 %v19963_v21  ;;  %14239 = vmatprep.subr.bf16.mxu0 %v19965_v49 }
 0x784   :  { %14047 = vmatprep.subr.bf16.mxu1 %v19964_v18 }
 0x786   :  { %14241 = vmatpush3.bf16.msra.mxu0 %v19965_v49 }
 0x787   :  { %14049 = vmatpush3.bf16.msra.mxu1 %v19966_v45  ;;  %14386 = vmatprep.subr.bf16.mxu0 %v19909_v23 }
 0x788   :  { %14242 = vmatprep.subr.bf16.mxu1 %v19909_v23 }
 0x789   :  { %12092 = vmatmul.mubr.f32.vlgmr.msra.gmra.mrb[8].mxu0 %v18154_v1 }
 0x78a   :  { %6977 = vmatmul.mubr.f32.vlgmr.msra.gmra.mrb[72].mxu1 %v18161_v4  ;;  %14388 = vmatpush3.bf16.msra.mxu0 %v19910_v27 }
 0x78b   :  { %6982 = vmatprep.mubr.f32.mxu1 %v18133_v11  ;;  %14244 = vmatpush3.bf16.msra.mxu1 %v19910_v27 }
 0x78c   :  { %14245 = vmatprep.subr.bf16.mxu1 %v19909_v23  ;;  %14389 = vmatprep.subr.bf16.mxu0 %v19909_v23 }
 0x78d   :  { %12336 = vmatprep.mubr.msk.f32.mxu0 %vm14694_vm4, %v19911_v14 }
 0x78e   :  { %6984 = vmatmul.mubr.f32.gmra.mrb[74].mxu1 %v18163_v46  ;;  %14391 = vmatpush3.bf16.msra.mxu0 %v19912_v50 }
 0x78f   :  { %14247 = vmatpush3.bf16.msra.mxu1 %v19912_v50  ;;  %14392 = vmatprep.subr.bf16.mxu0 %v19909_v23 }
 0x790   :  { %14248 = vmatprep.subr.bf16.mxu1 %v19909_v23  ;;  %12126 = vmatprep.mubr.msk.f32.mxu1 %vm14694_vm4, %v19911_v14 }
 0x792   :  { %14394 = vmatpush3.bf16.msra.mxu0 %v19913_v2 }
 0x793   :  { %14250 = vmatpush3.bf16.msra.mxu1 %v19913_v2  ;;  %14395 = vmatprep.subr.bf16.mxu0 %v19909_v23 }
 0x794   :  { %14251 = vmatprep.subr.bf16.mxu1 %v19909_v23 }
 0x796   :  { %14397 = vmatpush3.bf16.msra.mxu0 %v19914_v5 }
 0x797   :  { %14253 = vmatpush3.bf16.msra.mxu1 %v19914_v5  ;;  %14398 = vmatprep.subr.bf16.mxu0 %v19909_v23 }
 0x798   :  { %14254 = vmatprep.subr.bf16.mxu1 %v19909_v23 }
 0x79a   :  { %14400 = vmatpush3.bf16.msra.mxu0 %v19915_v57 }
 0x79b   :  { %14256 = vmatpush3.bf16.msra.mxu1 %v19915_v57  ;;  %14401 = vmatprep.subr.bf16.mxu0 %v19909_v23 }
 0x79c   :  { %14257 = vmatprep.subr.bf16.mxu1 %v19909_v23 }
 0x79e   :  { %14403 = vmatpush3.bf16.msra.mxu0 %v19916_v12 }
 0x79f   :  { %14259 = vmatpush3.bf16.msra.mxu1 %v19916_v12  ;;  %14404 = vmatprep.subr.bf16.mxu0 %v19909_v23 }
 0x7a0   :  { %14260 = vmatprep.subr.bf16.mxu1 %v19909_v23 }
 0x7a2   :  { %14406 = vmatpush3.bf16.msra.mxu0 %v19917_v24 }
 0x7a3   :  { %14262 = vmatpush3.bf16.msra.mxu1 %v19917_v24  ;;  %14407 = vmatprep.subr.bf16.mxu0 %v19909_v23 }
 0x7a4   :  { %14263 = vmatprep.subr.bf16.mxu1 %v19909_v23 }
 0x7a6   :  { %14409 = vmatpush3.bf16.msra.mxu0 %v19918_v13 }
 0x7a7   :  { %14265 = vmatpush3.bf16.msra.mxu1 %v19918_v13  ;;  %14410 = vmatprep.subr.bf16.mxu0 %v19909_v23 }
 0x7a8   :  { %14266 = vmatprep.subr.bf16.mxu1 %v19909_v23 }
 0x7bd   :  { %v10116_v30 = vpop.f32.mrb[52].mxu1 }
 0x7be   :  { %v10117_v0 = vpop.f32.mrb[53].mxu1 }
 0x7bf   :  { %v10118_v26 = vadd.f32 %v10117_v0, %v10116_v30 }
 0x7c1   :  { %v10119_v22 = vpop.f32.mrb[54].mxu1 }
 0x7c2   :  { %v10120_v10 = vpop.f32.mrb[55].mxu1 }
 0x7c3   :  { %v10121_v9 = vadd.f32 %v10120_v10, %v10119_v22 }
 0x7dd   :  { %v10154_v34 = vpop.f32.mrb[56].mxu1 }
 0x7de   :  { %v10155_v41 = vpop.f32.mrb[57].mxu1 }
 0x7df   :  { %v10156_v43 = vadd.f32 %v10155_v41, %v10154_v34 }
 0x7e1   :  { %v6427_v3 = vadd.f32 %v10156_v43, %v10118_v26  ;;  %v10157_v44 = vpop.f32.mrb[58].mxu1 }
 0x7e2   :  { %v10158_v37 = vpop.f32.mrb[59].mxu1 }
 0x7e3   :  { %v10159_v42 = vadd.f32 %v10158_v37, %v10157_v44 }
 0x7e5   :  { %v6434_v52 = vadd.f32 %v10159_v42, %v10121_v9 }
 0x7fd   :  { %v10192_v29 = vpop.f32.mrb[60].mxu1 }
 0x7fe   :  { %v10193_v60 = vpop.f32.mrb[61].mxu1 }
 0x7ff   :  { %v10194_v36 = vadd.f32 %v10193_v60, %v10192_v29 }
 0x801   :  { %v6572_v47 = vadd.f32 %v10194_v36, %v6427_v3  ;;  %v10195_v25 = vpop.f32.mrb[62].mxu1 }
 0x802   :  { %v10196_v20 = vpop.f32.mrb[63].mxu1 }
 0x803   :  { %v10197_v32 = vadd.f32 %v10196_v20, %v10195_v25 }
 0x805   :  { %v6581_v21 = vadd.f32 %v10197_v32, %v6434_v52 }
 0x81d   :  { %v10230_v18 = vpop.f32.mrb[64].mxu1 }
 0x81e   :  { %v10231_v49 = vpop.f32.mrb[65].mxu1 }
 0x81f   :  { %v10232_v45 = vadd.f32 %v10231_v49, %v10230_v18 }
 0x821   :  { %v6689_v4 = vadd.f32 %v10232_v45, %v6572_v47  ;;  %v10233_v11 = vpop.f32.mrb[66].mxu1 }
 0x822   :  { %v10234_v6 = vpop.f32.mrb[67].mxu1 }
 0x823   :  { %v10235_v1 = vadd.f32 %v10234_v6, %v10233_v11  ;;  %v20051_v11 = vld [vmem:[#allocation123_spill] sm:$0xff]  ;;  %v20052_v6 = vld [vmem:[#allocation124_spill] sm:$0xff] }
 0x825   :  { %v6700_v46 = vadd.f32 %v10235_v1, %v6581_v21  ;;  %v20053_v1 = vld [vmem:[#allocation125_spill] sm:$0xff] }
 0x83d   :  { %v10268_v19 = vpop.f32.mrb[68].mxu1 }
 0x83e   :  { %v10269_v48 = vpop.f32.mrb[69].mxu1 }
 0x83f   :  { %v10270_v35 = vadd.f32 %v10269_v48, %v10268_v19  ;;  %v20055_v19 = vld [vmem:[#allocation127_spill] sm:$0xff]  ;;  %v20056_v48 = vld [vmem:[#allocation128_spill] sm:$0xff] }
 0x841   :  { %v6868_v7 = vadd.f32 %v10270_v35, %v6689_v4  ;;  %v10271_v54 = vpop.f32.mrb[70].mxu1  ;;  %v20057_v35 = vld [vmem:[#allocation129_spill] sm:$0xff] }
 0x842   :  { %v10272_v31 = vpop.f32.mrb[71].mxu1 }
 0x843   :  { %v10273_v40 = vadd.f32 %v10272_v31, %v10271_v54  ;;  %v20059_v54 = vld [vmem:[#allocation133_spill] sm:$0xff]  ;;  %v20060_v31 = vld [vmem:[#allocation134_spill] sm:$0xff] }
 0x845   :  { %v6875_v51 = vadd.f32 %v10273_v40, %v6700_v46  ;;  %v20054_v46 = vld [vmem:[#allocation126_spill] sm:$0xff]  ;;  %v20061_v40 = vld [vmem:[#allocation135_spill] sm:$0xff] }
 0x85c   :  { %v12093_v61 = vpop.f32.mrb[8].mxu0 }
 0x85d   :  { %v10306_v58 = vpop.f32.mrb[72].mxu1  ;;  %v7663_v15 = vpop.f32.mrb[9].mxu0 }
 0x85e   :  { %v10307_v39 = vpop.f32.mrb[73].mxu1 }
 0x85f   :  { %v10308_v63 = vadd.f32 %v10307_v39, %v10306_v58  ;;  %v20064_v58 = vld [vmem:[#allocation138_spill] sm:$0xff]  ;;  %v20066_v39 = vld [vmem:[#allocation140_spill] sm:$0xff] }
 0x861   :  { %v6979_v28 = vadd.f32 %v10308_v63, %v6868_v7  ;;  %v10309_v55 = vpop.f32.mrb[74].mxu1  ;;  %v20058_v7 = vld [vmem:[#allocation130_spill] sm:$0xff] }
 0x862   :  { %v10310_v8 = vpop.f32.mrb[75].mxu1 }
 0x863   :  { %v18429_v17 = vadd.f32 %v7663_v15, %v6979_v28  ;;  %v10311_v56 = vadd.f32 %v10310_v8, %v10309_v55  ;;  %v20065_v15 = vld [vmem:[#allocation139_spill] sm:$0xff]  ;;  %v74_v55 = vld [vmem:[%s18672_s3 + $0x5] sm:$0x1] }
 0x865   :  { %v6986_v38 = vadd.f32 %v10311_v56, %v6875_v51  ;;  %v7680_v30 = vmul.f32 %v18429_v17, %v18429_v17  ;;  %v20062_v51 = vld [vmem:[#allocation136_spill] sm:$0xff] }
 0x866   :  { %v20067_v56 = vld [vmem:[#allocation152_spill] sm:$0xff] }
 0x867   :  { %v18431_v53 = vadd.f32 %v12093_v61, %v6986_v38  ;;  %v20063_v61 = vld [vmem:[#allocation137_spill] sm:$0xff] }
 0x869   :  { %v7673_v0 = vadd.f32 %v18429_v17, %v18431_v53  ;;  %v7681_v26 = vmul.f32 %v18431_v53, %v18431_v53 }
 0x86b   :  { %v7674_v22 = vrot.slane %v7673_v0, 4  ;;  %v7682_v10 = vadd.f32 %v7681_v26, %v7680_v30 }
 0x86d   :  { %v7675_v9 = vadd.f32 %v7674_v22, %v7673_v0  ;;  %v7683_v34 = vrot.slane %v7682_v10, 4 }
 0x86f   :  { %v7676_v41 = vrot.slane %v7675_v9, 2  ;;  %v7684_v43 = vadd.f32 %v7683_v34, %v7682_v10  ;;  %v14639_v34 = vld [vmem:[%s18669_s0] sm:$0xff] }
 0x871   :  { %v7677_v3 = vadd.f32 %v7676_v41, %v7675_v9  ;;  %v7685_v44 = vrot.slane %v7684_v43, 2 }
 0x873   :  { %v7678_v37 = vrot.slane %v7677_v3, 1  ;;  %v7686_v42 = vadd.f32 %v7685_v44, %v7684_v43  ;;  %v14640_v43 = vld [vmem:[%s18669_s0 + $0x8] sm:$0xff] }
 0x875   :  { %v7679_v52 = vadd.f32 %v7678_v37, %v7677_v3  ;;  %v7687_v29 = vrot.slane %v7686_v42, 1 }
 0x877   :  { %v18439_v60 = vand.u32 4294901760, %v7679_v52  ;;  %v7688_v36 = vadd.f32 %v7687_v29, %v7686_v42 }
 0x879   :  { %v18442_v47 = vsub.f32 %v7679_v52, %v18439_v60  ;;  %v18444_v25 = vand.u32 4294901760, %v7688_v36 }
 0x87b   :  { %v7772_v20 = vand.u32 4294901760, %v18442_v47  ;;  %v18448_v32 = vsub.f32 %v7688_v36, %v18444_v25 }
 0x87d   :  { %v7773_v21 = vsub.f32 %v18442_v47, %v7772_v20  ;;  %v8414_v18 = vand.u32 4294901760, %v18448_v32 }
 0x87f   :  { %v7774_v49 = vand.u32 4294901760, %v7773_v21  ;;  %v8415_v45 = vsub.f32 %v18448_v32, %v8414_v18 }
 0x881   :  { %12127 = vmatmul.mubr.f32.vlgmr.msra.gmra.mrb[76].mxu1 %v7774_v49  ;;  %v8416_v4 = vand.u32 4294901760, %v8415_v45 }
 0x882   :  { %14268 = vmatpush3.bf16.msra.mxu1 %v19919_v59  ;;  %12161 = vmatprep.mubr.msk.f32.mxu1 %vm14694_vm4, %v19911_v14 }
 0x883   :  { %12337 = vmatmul.mubr.f32.vlgmr.msra.gmra.mrb[10].mxu0 %v8416_v4  ;;  %14269 = vmatprep.subr.bf16.mxu1 %v19909_v23 }
 0x884   :  { %14412 = vmatpush3.bf16.msra.mxu0 %v19919_v59  ;;  %12371 = vmatprep.mubr.msk.f32.mxu0 %vm14694_vm4, %v19911_v14  ;;  %v20047_v59 = vld [vmem:[#allocation119_spill] sm:$0xff] }
 0x885   :  { %14413 = vmatprep.subr.bf16.mxu0 %v19909_v23 }
 0x886   :  { %14271 = vmatpush3.bf16.msra.mxu1 %v19920_v62 }
 0x887   :  { %14272 = vmatprep.subr.bf16.mxu1 %v19909_v23 }
 0x888   :  { %14415 = vmatpush3.bf16.msra.mxu0 %v19920_v62  ;;  %v20048_v62 = vld [vmem:[#allocation120_spill] sm:$0xff] }
 0x889   :  { %14416 = vmatprep.subr.bf16.mxu0 %v19909_v23 }
 0x88a   :  { %14274 = vmatpush3.bf16.msra.mxu1 %v19921_v33 }
 0x88b   :  { %14275 = vmatprep.subr.bf16.mxu1 %v19909_v23 }
 0x88c   :  { %14418 = vmatpush3.bf16.msra.mxu0 %v19921_v33  ;;  %v20049_v33 = vld [vmem:[#allocation121_spill] sm:$0xff] }
 0x88d   :  { %14419 = vmatprep.subr.bf16.mxu0 %v19909_v23 }
 0x88e   :  { %14277 = vmatpush3.bf16.msra.mxu1 %v19922_v16 }
 0x88f   :  { %14278 = vmatprep.subr.bf16.mxu1 %v19909_v23 }
 0x890   :  { %14421 = vmatpush3.bf16.msra.mxu0 %v19922_v16  ;;  %v20050_v16 = vld [vmem:[#allocation122_spill] sm:$0xff] }
 0x891   :  { %14422 = vmatprep.subr.bf16.mxu0 %v19909_v23 }
 0x892   :  { %14280 = vmatpush3.bf16.msra.mxu1 %v20047_v59 }
 0x893   :  { %14281 = vmatprep.subr.bf16.mxu1 %v19909_v23 }
 0x894   :  { %14424 = vmatpush3.bf16.msra.mxu0 %v20047_v59 }
 0x895   :  { %14425 = vmatprep.subr.bf16.mxu0 %v19909_v23 }
 0x896   :  { %14283 = vmatpush3.bf16.msra.mxu1 %v20048_v62 }
 0x897   :  { %14284 = vmatprep.subr.bf16.mxu1 %v19909_v23 }
 0x898   :  { %14427 = vmatpush3.bf16.msra.mxu0 %v20048_v62 }
 0x899   :  { %14428 = vmatprep.subr.bf16.mxu0 %v19909_v23 }
 0x89a   :  { %14286 = vmatpush3.bf16.msra.mxu1 %v20049_v33 }
 0x89b   :  { %14287 = vmatprep.subr.bf16.mxu1 %v19909_v23 }
 0x89c   :  { %14430 = vmatpush3.bf16.msra.mxu0 %v20049_v33 }
 0x89d   :  { %14431 = vmatprep.subr.bf16.mxu0 %v19909_v23 }
 0x89e   :  { %14289 = vmatpush3.bf16.msra.mxu1 %v20050_v16 }
 0x89f   :  { %14290 = vmatprep.subr.bf16.mxu1 %v19909_v23 }
 0x8a0   :  { %14433 = vmatpush3.bf16.msra.mxu0 %v20050_v16 }
 0x8a1   :  { %12162 = vmatmul.mubr.f32.vlgmr.msra.gmra.mrb[76].mxu1 %v18439_v60  ;;  %14434 = vmatprep.subr.bf16.mxu0 %v19909_v23 }
 0x8a2   :  { %14292 = vmatpush3.bf16.msra.mxu1 %v20051_v11  ;;  %12196 = vmatprep.mubr.msk.f32.mxu1 %vm14694_vm4, %v19911_v14 }
 0x8a3   :  { %12372 = vmatmul.mubr.f32.vlgmr.msra.gmra.mrb[10].mxu0 %v18444_v25  ;;  %14293 = vmatprep.subr.bf16.mxu1 %v19909_v23 }
 0x8a4   :  { %14436 = vmatpush3.bf16.msra.mxu0 %v20051_v11  ;;  %12406 = vmatprep.mubr.msk.f32.mxu0 %vm14694_vm4, %v19911_v14 }
 0x8a5   :  { %14437 = vmatprep.subr.bf16.mxu0 %v19909_v23 }
 0x8a6   :  { %14295 = vmatpush3.bf16.msra.mxu1 %v20052_v6 }
 0x8a7   :  { %14296 = vmatprep.subr.bf16.mxu1 %v19909_v23 }
 0x8a8   :  { %14439 = vmatpush3.bf16.msra.mxu0 %v20052_v6 }
 0x8a9   :  { %14440 = vmatprep.subr.bf16.mxu0 %v19909_v23 }
 0x8aa   :  { %14298 = vmatpush3.bf16.msra.mxu1 %v20053_v1 }
 0x8ab   :  { %14299 = vmatprep.subr.bf16.mxu1 %v19909_v23 }
 0x8ac   :  { %14442 = vmatpush3.bf16.msra.mxu0 %v20053_v1 }
 0x8ad   :  { %14443 = vmatprep.subr.bf16.mxu0 %v19909_v23 }
 0x8ae   :  { %14301 = vmatpush3.bf16.msra.mxu1 %v20054_v46 }
 0x8af   :  { %14302 = vmatprep.subr.bf16.mxu1 %v19909_v23 }
 0x8b0   :  { %14445 = vmatpush3.bf16.msra.mxu0 %v20054_v46 }
 0x8b1   :  { %14446 = vmatprep.subr.bf16.mxu0 %v19909_v23 }
 0x8b2   :  { %14304 = vmatpush3.bf16.msra.mxu1 %v20055_v19 }
 0x8b3   :  { %14305 = vmatprep.subr.bf16.mxu1 %v19909_v23 }
 0x8b4   :  { %14448 = vmatpush3.bf16.msra.mxu0 %v20055_v19 }
 0x8b5   :  { %14449 = vmatprep.subr.bf16.mxu0 %v19909_v23 }
 0x8b6   :  { %14307 = vmatpush3.bf16.msra.mxu1 %v20056_v48 }
 0x8b7   :  { %14308 = vmatprep.subr.bf16.mxu1 %v19909_v23 }
 0x8b8   :  { %14451 = vmatpush3.bf16.msra.mxu0 %v20056_v48 }
 0x8b9   :  { %14452 = vmatprep.subr.bf16.mxu0 %v19909_v23 }
 0x8ba   :  { %14310 = vmatpush3.bf16.msra.mxu1 %v20057_v35 }
 0x8bb   :  { %14311 = vmatprep.subr.bf16.mxu1 %v19909_v23 }
 0x8bc   :  { %14454 = vmatpush3.bf16.msra.mxu0 %v20057_v35 }
 0x8bd   :  { %14455 = vmatprep.subr.bf16.mxu0 %v19909_v23 }
 0x8be   :  { %14313 = vmatpush3.bf16.msra.mxu1 %v20058_v7 }
 0x8bf   :  { %14314 = vmatprep.subr.bf16.mxu1 %v19909_v23 }
 0x8c0   :  { %14457 = vmatpush3.bf16.msra.mxu0 %v20058_v7 }
 0x8c1   :  { %12197 = vmatmul.mubr.f32.vlgmr.msra.gmra.mrb[76].mxu1 %v18442_v47  ;;  %14458 = vmatprep.subr.bf16.mxu0 %v19909_v23 }
 0x8c2   :  { %14316 = vmatpush3.bf16.msra.mxu1 %v19910_v27  ;;  %12231 = vmatprep.mubr.msk.f32.mxu1 %vm14694_vm4, %v19911_v14 }
 0x8c3   :  { %12407 = vmatmul.mubr.f32.vlgmr.msra.gmra.mrb[10].mxu0 %v18448_v32  ;;  %14317 = vmatprep.subr.bf16.mxu1 %v19909_v23 }
 0x8c4   :  { %14460 = vmatpush3.bf16.msra.mxu0 %v19910_v27  ;;  %12441 = vmatprep.mubr.msk.f32.mxu0 %vm14694_vm4, %v19911_v14 }
 0x8c5   :  { %14461 = vmatprep.subr.bf16.mxu0 %v19909_v23 }
 0x8c6   :  { %14319 = vmatpush3.bf16.msra.mxu1 %v19912_v50 }
 0x8c7   :  { %14320 = vmatprep.subr.bf16.mxu1 %v19909_v23 }
 0x8c8   :  { %14463 = vmatpush3.bf16.msra.mxu0 %v19912_v50 }
 0x8c9   :  { %14464 = vmatprep.subr.bf16.mxu0 %v19909_v23 }
 0x8ca   :  { %14322 = vmatpush3.bf16.msra.mxu1 %v19913_v2 }
 0x8cb   :  { %14323 = vmatprep.subr.bf16.mxu1 %v19909_v23 }
 0x8cc   :  { %14466 = vmatpush3.bf16.msra.mxu0 %v19913_v2 }
 0x8cd   :  { %14467 = vmatprep.subr.bf16.mxu0 %v19909_v23 }
 0x8ce   :  { %14325 = vmatpush3.bf16.msra.mxu1 %v19914_v5 }
 0x8cf   :  { %14326 = vmatprep.subr.bf16.mxu1 %v19909_v23 }
 0x8d0   :  { %14469 = vmatpush3.bf16.msra.mxu0 %v19914_v5 }
 0x8d1   :  { %14470 = vmatprep.subr.bf16.mxu0 %v19909_v23 }
 0x8d2   :  { %14328 = vmatpush3.bf16.msra.mxu1 %v19915_v57 }
 0x8d3   :  { %14329 = vmatprep.subr.bf16.mxu1 %v19909_v23 }
 0x8d4   :  { %14472 = vmatpush3.bf16.msra.mxu0 %v19915_v57 }
 0x8d5   :  { %14473 = vmatprep.subr.bf16.mxu0 %v19909_v23 }
 0x8d6   :  { %14331 = vmatpush3.bf16.msra.mxu1 %v19916_v12 }
 0x8d7   :  { %14332 = vmatprep.subr.bf16.mxu1 %v19909_v23 }
 0x8d8   :  { %14475 = vmatpush3.bf16.msra.mxu0 %v19916_v12 }
 0x8d9   :  { %14476 = vmatprep.subr.bf16.mxu0 %v19909_v23 }
 0x8da   :  { %14334 = vmatpush3.bf16.msra.mxu1 %v19917_v24 }
 0x8db   :  { %14335 = vmatprep.subr.bf16.mxu1 %v19909_v23 }
 0x8dc   :  { %14478 = vmatpush3.bf16.msra.mxu0 %v19917_v24 }
 0x8dd   :  { %14479 = vmatprep.subr.bf16.mxu0 %v19909_v23 }
 0x8de   :  { %14337 = vmatpush3.bf16.msra.mxu1 %v19918_v13 }
 0x8df   :  { %14338 = vmatprep.subr.bf16.mxu1 %v19909_v23 }
 0x8e0   :  { %14481 = vmatpush3.bf16.msra.mxu0 %v19918_v13 }
 0x8e1   :  { %12232 = vmatmul.mubr.f32.vlgmr.msra.gmra.mrb[76].mxu1 %v7772_v20  ;;  %14482 = vmatprep.subr.bf16.mxu0 %v19909_v23 }
 0x8e2   :  { %14340 = vmatpush3.bf16.msra.mxu1 %v20059_v54  ;;  %12266 = vmatprep.mubr.msk.f32.mxu1 %vm14694_vm4, %v19911_v14 }
 0x8e3   :  { %12442 = vmatmul.mubr.f32.vlgmr.msra.gmra.mrb[10].mxu0 %v8414_v18  ;;  %14341 = vmatprep.subr.bf16.mxu1 %v19909_v23 }
 0x8e4   :  { %14484 = vmatpush3.bf16.msra.mxu0 %v20059_v54  ;;  %12476 = vmatprep.mubr.msk.f32.mxu0 %vm14694_vm4, %v19911_v14 }
 0x8e5   :  { %14485 = vmatprep.subr.bf16.mxu0 %v19909_v23 }
 0x8e6   :  { %14343 = vmatpush3.bf16.msra.mxu1 %v20060_v31 }
 0x8e7   :  { %14344 = vmatprep.subr.bf16.mxu1 %v19909_v23 }
 0x8e8   :  { %14487 = vmatpush3.bf16.msra.mxu0 %v20060_v31 }
 0x8e9   :  { %14488 = vmatprep.subr.bf16.mxu0 %v19909_v23 }
 0x8ea   :  { %14346 = vmatpush3.bf16.msra.mxu1 %v20061_v40 }
 0x8eb   :  { %14347 = vmatprep.subr.bf16.mxu1 %v19909_v23 }
 0x8ec   :  { %14490 = vmatpush3.bf16.msra.mxu0 %v20061_v40 }
 0x8ed   :  { %14491 = vmatprep.subr.bf16.mxu0 %v19909_v23 }
 0x8ee   :  { %14349 = vmatpush3.bf16.msra.mxu1 %v20062_v51 }
 0x8ef   :  { %14350 = vmatprep.subr.bf16.mxu1 %v19909_v23 }
 0x8f0   :  { %14493 = vmatpush3.bf16.msra.mxu0 %v20062_v51 }
 0x8f1   :  { %14494 = vmatprep.subr.bf16.mxu0 %v19909_v23 }
 0x8f2   :  { %14352 = vmatpush3.bf16.msra.mxu1 %v20063_v61 }
 0x8f3   :  { %14353 = vmatprep.subr.bf16.mxu1 %v19909_v23 }
 0x8f4   :  { %14496 = vmatpush3.bf16.msra.mxu0 %v20063_v61 }
 0x8f5   :  { %14497 = vmatprep.subr.bf16.mxu0 %v19909_v23 }
 0x8f6   :  { %14355 = vmatpush3.bf16.msra.mxu1 %v20064_v58 }
 0x8f7   :  { %14356 = vmatprep.subr.bf16.mxu1 %v19909_v23 }
 0x8f8   :  { %14499 = vmatpush3.bf16.msra.mxu0 %v20064_v58 }
 0x8f9   :  { %14500 = vmatprep.subr.bf16.mxu0 %v19909_v23 }
 0x8fa   :  { %14358 = vmatpush3.bf16.msra.mxu1 %v20065_v15 }
 0x8fb   :  { %14359 = vmatprep.subr.bf16.mxu1 %v19909_v23 }
 0x8fc   :  { %14502 = vmatpush3.bf16.msra.mxu0 %v20065_v15 }
 0x8fd   :  { %14503 = vmatprep.subr.bf16.mxu0 %v19909_v23 }
 0x8fe   :  { %14361 = vmatpush3.bf16.msra.mxu1 %v20066_v39 }
 0x8ff   :  { %14362 = vmatprep.subr.bf16.mxu1 %v19909_v23 }
 0x900   :  { %14505 = vmatpush3.bf16.msra.mxu0 %v20066_v39 }
 0x901   :  { %12267 = vmatmul.mubr.f32.vlgmr.msra.gmra.mrb[76].mxu1 %v18439_v60  ;;  %14506 = vmatprep.subr.bf16.mxu0 %v19909_v23 }
 0x902   :  { %14364 = vmatpush3.bf16.msra.mxu1 %v19910_v27  ;;  %12301 = vmatprep.mubr.msk.f32.mxu1 %vm14694_vm4, %v19911_v14 }
 0x903   :  { %12477 = vmatmul.mubr.f32.vlgmr.msra.gmra.mrb[10].mxu0 %v18444_v25  ;;  %14365 = vmatprep.subr.bf16.mxu1 %v19909_v23 }
 0x904   :  { %14508 = vmatpush3.bf16.msra.mxu0 %v19910_v27  ;;  %12511 = vmatprep.mubr.msk.f32.mxu0 %vm14694_vm4, %v19911_v14 }
 0x905   :  { %14509 = vmatprep.subr.bf16.mxu0 %v19909_v23 }
 0x906   :  { %14367 = vmatpush3.bf16.msra.mxu1 %v19912_v50 }
 0x907   :  { %14368 = vmatprep.subr.bf16.mxu1 %v19909_v23 }
 0x908   :  { %14511 = vmatpush3.bf16.msra.mxu0 %v19912_v50 }
 0x909   :  { %14512 = vmatprep.subr.bf16.mxu0 %v19909_v23 }
 0x90a   :  { %14370 = vmatpush3.bf16.msra.mxu1 %v19913_v2 }
 0x90b   :  { %14371 = vmatprep.subr.bf16.mxu1 %v19909_v23 }
 0x90c   :  { %14514 = vmatpush3.bf16.msra.mxu0 %v19913_v2 }
 0x90d   :  { %14515 = vmatprep.subr.bf16.mxu0 %v19909_v23 }
 0x90e   :  { %14373 = vmatpush3.bf16.msra.mxu1 %v19914_v5 }
 0x90f   :  { %14374 = vmatprep.subr.bf16.mxu1 %v19909_v23 }
 0x910   :  { %14517 = vmatpush3.bf16.msra.mxu0 %v19914_v5 }
 0x911   :  { %14518 = vmatprep.subr.bf16.mxu0 %v19909_v23 }
 0x912   :  { %14376 = vmatpush3.bf16.msra.mxu1 %v19915_v57 }
 0x913   :  { %14377 = vmatprep.subr.bf16.mxu1 %v19909_v23 }
 0x914   :  { %14520 = vmatpush3.bf16.msra.mxu0 %v19915_v57 }
 0x915   :  { %14521 = vmatprep.subr.bf16.mxu0 %v19909_v23 }
 0x916   :  { %14379 = vmatpush3.bf16.msra.mxu1 %v19916_v12 }
 0x917   :  { %14380 = vmatprep.subr.bf16.mxu1 %v19909_v23 }
 0x918   :  { %14523 = vmatpush3.bf16.msra.mxu0 %v19916_v12 }
 0x919   :  { %14524 = vmatprep.subr.bf16.mxu0 %v19909_v23 }
 0x91a   :  { %14382 = vmatpush3.bf16.msra.mxu1 %v19917_v24 }
 0x91b   :  { %14383 = vmatprep.subr.bf16.mxu1 %v19909_v23 }
 0x91c   :  { %14526 = vmatpush3.bf16.msra.mxu0 %v19917_v24 }
 0x91d   :  { %14527 = vmatprep.subr.bf16.mxu0 %v19909_v23  ;;  %v73_v23 = vld [vmem:[%s18672_s3 + $0x4] sm:$0x1] }
 0x91e   :  { %14385 = vmatpush3.bf16.msra.mxu1 %v19918_v13 }
 0x920   :  { %14529 = vmatpush3.bf16.msra.mxu0 %v19918_v13 }
 0x921   :  { %12302 = vmatmul.mubr.f32.vlgmr.msra.gmra.mrb[76].mxu1 %v18439_v60 }
 0x923   :  { %12512 = vmatmul.mubr.f32.vlgmr.msra.gmra.mrb[10].mxu0 %v18444_v25 }
 0x9f4   :  { %v8326_v27 = vpop.f32.mrb[76].mxu1 }
 0x9f5   :  { %v8330_v14 = vmul.f32 0.001953125, %v8326_v27  ;;  %v12303_v50 = vpop.f32.mrb[77].mxu1 }
 0x9f6   :  { %v8968_v2 = vpop.f32.mrb[10].mxu0 }
 0x9f7   :  { %v8973_v5 = vmul.f32 %v8330_v14, %v8330_v14  ;;  %v8972_v57 = vmul.f32 0.001953125, %v8968_v2  ;;  %v12513_v12 = vpop.f32.mrb[11].mxu0 }
 0x9f9   :  { %v8974_v63 = vsub.f32 %v8972_v57, %v8973_v5 }
 0x9fb   :  { %v8975_v28 = vadd.f32 1e-05, %v8974_v63 }
 0x9fd   :  { %14637 = vrsqrt.f32 %v8975_v28 }
 0xa07   :  { %v14638_v24 = vpop.eup %14637 }
 0xa08   :  { %v8977_v13 = vmul.f32 %v14638_v24, %v73_v23 }
 0xa0a   :  { %v8978_v8 = vmul.f32 %v8977_v13, %v8330_v14  ;;  %v8983_v38 = vrot.slane %v8977_v13, %v20067_v56 }
 0xa0c   :  { %v8979_v30 = vsub.f32 %v74_v55, %v8978_v8  ;;  %v8984_v0 = vmul.f32 %v18429_v17, %v8983_v38  ;;  %v8985_v26 = vmul.f32 %v18431_v53, %v8983_v38 }
 0xa0e   :  { %v8989_v22 = vrot.slane %v8979_v30, %v20067_v56 }
 0xa10   :  { %v8990_v10 = vadd.f32 %v8989_v22, %v8984_v0  ;;  %v8991_v9 = vadd.f32 %v8989_v22, %v8985_v26 }
 0xa12   :  { %v8992_v41 = vadd.f32 %v14639_v34, %v8990_v10  ;;  %v8993_v3 = vadd.f32 %v14640_v43, %v8991_v9 }
 0xa14   :  { %v8994_v44 = vmax.f32 %v8992_v41, 0.0  ;;  %v8995_v37 = vmax.f32 %v8993_v3, 0.0 }
 0xa16   :  { %8996 = vst [vmem:[%s18674_s5] sm:$0xff] %v8994_v44  ;;  %8997 = vst [vmem:[%s18674_s5 + $0x8] sm:$0xff] %v8995_v37 }
 0xa17   :  { %9002 = vsyncpa [#allocation3], 1 }
 0xa18   :  { %9003 = vsyncpa [#allocation5], 1 }

</bundles_post_ra>
